<compile_context>
chip_gen: v7x
topology: tpu7x:2x2x1
jax: 0.10.0
libtpu: 0.0.40
codegen_flags: <defaults>
</compile_context>

<pallas_src>
import jax
import jax.numpy as jnp
from jax.experimental import pallas as pl
from jax.experimental.pallas import tpu as pltpu

MAX_LENGTH = 10
SOS_TOKEN = 0
V_PAD = 128          # vocab padded to a full 128-lane width
S_PAD = 128          # attention rows lane-padded for unmasked stores


def attn_decoder_kernel(keys_ref, h0_ref, c0_ref, emb_ref, ua_t_ref, uab_ref,
                        va_ref, wih_e_ref, wih_c_ref, wfused_ref, blstm_ref,
                        bout_ref,
                        logp_ref, attn_ref, hf_ref, cf_ref):
    B, S, H = keys_ref.shape
    T = logp_ref.shape[0]
    VP = logp_ref.shape[2]
    bf16 = jnp.bfloat16
    f32 = jnp.float32

    # ---------------- loop-invariant preamble (computed once) ----------------
    keys = keys_ref[...]                                    # (B,S,H) f32
    keys2 = keys.astype(bf16).reshape(B * S, H)

    # Ua(keys) + Ua.bias + Wa.bias   (Wa.bias folded here, Va.bias dropped)
    ua_keys = (jnp.dot(keys2, ua_t_ref[...], preferred_element_type=f32)
               .reshape(B, S, H) + uab_ref[...])            # (B,S,H) f32

    # context projection table (keys @ W_x_ctx.T), f32 so the per-step context
    # contraction is a VPU multiply + sublane reduce (no MXU push on that edge)
    keys_zproj = (jnp.dot(keys2, wih_c_ref[...], preferred_element_type=f32)
                  .reshape(B, S, 4 * H))                    # (B,S,4H) f32

    # embedding projection table (E @ W_x_emb.T); one-hot selects a row per step
    emb_zproj = jnp.dot(emb_ref[...], wih_e_ref[...],
                        preferred_element_type=f32).astype(bf16)   # (VP,4H) bf16

    wfused = wfused_ref[...]        # (H, VP+5H) bf16 = [W_out.T | W_hh.T | Wa.T]
    va = va_ref[...]                # (1, H) f32

    # hoisted bias broadcasts (JAX does not CSE broadcast_in_dim in the unroll)
    b_lstm = jnp.broadcast_to(blstm_ref[...], (B, 4 * H))   # (B,4H) f32
    b_out = jnp.broadcast_to(bout_ref[...], (B, VP))        # (B,VP) f32 (-1e30 pads)

    h = h0_ref[...]                                         # (B,H) f32
    c = c0_ref[...]                                         # (B,H) f32

    iota_v = jax.lax.broadcasted_iota(jnp.int32, (B, VP), 1)
    onehot = (iota_v == SOS_TOKEN).astype(bf16)             # SOS start token
    attn_pad = jnp.zeros((B, S_PAD - S), f32)               # hoisted store pad

    # fused projection of the current hidden state:
    #   lanes [0,VP)        -> logits(h)       (unused for the initial h0 push)
    #   lanes [VP,VP+4H)    -> h @ W_hh.T      (LSTM hidden term, next step)
    #   lanes [VP+4H,VP+5H) -> h @ Wa.T        (attention query, next step)
    fused = jnp.dot(h.astype(bf16), wfused, preferred_element_type=f32)

    for t in range(T):   # static unroll; greedy decode is inherently serial
        z_h = fused[:, VP:VP + 4 * H]                       # 128-lane aligned slice
        wa_q = fused[:, VP + 4 * H:]                        # (B,H)

        # --- Bahdanau attention; query = pre-update hidden state ---
        e = jnp.tanh(wa_q[:, None, :] + ua_keys)            # (B,S,H)  (EUP)
        scores = jnp.sum(e * va[None, :, :], axis=-1)       # (B,S) in-lane reduce
        m = jnp.max(scores, axis=-1, keepdims=True)
        ex = jnp.exp(scores - m)
        denom = jnp.sum(ex, axis=-1, keepdims=True)
        weights = ex * pl.reciprocal(denom, approx=True)    # (B,S) f32

        # --- LSTM gates: contributions summed, no lane concat ---
        z_emb = jnp.dot(onehot, emb_zproj, preferred_element_type=f32)   # (B,4H)
        z_ctx = jnp.sum(weights[:, :, None] * keys_zproj, axis=1)        # (B,4H) VPU
        z = z_emb + z_ctx + z_h + b_lstm
        i_g = jax.nn.sigmoid(z[:, 0 * H:1 * H])
        f_g = jax.nn.sigmoid(z[:, 1 * H:2 * H])
        g_g = jnp.tanh(z[:, 2 * H:3 * H])
        o_g = jax.nn.sigmoid(z[:, 3 * H:4 * H])
        c = f_g * c + i_g * g_g
        h = o_g * jnp.tanh(c)

        # --- fused output projection + NEXT step hidden/query projection ---
        fused = jnp.dot(h.astype(bf16), wfused, preferred_element_type=f32)
        logits = fused[:, :VP] + b_out                      # f32; pads at -1e30

        # --- log-softmax + direct per-step stores (no epilogue stack) ---
        lmax = jnp.max(logits, axis=-1, keepdims=True)
        lse = jnp.log(jnp.sum(jnp.exp(logits - lmax), axis=-1, keepdims=True)) + lmax
        logp_ref[t] = logits - lse
        attn_ref[t] = jnp.concatenate([weights, attn_pad], axis=-1)   # lane-dense

        # --- greedy next token: first-index argmax fed back as one-hot ---
        idx = jnp.min(jnp.where(logits >= lmax, iota_v, VP), axis=-1, keepdims=True)
        onehot = (iota_v == idx).astype(bf16)

    hf_ref[...] = h
    cf_ref[...] = c


def _vmem_specs(n):
    return [pl.BlockSpec(memory_space=pltpu.MemorySpace.VMEM) for _ in range(n)]


def attn_decoder_forward(encoder_outputs, encoder_hidden, p):
    """Mirrors AttnDecoderRNN.forward(encoder_outputs, encoder_hidden) (greedy)."""
    B, S, H = encoder_outputs.shape
    V = p["emb"].shape[0]
    VP = V_PAD
    assert V <= VP and S <= S_PAD
    bf = jnp.bfloat16
    f32 = jnp.float32

    h0 = encoder_hidden[0][0]                               # (B,H)
    c0 = encoder_hidden[1][0]                               # (B,H)

    # ---- layout plumbing: transpose / fuse / pad weights (wrapper side) ----
    wih_t = p["lstm_wih"].T                                 # (2H,4H)
    wih_emb_t = wih_t[:H].astype(bf)                        # embedded part
    wih_ctx_t = wih_t[H:].astype(bf)                        # context part
    wout_pad = jnp.zeros((H, VP), f32).at[:, :V].set(p["out_w"].T)
    # fused [W_out.T | W_hh.T | Wa.T] so logits_t and hz_{t+1} share one push
    w_fused = jnp.concatenate([wout_pad, p["lstm_whh"].T, p["wa_w"].T],
                              axis=1).astype(bf)            # (H, VP+5H)
    ua_t = p["ua_w"].T.astype(bf)
    uawa_b = (p["ua_b"] + p["wa_b"]).reshape(1, H).astype(f32)   # Wa.bias folded in
    va_w = p["va_w"].astype(f32)                            # Va.bias dropped
    emb_pad = jnp.zeros((VP, H), f32).at[:V].set(p["emb"]).astype(bf)
    b_out_pad = jnp.full((1, VP), -1e30, f32).at[0, :V].set(p["out_b"])
    b_lstm = (p["lstm_bih"] + p["lstm_bhh"]).reshape(1, 4 * H).astype(f32)

    logp_p, attn_p, hT, cT = pl.pallas_call(
        attn_decoder_kernel,
        out_shape=(
            jax.ShapeDtypeStruct((MAX_LENGTH, B, VP), f32),
            jax.ShapeDtypeStruct((MAX_LENGTH, B, S_PAD), f32),
            jax.ShapeDtypeStruct((B, H), f32),
            jax.ShapeDtypeStruct((B, H), f32),
        ),
        in_specs=_vmem_specs(12),
        out_specs=tuple(_vmem_specs(4)),
    )(encoder_outputs, h0, c0, emb_pad, ua_t, uawa_b, va_w,
      wih_emb_t, wih_ctx_t, w_fused, b_lstm, b_out_pad)

    log_probs = jnp.transpose(logp_p, (1, 0, 2))[:, :, :V]         # (B,T,V)
    attentions = jnp.transpose(attn_p, (1, 0, 2))[:, :, :S]        # (B,T,S)
    decoder_hidden = (hT[None, ...], cT[None, ...])                # ((1,B,H),(1,B,H))
    return log_probs, decoder_hidden, attentions


def init_params(key, out_vocab, H):
    ks = jax.random.split(key, 13)
    n = lambda k, s: jax.random.normal(k, s, jnp.float32) * 0.1
    return dict(
        emb=n(ks[0], (out_vocab, H)),
        wa_w=n(ks[1], (H, H)), wa_b=n(ks[2], (H,)),
        ua_w=n(ks[3], (H, H)), ua_b=n(ks[4], (H,)),
        va_w=n(ks[5], (1, H)), va_b=n(ks[6], (1,)),      # va_b unused (softmax-invariant)
        lstm_wih=n(ks[7], (4 * H, 2 * H)), lstm_whh=n(ks[8], (4 * H, H)),
        lstm_bih=n(ks[9], (4 * H,)), lstm_bhh=n(ks[10], (4 * H,)),
        out_w=n(ks[11], (out_vocab, H)), out_b=n(ks[12], (out_vocab,)),
    )


if __name__ == "__main__":
    B, S, H, OUT_VOCAB = 2, 8, 32, 24

    key = jax.random.PRNGKey(0)
    k_param, k_enc, k_h, k_c = jax.random.split(key, 4)

    params = init_params(k_param, OUT_VOCAB, H)
    encoder_outputs = jax.random.normal(k_enc, (B, S, H), jnp.float32)
    encoder_hidden = (jax.random.normal(k_h, (1, B, H), jnp.float32),
                      jax.random.normal(k_c, (1, B, H), jnp.float32))

    fwd = jax.jit(attn_decoder_forward)
    log_probs, decoder_hidden, attentions = fwd(encoder_outputs, encoder_hidden, params)
    jax.block_until_ready((log_probs, decoder_hidden, attentions))

    assert log_probs.shape == (B, MAX_LENGTH, OUT_VOCAB)
    assert attentions.shape == (B, MAX_LENGTH, S)
    assert decoder_hidden[0].shape == (1, B, H) and decoder_hidden[1].shape == (1, B, H)
    print("KERNEL_OK")
</pallas_src>

<mosaic_0001>
module attributes {stable_mosaic.version = 11 : i64} {
  func.func @attn_decoder_kernel(%arg0: memref<2x8x32xf32, #tpu.memory_space<vmem>>, %arg1: memref<2x32xf32, #tpu.memory_space<vmem>>, %arg2: memref<2x32xf32, #tpu.memory_space<vmem>>, %arg3: memref<128x32xbf16, #tpu.memory_space<vmem>>, %arg4: memref<32x32xbf16, #tpu.memory_space<vmem>>, %arg5: memref<1x32xf32, #tpu.memory_space<vmem>>, %arg6: memref<1x32xf32, #tpu.memory_space<vmem>>, %arg7: memref<32x128xbf16, #tpu.memory_space<vmem>>, %arg8: memref<32x128xbf16, #tpu.memory_space<vmem>>, %arg9: memref<32x288xbf16, #tpu.memory_space<vmem>>, %arg10: memref<1x128xf32, #tpu.memory_space<vmem>>, %arg11: memref<1x128xf32, #tpu.memory_space<vmem>>, %arg12: memref<10x2x128xf32, #tpu.memory_space<vmem>>, %arg13: memref<10x2x128xf32, #tpu.memory_space<vmem>>, %arg14: memref<2x32xf32, #tpu.memory_space<vmem>>, %arg15: memref<2x32xf32, #tpu.memory_space<vmem>>) attributes {dimension_semantics = [], scalar_prefetch = 0 : i64, scratch_operands = 0 : i64, tpu.core_type = #tpu.core_type<tc>} {
    %c0 = arith.constant 0 : index
    %c0_0 = arith.constant 0 : index
    %c0_1 = arith.constant 0 : index
    %0 = vector.load %arg0[%c0, %c0_0, %c0_1] : memref<2x8x32xf32, #tpu.memory_space<vmem>>, vector<2x8x32xf32>
    %1 = arith.truncf %0 : vector<2x8x32xf32> to vector<2x8x32xbf16>
    %2 = vector.shape_cast %1 : vector<2x8x32xbf16> to vector<16x32xbf16>
    %c0_2 = arith.constant 0 : index
    %c0_3 = arith.constant 0 : index
    %3 = vector.load %arg4[%c0_2, %c0_3] : memref<32x32xbf16, #tpu.memory_space<vmem>>, vector<32x32xbf16>
    %cst = arith.constant dense<0.000000e+00> : vector<16x32xf32>
    %4 = tpu.matmul %2, %3, %cst {dimension_numbers = #tpu.dot_dimension_numbers<[1], [0], [0], [1], [0, 0, 1, 1], [], []>} : vector<16x32xbf16>, vector<32x32xbf16>, vector<16x32xf32> -> vector<16x32xf32>
    %5 = vector.shape_cast %4 : vector<16x32xf32> to vector<2x8x32xf32>
    %c0_4 = arith.constant 0 : index
    %c0_5 = arith.constant 0 : index
    %6 = vector.load %arg5[%c0_4, %c0_5] : memref<1x32xf32, #tpu.memory_space<vmem>>, vector<1x32xf32>
    %7 = vector.shape_cast %6 : vector<1x32xf32> to vector<1x1x32xf32>
    %8 = vector.broadcast %7 : vector<1x1x32xf32> to vector<2x8x32xf32>
    %9 = arith.addf %5, %8 : vector<2x8x32xf32>
    %c0_6 = arith.constant 0 : index
    %c0_7 = arith.constant 0 : index
    %10 = vector.load %arg8[%c0_6, %c0_7] : memref<32x128xbf16, #tpu.memory_space<vmem>>, vector<32x128xbf16>
    %cst_8 = arith.constant dense<0.000000e+00> : vector<16x128xf32>
    %11 = tpu.matmul %2, %10, %cst_8 {dimension_numbers = #tpu.dot_dimension_numbers<[1], [0], [0], [1], [0, 0, 1, 1], [], []>} : vector<16x32xbf16>, vector<32x128xbf16>, vector<16x128xf32> -> vector<16x128xf32>
    %12 = vector.shape_cast %11 : vector<16x128xf32> to vector<2x8x128xf32>
    %c0_9 = arith.constant 0 : index
    %c0_10 = arith.constant 0 : index
    %13 = vector.load %arg3[%c0_9, %c0_10] : memref<128x32xbf16, #tpu.memory_space<vmem>>, vector<128x32xbf16>
    %c0_11 = arith.constant 0 : index
    %c0_12 = arith.constant 0 : index
    %14 = vector.load %arg7[%c0_11, %c0_12] : memref<32x128xbf16, #tpu.memory_space<vmem>>, vector<32x128xbf16>
    %cst_13 = arith.constant dense<0.000000e+00> : vector<128x128xf32>
    %15 = tpu.matmul %13, %14, %cst_13 {dimension_numbers = #tpu.dot_dimension_numbers<[1], [0], [0], [1], [0, 0, 1, 1], [], []>} : vector<128x32xbf16>, vector<32x128xbf16>, vector<128x128xf32> -> vector<128x128xf32>
    %16 = arith.truncf %15 : vector<128x128xf32> to vector<128x128xbf16>
    %c0_14 = arith.constant 0 : index
    %c0_15 = arith.constant 0 : index
    %17 = vector.load %arg9[%c0_14, %c0_15] : memref<32x288xbf16, #tpu.memory_space<vmem>>, vector<32x288xbf16>
    %c0_16 = arith.constant 0 : index
    %c0_17 = arith.constant 0 : index
    %18 = vector.load %arg6[%c0_16, %c0_17] : memref<1x32xf32, #tpu.memory_space<vmem>>, vector<1x32xf32>
    %c0_18 = arith.constant 0 : index
    %c0_19 = arith.constant 0 : index
    %19 = vector.load %arg10[%c0_18, %c0_19] : memref<1x128xf32, #tpu.memory_space<vmem>>, vector<1x128xf32>
    %20 = vector.shape_cast %19 : vector<1x128xf32> to vector<1x128xf32>
    %21 = vector.broadcast %20 : vector<1x128xf32> to vector<2x128xf32>
    %c0_20 = arith.constant 0 : index
    %c0_21 = arith.constant 0 : index
    %22 = vector.load %arg11[%c0_20, %c0_21] : memref<1x128xf32, #tpu.memory_space<vmem>>, vector<1x128xf32>
    %23 = vector.shape_cast %22 : vector<1x128xf32> to vector<1x128xf32>
    %24 = vector.broadcast %23 : vector<1x128xf32> to vector<2x128xf32>
    %c0_22 = arith.constant 0 : index
    %c0_23 = arith.constant 0 : index
    %25 = vector.load %arg1[%c0_22, %c0_23] : memref<2x32xf32, #tpu.memory_space<vmem>>, vector<2x32xf32>
    %c0_24 = arith.constant 0 : index
    %c0_25 = arith.constant 0 : index
    %26 = vector.load %arg2[%c0_24, %c0_25] : memref<2x32xf32, #tpu.memory_space<vmem>>, vector<2x32xf32>
    %27 = tpu.iota {dimensions = array<i32: 1>} : vector<2x128xi32>
    %c0_i32 = arith.constant 0 : i32
    %28 = vector.broadcast %c0_i32 : i32 to vector<2x128xi32>
    %29 = arith.cmpi eq, %27, %28 : vector<2x128xi32>
    %30 = arith.extui %29 : vector<2x128xi1> to vector<2x128xi32>
    %31 = arith.sitofp %30 : vector<2x128xi32> to vector<2x128xf32>
    %32 = arith.truncf %31 : vector<2x128xf32> to vector<2x128xbf16>
    %cst_26 = arith.constant 0.000000e+00 : f32
    %33 = vector.broadcast %cst_26 : f32 to vector<2x120xf32>
    %34 = arith.truncf %25 : vector<2x32xf32> to vector<2x32xbf16>
    %cst_27 = arith.constant dense<0.000000e+00> : vector<2x288xf32>
    %35 = tpu.matmul %34, %17, %cst_27 {dimension_numbers = #tpu.dot_dimension_numbers<[1], [0], [0], [1], [0, 0, 1, 1], [], []>} : vector<2x32xbf16>, vector<32x288xbf16>, vector<2x288xf32> -> vector<2x288xf32>
    %36 = vector.extract_strided_slice %35 {offsets = [0, 128], sizes = [2, 128], strides = [1, 1]} : vector<2x288xf32> to vector<2x128xf32>
    %37 = vector.extract_strided_slice %35 {offsets = [0, 256], sizes = [2, 32], strides = [1, 1]} : vector<2x288xf32> to vector<2x32xf32>
    %38 = vector.shape_cast %37 : vector<2x32xf32> to vector<2x1x32xf32>
    %39 = vector.broadcast %38 : vector<2x1x32xf32> to vector<2x8x32xf32>
    %40 = arith.addf %39, %9 : vector<2x8x32xf32>
    %41 = math.tanh %40 : vector<2x8x32xf32>
    %42 = vector.shape_cast %18 : vector<1x32xf32> to vector<1x1x32xf32>
    %43 = vector.broadcast %42 : vector<1x1x32xf32> to vector<2x8x32xf32>
    %44 = arith.mulf %41, %43 : vector<2x8x32xf32>
    %cst_28 = arith.constant dense<0.000000e+00> : vector<2x8xf32>
    %45 = vector.multi_reduction <add>, %44, %cst_28 [2] : vector<2x8x32xf32> to vector<2x8xf32>
    %cst_29 = arith.constant dense<0xFF800000> : vector<2xf32>
    %46 = vector.multi_reduction <maximumf>, %45, %cst_29 [1] : vector<2x8xf32> to vector<2xf32>
    %47 = vector.shape_cast %46 : vector<2xf32> to vector<2x1xf32>
    %48 = vector.broadcast %47 : vector<2x1xf32> to vector<2x8xf32>
    %49 = arith.subf %45, %48 : vector<2x8xf32>
    %50 = math.exp %49 : vector<2x8xf32>
    %cst_30 = arith.constant dense<0.000000e+00> : vector<2xf32>
    %51 = vector.multi_reduction <add>, %50, %cst_30 [1] : vector<2x8xf32> to vector<2xf32>
    %52 = vector.shape_cast %51 : vector<2xf32> to vector<2x1xf32>
    %53 = tpu.reciprocal %52 {approx = true} : vector<2x1xf32> -> vector<2x1xf32>
    %54 = vector.broadcast %53 : vector<2x1xf32> to vector<2x8xf32>
    %55 = arith.mulf %50, %54 : vector<2x8xf32>
    %cst_31 = arith.constant dense<0.000000e+00> : vector<2x128xf32>
    %56 = tpu.matmul %32, %16, %cst_31 {dimension_numbers = #tpu.dot_dimension_numbers<[1], [0], [0], [1], [0, 0, 1, 1], [], []>} : vector<2x128xbf16>, vector<128x128xbf16>, vector<2x128xf32> -> vector<2x128xf32>
    %57 = vector.shape_cast %55 : vector<2x8xf32> to vector<2x8x1xf32>
    %58 = vector.broadcast %57 : vector<2x8x1xf32> to vector<2x8x128xf32>
    %59 = arith.mulf %58, %12 : vector<2x8x128xf32>
    %cst_32 = arith.constant dense<0.000000e+00> : vector<2x128xf32>
    %60 = vector.multi_reduction <add>, %59, %cst_32 [1] : vector<2x8x128xf32> to vector<2x128xf32>
    %61 = arith.addf %56, %60 : vector<2x128xf32>
    %62 = arith.addf %61, %36 : vector<2x128xf32>
    %63 = arith.addf %62, %21 : vector<2x128xf32>
    %64 = vector.extract_strided_slice %63 {offsets = [0, 0], sizes = [2, 32], strides = [1, 1]} : vector<2x128xf32> to vector<2x32xf32>
    %65 = arith.negf %64 : vector<2x32xf32>
    %66 = math.exp %65 : vector<2x32xf32>
    %cst_33 = arith.constant 1.000000e+00 : f32
    %67 = vector.broadcast %cst_33 : f32 to vector<2x32xf32>
    %68 = arith.addf %67, %66 : vector<2x32xf32>
    %69 = arith.divf %67, %68 : vector<2x32xf32>
    %70 = vector.extract_strided_slice %63 {offsets = [0, 32], sizes = [2, 32], strides = [1, 1]} : vector<2x128xf32> to vector<2x32xf32>
    %71 = arith.negf %70 : vector<2x32xf32>
    %72 = math.exp %71 : vector<2x32xf32>
    %cst_34 = arith.constant 1.000000e+00 : f32
    %73 = vector.broadcast %cst_34 : f32 to vector<2x32xf32>
    %74 = arith.addf %73, %72 : vector<2x32xf32>
    %75 = arith.divf %73, %74 : vector<2x32xf32>
    %76 = vector.extract_strided_slice %63 {offsets = [0, 64], sizes = [2, 32], strides = [1, 1]} : vector<2x128xf32> to vector<2x32xf32>
    %77 = math.tanh %76 : vector<2x32xf32>
    %78 = vector.extract_strided_slice %63 {offsets = [0, 96], sizes = [2, 32], strides = [1, 1]} : vector<2x128xf32> to vector<2x32xf32>
    %79 = arith.negf %78 : vector<2x32xf32>
    %80 = math.exp %79 : vector<2x32xf32>
    %cst_35 = arith.constant 1.000000e+00 : f32
    %81 = vector.broadcast %cst_35 : f32 to vector<2x32xf32>
    %82 = arith.addf %81, %80 : vector<2x32xf32>
    %83 = arith.divf %81, %82 : vector<2x32xf32>
    %84 = arith.mulf %75, %26 : vector<2x32xf32>
    %85 = arith.mulf %69, %77 : vector<2x32xf32>
    %86 = arith.addf %84, %85 : vector<2x32xf32>
    %87 = math.tanh %86 : vector<2x32xf32>
    %88 = arith.mulf %83, %87 : vector<2x32xf32>
    %89 = arith.truncf %88 : vector<2x32xf32> to vector<2x32xbf16>
    %cst_36 = arith.constant dense<0.000000e+00> : vector<2x288xf32>
    %90 = tpu.matmul %89, %17, %cst_36 {dimension_numbers = #tpu.dot_dimension_numbers<[1], [0], [0], [1], [0, 0, 1, 1], [], []>} : vector<2x32xbf16>, vector<32x288xbf16>, vector<2x288xf32> -> vector<2x288xf32>
    %91 = vector.extract_strided_slice %90 {offsets = [0, 0], sizes = [2, 128], strides = [1, 1]} : vector<2x288xf32> to vector<2x128xf32>
    %92 = arith.addf %91, %24 : vector<2x128xf32>
    %cst_37 = arith.constant dense<0xFF800000> : vector<2xf32>
    %93 = vector.multi_reduction <maximumf>, %92, %cst_37 [1] : vector<2x128xf32> to vector<2xf32>
    %94 = vector.shape_cast %93 : vector<2xf32> to vector<2x1xf32>
    %95 = vector.broadcast %94 : vector<2x1xf32> to vector<2x128xf32>
    %96 = arith.subf %92, %95 : vector<2x128xf32>
    %97 = math.exp %96 : vector<2x128xf32>
    %cst_38 = arith.constant dense<0.000000e+00> : vector<2xf32>
    %98 = vector.multi_reduction <add>, %97, %cst_38 [1] : vector<2x128xf32> to vector<2xf32>
    %99 = vector.shape_cast %98 : vector<2xf32> to vector<2x1xf32>
    %100 = math.log %99 : vector<2x1xf32>
    %101 = arith.addf %100, %94 : vector<2x1xf32>
    %102 = vector.broadcast %101 : vector<2x1xf32> to vector<2x128xf32>
    %103 = arith.subf %92, %102 : vector<2x128xf32>
    %c0_39 = arith.constant 0 : index
    %c0_40 = arith.constant 0 : index
    %c0_41 = arith.constant 0 : index
    %104 = vector.load %arg12[%c0_39, %c0_40, %c0_41] : memref<10x2x128xf32, #tpu.memory_space<vmem>>, vector<1x2x128xf32>
    %105 = vector.shape_cast %104 : vector<1x2x128xf32> to vector<2x128xf32>
    %106 = vector.shape_cast %103 : vector<2x128xf32> to vector<1x2x128xf32>
    tpu.vector_store %arg12[%c0_39, %c0_40, %c0_41], %106 {strides = array<i32>} : memref<10x2x128xf32, #tpu.memory_space<vmem>>, vector<1x2x128xf32>,
    %107 = tpu.concatenate %55, %33 in 1 : vector<2x8xf32>, vector<2x120xf32> -> vector<2x128xf32>
    %c0_42 = arith.constant 0 : index
    %c0_43 = arith.constant 0 : index
    %c0_44 = arith.constant 0 : index
    %108 = vector.load %arg13[%c0_42, %c0_43, %c0_44] : memref<10x2x128xf32, #tpu.memory_space<vmem>>, vector<1x2x128xf32>
    %109 = vector.shape_cast %108 : vector<1x2x128xf32> to vector<2x128xf32>
    %110 = vector.shape_cast %107 : vector<2x128xf32> to vector<1x2x128xf32>
    tpu.vector_store %arg13[%c0_42, %c0_43, %c0_44], %110 {strides = array<i32>} : memref<10x2x128xf32, #tpu.memory_space<vmem>>, vector<1x2x128xf32>,
    %111 = vector.broadcast %94 : vector<2x1xf32> to vector<2x128xf32>
    %112 = arith.cmpf oge, %92, %111 : vector<2x128xf32>
    %c128_i32 = arith.constant 128 : i32
    %113 = vector.broadcast %c128_i32 : i32 to vector<2x128xi32>
    %114 = arith.select %112, %27, %113 : vector<2x128xi1>, vector<2x128xi32>
    %cst_45 = arith.constant dense<2147483647> : vector<2xi32>
    %115 = vector.multi_reduction <minsi>, %114, %cst_45 [1] : vector<2x128xi32> to vector<2xi32>
    %116 = vector.shape_cast %115 : vector<2xi32> to vector<2x1xi32>
    %117 = vector.broadcast %116 : vector<2x1xi32> to vector<2x128xi32>
    %118 = arith.cmpi eq, %27, %117 : vector<2x128xi32>
    %119 = arith.extui %118 : vector<2x128xi1> to vector<2x128xi32>
    %120 = arith.sitofp %119 : vector<2x128xi32> to vector<2x128xf32>
    %121 = arith.truncf %120 : vector<2x128xf32> to vector<2x128xbf16>
    %122 = vector.extract_strided_slice %90 {offsets = [0, 128], sizes = [2, 128], strides = [1, 1]} : vector<2x288xf32> to vector<2x128xf32>
    %123 = vector.extract_strided_slice %90 {offsets = [0, 256], sizes = [2, 32], strides = [1, 1]} : vector<2x288xf32> to vector<2x32xf32>
    %124 = vector.shape_cast %123 : vector<2x32xf32> to vector<2x1x32xf32>
    %125 = vector.broadcast %124 : vector<2x1x32xf32> to vector<2x8x32xf32>
    %126 = arith.addf %125, %9 : vector<2x8x32xf32>
    %127 = math.tanh %126 : vector<2x8x32xf32>
    %128 = vector.shape_cast %18 : vector<1x32xf32> to vector<1x1x32xf32>
    %129 = vector.broadcast %128 : vector<1x1x32xf32> to vector<2x8x32xf32>
    %130 = arith.mulf %127, %129 : vector<2x8x32xf32>
    %cst_46 = arith.constant dense<0.000000e+00> : vector<2x8xf32>
    %131 = vector.multi_reduction <add>, %130, %cst_46 [2] : vector<2x8x32xf32> to vector<2x8xf32>
    %cst_47 = arith.constant dense<0xFF800000> : vector<2xf32>
    %132 = vector.multi_reduction <maximumf>, %131, %cst_47 [1] : vector<2x8xf32> to vector<2xf32>
    %133 = vector.shape_cast %132 : vector<2xf32> to vector<2x1xf32>
    %134 = vector.broadcast %133 : vector<2x1xf32> to vector<2x8xf32>
    %135 = arith.subf %131, %134 : vector<2x8xf32>
    %136 = math.exp %135 : vector<2x8xf32>
    %cst_48 = arith.constant dense<0.000000e+00> : vector<2xf32>
    %137 = vector.multi_reduction <add>, %136, %cst_48 [1] : vector<2x8xf32> to vector<2xf32>
    %138 = vector.shape_cast %137 : vector<2xf32> to vector<2x1xf32>
    %139 = tpu.reciprocal %138 {approx = true} : vector<2x1xf32> -> vector<2x1xf32>
    %140 = vector.broadcast %139 : vector<2x1xf32> to vector<2x8xf32>
    %141 = arith.mulf %136, %140 : vector<2x8xf32>
    %cst_49 = arith.constant dense<0.000000e+00> : vector<2x128xf32>
    %142 = tpu.matmul %121, %16, %cst_49 {dimension_numbers = #tpu.dot_dimension_numbers<[1], [0], [0], [1], [0, 0, 1, 1], [], []>} : vector<2x128xbf16>, vector<128x128xbf16>, vector<2x128xf32> -> vector<2x128xf32>
    %143 = vector.shape_cast %141 : vector<2x8xf32> to vector<2x8x1xf32>
    %144 = vector.broadcast %143 : vector<2x8x1xf32> to vector<2x8x128xf32>
    %145 = arith.mulf %144, %12 : vector<2x8x128xf32>
    %cst_50 = arith.constant dense<0.000000e+00> : vector<2x128xf32>
    %146 = vector.multi_reduction <add>, %145, %cst_50 [1] : vector<2x8x128xf32> to vector<2x128xf32>
    %147 = arith.addf %142, %146 : vector<2x128xf32>
    %148 = arith.addf %147, %122 : vector<2x128xf32>
    %149 = arith.addf %148, %21 : vector<2x128xf32>
    %150 = vector.extract_strided_slice %149 {offsets = [0, 0], sizes = [2, 32], strides = [1, 1]} : vector<2x128xf32> to vector<2x32xf32>
    %151 = arith.negf %150 : vector<2x32xf32>
    %152 = math.exp %151 : vector<2x32xf32>
    %cst_51 = arith.constant 1.000000e+00 : f32
    %153 = vector.broadcast %cst_51 : f32 to vector<2x32xf32>
    %154 = arith.addf %153, %152 : vector<2x32xf32>
    %155 = arith.divf %153, %154 : vector<2x32xf32>
    %156 = vector.extract_strided_slice %149 {offsets = [0, 32], sizes = [2, 32], strides = [1, 1]} : vector<2x128xf32> to vector<2x32xf32>
    %157 = arith.negf %156 : vector<2x32xf32>
    %158 = math.exp %157 : vector<2x32xf32>
    %cst_52 = arith.constant 1.000000e+00 : f32
    %159 = vector.broadcast %cst_52 : f32 to vector<2x32xf32>
    %160 = arith.addf %159, %158 : vector<2x32xf32>
    %161 = arith.divf %159, %160 : vector<2x32xf32>
    %162 = vector.extract_strided_slice %149 {offsets = [0, 64], sizes = [2, 32], strides = [1, 1]} : vector<2x128xf32> to vector<2x32xf32>
    %163 = math.tanh %162 : vector<2x32xf32>
    %164 = vector.extract_strided_slice %149 {offsets = [0, 96], sizes = [2, 32], strides = [1, 1]} : vector<2x128xf32> to vector<2x32xf32>
    %165 = arith.negf %164 : vector<2x32xf32>
    %166 = math.exp %165 : vector<2x32xf32>
    %cst_53 = arith.constant 1.000000e+00 : f32
    %167 = vector.broadcast %cst_53 : f32 to vector<2x32xf32>
    %168 = arith.addf %167, %166 : vector<2x32xf32>
    %169 = arith.divf %167, %168 : vector<2x32xf32>
    %170 = arith.mulf %161, %86 : vector<2x32xf32>
    %171 = arith.mulf %155, %163 : vector<2x32xf32>
    %172 = arith.addf %170, %171 : vector<2x32xf32>
    %173 = math.tanh %172 : vector<2x32xf32>
    %174 = arith.mulf %169, %173 : vector<2x32xf32>
    %175 = arith.truncf %174 : vector<2x32xf32> to vector<2x32xbf16>
    %cst_54 = arith.constant dense<0.000000e+00> : vector<2x288xf32>
    %176 = tpu.matmul %175, %17, %cst_54 {dimension_numbers = #tpu.dot_dimension_numbers<[1], [0], [0], [1], [0, 0, 1, 1], [], []>} : vector<2x32xbf16>, vector<32x288xbf16>, vector<2x288xf32> -> vector<2x288xf32>
    %177 = vector.extract_strided_slice %176 {offsets = [0, 0], sizes = [2, 128], strides = [1, 1]} : vector<2x288xf32> to vector<2x128xf32>
    %178 = arith.addf %177, %24 : vector<2x128xf32>
    %cst_55 = arith.constant dense<0xFF800000> : vector<2xf32>
    %179 = vector.multi_reduction <maximumf>, %178, %cst_55 [1] : vector<2x128xf32> to vector<2xf32>
    %180 = vector.shape_cast %179 : vector<2xf32> to vector<2x1xf32>
    %181 = vector.broadcast %180 : vector<2x1xf32> to vector<2x128xf32>
    %182 = arith.subf %178, %181 : vector<2x128xf32>
    %183 = math.exp %182 : vector<2x128xf32>
    %cst_56 = arith.constant dense<0.000000e+00> : vector<2xf32>
    %184 = vector.multi_reduction <add>, %183, %cst_56 [1] : vector<2x128xf32> to vector<2xf32>
    %185 = vector.shape_cast %184 : vector<2xf32> to vector<2x1xf32>
    %186 = math.log %185 : vector<2x1xf32>
    %187 = arith.addf %186, %180 : vector<2x1xf32>
    %188 = vector.broadcast %187 : vector<2x1xf32> to vector<2x128xf32>
    %189 = arith.subf %178, %188 : vector<2x128xf32>
    %c1 = arith.constant 1 : index
    %c0_57 = arith.constant 0 : index
    %c0_58 = arith.constant 0 : index
    %190 = vector.load %arg12[%c1, %c0_57, %c0_58] : memref<10x2x128xf32, #tpu.memory_space<vmem>>, vector<1x2x128xf32>
    %191 = vector.shape_cast %190 : vector<1x2x128xf32> to vector<2x128xf32>
    %192 = vector.shape_cast %189 : vector<2x128xf32> to vector<1x2x128xf32>
    tpu.vector_store %arg12[%c1, %c0_57, %c0_58], %192 {strides = array<i32>} : memref<10x2x128xf32, #tpu.memory_space<vmem>>, vector<1x2x128xf32>,
    %193 = tpu.concatenate %141, %33 in 1 : vector<2x8xf32>, vector<2x120xf32> -> vector<2x128xf32>
    %c1_59 = arith.constant 1 : index
    %c0_60 = arith.constant 0 : index
    %c0_61 = arith.constant 0 : index
    %194 = vector.load %arg13[%c1_59, %c0_60, %c0_61] : memref<10x2x128xf32, #tpu.memory_space<vmem>>, vector<1x2x128xf32>
    %195 = vector.shape_cast %194 : vector<1x2x128xf32> to vector<2x128xf32>
    %196 = vector.shape_cast %193 : vector<2x128xf32> to vector<1x2x128xf32>
    tpu.vector_store %arg13[%c1_59, %c0_60, %c0_61], %196 {strides = array<i32>} : memref<10x2x128xf32, #tpu.memory_space<vmem>>, vector<1x2x128xf32>,
    %197 = vector.broadcast %180 : vector<2x1xf32> to vector<2x128xf32>
    %198 = arith.cmpf oge, %178, %197 : vector<2x128xf32>
    %c128_i32_62 = arith.constant 128 : i32
    %199 = vector.broadcast %c128_i32_62 : i32 to vector<2x128xi32>
    %200 = arith.select %198, %27, %199 : vector<2x128xi1>, vector<2x128xi32>
    %cst_63 = arith.constant dense<2147483647> : vector<2xi32>
    %201 = vector.multi_reduction <minsi>, %200, %cst_63 [1] : vector<2x128xi32> to vector<2xi32>
    %202 = vector.shape_cast %201 : vector<2xi32> to vector<2x1xi32>
    %203 = vector.broadcast %202 : vector<2x1xi32> to vector<2x128xi32>
    %204 = arith.cmpi eq, %27, %203 : vector<2x128xi32>
    %205 = arith.extui %204 : vector<2x128xi1> to vector<2x128xi32>
    %206 = arith.sitofp %205 : vector<2x128xi32> to vector<2x128xf32>
    %207 = arith.truncf %206 : vector<2x128xf32> to vector<2x128xbf16>
    %208 = vector.extract_strided_slice %176 {offsets = [0, 128], sizes = [2, 128], strides = [1, 1]} : vector<2x288xf32> to vector<2x128xf32>
    %209 = vector.extract_strided_slice %176 {offsets = [0, 256], sizes = [2, 32], strides = [1, 1]} : vector<2x288xf32> to vector<2x32xf32>
    %210 = vector.shape_cast %209 : vector<2x32xf32> to vector<2x1x32xf32>
    %211 = vector.broadcast %210 : vector<2x1x32xf32> to vector<2x8x32xf32>
    %212 = arith.addf %211, %9 : vector<2x8x32xf32>
    %213 = math.tanh %212 : vector<2x8x32xf32>
    %214 = vector.shape_cast %18 : vector<1x32xf32> to vector<1x1x32xf32>
    %215 = vector.broadcast %214 : vector<1x1x32xf32> to vector<2x8x32xf32>
    %216 = arith.mulf %213, %215 : vector<2x8x32xf32>
    %cst_64 = arith.constant dense<0.000000e+00> : vector<2x8xf32>
    %217 = vector.multi_reduction <add>, %216, %cst_64 [2] : vector<2x8x32xf32> to vector<2x8xf32>
    %cst_65 = arith.constant dense<0xFF800000> : vector<2xf32>
    %218 = vector.multi_reduction <maximumf>, %217, %cst_65 [1] : vector<2x8xf32> to vector<2xf32>
    %219 = vector.shape_cast %218 : vector<2xf32> to vector<2x1xf32>
    %220 = vector.broadcast %219 : vector<2x1xf32> to vector<2x8xf32>
    %221 = arith.subf %217, %220 : vector<2x8xf32>
    %222 = math.exp %221 : vector<2x8xf32>
    %cst_66 = arith.constant dense<0.000000e+00> : vector<2xf32>
    %223 = vector.multi_reduction <add>, %222, %cst_66 [1] : vector<2x8xf32> to vector<2xf32>
    %224 = vector.shape_cast %223 : vector<2xf32> to vector<2x1xf32>
    %225 = tpu.reciprocal %224 {approx = true} : vector<2x1xf32> -> vector<2x1xf32>
    %226 = vector.broadcast %225 : vector<2x1xf32> to vector<2x8xf32>
    %227 = arith.mulf %222, %226 : vector<2x8xf32>
    %cst_67 = arith.constant dense<0.000000e+00> : vector<2x128xf32>
    %228 = tpu.matmul %207, %16, %cst_67 {dimension_numbers = #tpu.dot_dimension_numbers<[1], [0], [0], [1], [0, 0, 1, 1], [], []>} : vector<2x128xbf16>, vector<128x128xbf16>, vector<2x128xf32> -> vector<2x128xf32>
    %229 = vector.shape_cast %227 : vector<2x8xf32> to vector<2x8x1xf32>
    %230 = vector.broadcast %229 : vector<2x8x1xf32> to vector<2x8x128xf32>
    %231 = arith.mulf %230, %12 : vector<2x8x128xf32>
    %cst_68 = arith.constant dense<0.000000e+00> : vector<2x128xf32>
    %232 = vector.multi_reduction <add>, %231, %cst_68 [1] : vector<2x8x128xf32> to vector<2x128xf32>
    %233 = arith.addf %228, %232 : vector<2x128xf32>
    %234 = arith.addf %233, %208 : vector<2x128xf32>
    %235 = arith.addf %234, %21 : vector<2x128xf32>
    %236 = vector.extract_strided_slice %235 {offsets = [0, 0], sizes = [2, 32], strides = [1, 1]} : vector<2x128xf32> to vector<2x32xf32>
    %237 = arith.negf %236 : vector<2x32xf32>
    %238 = math.exp %237 : vector<2x32xf32>
    %cst_69 = arith.constant 1.000000e+00 : f32
    %239 = vector.broadcast %cst_69 : f32 to vector<2x32xf32>
    %240 = arith.addf %239, %238 : vector<2x32xf32>
    %241 = arith.divf %239, %240 : vector<2x32xf32>
    %242 = vector.extract_strided_slice %235 {offsets = [0, 32], sizes = [2, 32], strides = [1, 1]} : vector<2x128xf32> to vector<2x32xf32>
    %243 = arith.negf %242 : vector<2x32xf32>
    %244 = math.exp %243 : vector<2x32xf32>
    %cst_70 = arith.constant 1.000000e+00 : f32
    %245 = vector.broadcast %cst_70 : f32 to vector<2x32xf32>
    %246 = arith.addf %245, %244 : vector<2x32xf32>
    %247 = arith.divf %245, %246 : vector<2x32xf32>
    %248 = vector.extract_strided_slice %235 {offsets = [0, 64], sizes = [2, 32], strides = [1, 1]} : vector<2x128xf32> to vector<2x32xf32>
    %249 = math.tanh %248 : vector<2x32xf32>
    %250 = vector.extract_strided_slice %235 {offsets = [0, 96], sizes = [2, 32], strides = [1, 1]} : vector<2x128xf32> to vector<2x32xf32>
    %251 = arith.negf %250 : vector<2x32xf32>
    %252 = math.exp %251 : vector<2x32xf32>
    %cst_71 = arith.constant 1.000000e+00 : f32
    %253 = vector.broadcast %cst_71 : f32 to vector<2x32xf32>
    %254 = arith.addf %253, %252 : vector<2x32xf32>
    %255 = arith.divf %253, %254 : vector<2x32xf32>
    %256 = arith.mulf %247, %172 : vector<2x32xf32>
    %257 = arith.mulf %241, %249 : vector<2x32xf32>
    %258 = arith.addf %256, %257 : vector<2x32xf32>
    %259 = math.tanh %258 : vector<2x32xf32>
    %260 = arith.mulf %255, %259 : vector<2x32xf32>
    %261 = arith.truncf %260 : vector<2x32xf32> to vector<2x32xbf16>
    %cst_72 = arith.constant dense<0.000000e+00> : vector<2x288xf32>
    %262 = tpu.matmul %261, %17, %cst_72 {dimension_numbers = #tpu.dot_dimension_numbers<[1], [0], [0], [1], [0, 0, 1, 1], [], []>} : vector<2x32xbf16>, vector<32x288xbf16>, vector<2x288xf32> -> vector<2x288xf32>
    %263 = vector.extract_strided_slice %262 {offsets = [0, 0], sizes = [2, 128], strides = [1, 1]} : vector<2x288xf32> to vector<2x128xf32>
    %264 = arith.addf %263, %24 : vector<2x128xf32>
    %cst_73 = arith.constant dense<0xFF800000> : vector<2xf32>
    %265 = vector.multi_reduction <maximumf>, %264, %cst_73 [1] : vector<2x128xf32> to vector<2xf32>
    %266 = vector.shape_cast %265 : vector<2xf32> to vector<2x1xf32>
    %267 = vector.broadcast %266 : vector<2x1xf32> to vector<2x128xf32>
    %268 = arith.subf %264, %267 : vector<2x128xf32>
    %269 = math.exp %268 : vector<2x128xf32>
    %cst_74 = arith.constant dense<0.000000e+00> : vector<2xf32>
    %270 = vector.multi_reduction <add>, %269, %cst_74 [1] : vector<2x128xf32> to vector<2xf32>
    %271 = vector.shape_cast %270 : vector<2xf32> to vector<2x1xf32>
    %272 = math.log %271 : vector<2x1xf32>
    %273 = arith.addf %272, %266 : vector<2x1xf32>
    %274 = vector.broadcast %273 : vector<2x1xf32> to vector<2x128xf32>
    %275 = arith.subf %264, %274 : vector<2x128xf32>
    %c2 = arith.constant 2 : index
    %c0_75 = arith.constant 0 : index
    %c0_76 = arith.constant 0 : index
    %276 = vector.load %arg12[%c2, %c0_75, %c0_76] : memref<10x2x128xf32, #tpu.memory_space<vmem>>, vector<1x2x128xf32>
    %277 = vector.shape_cast %276 : vector<1x2x128xf32> to vector<2x128xf32>
    %278 = vector.shape_cast %275 : vector<2x128xf32> to vector<1x2x128xf32>
    tpu.vector_store %arg12[%c2, %c0_75, %c0_76], %278 {strides = array<i32>} : memref<10x2x128xf32, #tpu.memory_space<vmem>>, vector<1x2x128xf32>,
    %279 = tpu.concatenate %227, %33 in 1 : vector<2x8xf32>, vector<2x120xf32> -> vector<2x128xf32>
    %c2_77 = arith.constant 2 : index
    %c0_78 = arith.constant 0 : index
    %c0_79 = arith.constant 0 : index
    %280 = vector.load %arg13[%c2_77, %c0_78, %c0_79] : memref<10x2x128xf32, #tpu.memory_space<vmem>>, vector<1x2x128xf32>
    %281 = vector.shape_cast %280 : vector<1x2x128xf32> to vector<2x128xf32>
    %282 = vector.shape_cast %279 : vector<2x128xf32> to vector<1x2x128xf32>
    tpu.vector_store %arg13[%c2_77, %c0_78, %c0_79], %282 {strides = array<i32>} : memref<10x2x128xf32, #tpu.memory_space<vmem>>, vector<1x2x128xf32>,
    %283 = vector.broadcast %266 : vector<2x1xf32> to vector<2x128xf32>
    %284 = arith.cmpf oge, %264, %283 : vector<2x128xf32>
    %c128_i32_80 = arith.constant 128 : i32
    %285 = vector.broadcast %c128_i32_80 : i32 to vector<2x128xi32>
    %286 = arith.select %284, %27, %285 : vector<2x128xi1>, vector<2x128xi32>
    %cst_81 = arith.constant dense<2147483647> : vector<2xi32>
    %287 = vector.multi_reduction <minsi>, %286, %cst_81 [1] : vector<2x128xi32> to vector<2xi32>
    %288 = vector.shape_cast %287 : vector<2xi32> to vector<2x1xi32>
    %289 = vector.broadcast %288 : vector<2x1xi32> to vector<2x128xi32>
    %290 = arith.cmpi eq, %27, %289 : vector<2x128xi32>
    %291 = arith.extui %290 : vector<2x128xi1> to vector<2x128xi32>
    %292 = arith.sitofp %291 : vector<2x128xi32> to vector<2x128xf32>
    %293 = arith.truncf %292 : vector<2x128xf32> to vector<2x128xbf16>
    %294 = vector.extract_strided_slice %262 {offsets = [0, 128], sizes = [2, 128], strides = [1, 1]} : vector<2x288xf32> to vector<2x128xf32>
    %295 = vector.extract_strided_slice %262 {offsets = [0, 256], sizes = [2, 32], strides = [1, 1]} : vector<2x288xf32> to vector<2x32xf32>
    %296 = vector.shape_cast %295 : vector<2x32xf32> to vector<2x1x32xf32>
    %297 = vector.broadcast %296 : vector<2x1x32xf32> to vector<2x8x32xf32>
    %298 = arith.addf %297, %9 : vector<2x8x32xf32>
    %299 = math.tanh %298 : vector<2x8x32xf32>
    %300 = vector.shape_cast %18 : vector<1x32xf32> to vector<1x1x32xf32>
    %301 = vector.broadcast %300 : vector<1x1x32xf32> to vector<2x8x32xf32>
    %302 = arith.mulf %299, %301 : vector<2x8x32xf32>
    %cst_82 = arith.constant dense<0.000000e+00> : vector<2x8xf32>
    %303 = vector.multi_reduction <add>, %302, %cst_82 [2] : vector<2x8x32xf32> to vector<2x8xf32>
    %cst_83 = arith.constant dense<0xFF800000> : vector<2xf32>
    %304 = vector.multi_reduction <maximumf>, %303, %cst_83 [1] : vector<2x8xf32> to vector<2xf32>
    %305 = vector.shape_cast %304 : vector<2xf32> to vector<2x1xf32>
    %306 = vector.broadcast %305 : vector<2x1xf32> to vector<2x8xf32>
    %307 = arith.subf %303, %306 : vector<2x8xf32>
    %308 = math.exp %307 : vector<2x8xf32>
    %cst_84 = arith.constant dense<0.000000e+00> : vector<2xf32>
    %309 = vector.multi_reduction <add>, %308, %cst_84 [1] : vector<2x8xf32> to vector<2xf32>
    %310 = vector.shape_cast %309 : vector<2xf32> to vector<2x1xf32>
    %311 = tpu.reciprocal %310 {approx = true} : vector<2x1xf32> -> vector<2x1xf32>
    %312 = vector.broadcast %311 : vector<2x1xf32> to vector<2x8xf32>
    %313 = arith.mulf %308, %312 : vector<2x8xf32>
    %cst_85 = arith.constant dense<0.000000e+00> : vector<2x128xf32>
    %314 = tpu.matmul %293, %16, %cst_85 {dimension_numbers = #tpu.dot_dimension_numbers<[1], [0], [0], [1], [0, 0, 1, 1], [], []>} : vector<2x128xbf16>, vector<128x128xbf16>, vector<2x128xf32> -> vector<2x128xf32>
    %315 = vector.shape_cast %313 : vector<2x8xf32> to vector<2x8x1xf32>
    %316 = vector.broadcast %315 : vector<2x8x1xf32> to vector<2x8x128xf32>
    %317 = arith.mulf %316, %12 : vector<2x8x128xf32>
    %cst_86 = arith.constant dense<0.000000e+00> : vector<2x128xf32>
    %318 = vector.multi_reduction <add>, %317, %cst_86 [1] : vector<2x8x128xf32> to vector<2x128xf32>
    %319 = arith.addf %314, %318 : vector<2x128xf32>
    %320 = arith.addf %319, %294 : vector<2x128xf32>
    %321 = arith.addf %320, %21 : vector<2x128xf32>
    %322 = vector.extract_strided_slice %321 {offsets = [0, 0], sizes = [2, 32], strides = [1, 1]} : vector<2x128xf32> to vector<2x32xf32>
    %323 = arith.negf %322 : vector<2x32xf32>
    %324 = math.exp %323 : vector<2x32xf32>
    %cst_87 = arith.constant 1.000000e+00 : f32
    %325 = vector.broadcast %cst_87 : f32 to vector<2x32xf32>
    %326 = arith.addf %325, %324 : vector<2x32xf32>
    %327 = arith.divf %325, %326 : vector<2x32xf32>
    %328 = vector.extract_strided_slice %321 {offsets = [0, 32], sizes = [2, 32], strides = [1, 1]} : vector<2x128xf32> to vector<2x32xf32>
    %329 = arith.negf %328 : vector<2x32xf32>
    %330 = math.exp %329 : vector<2x32xf32>
    %cst_88 = arith.constant 1.000000e+00 : f32
    %331 = vector.broadcast %cst_88 : f32 to vector<2x32xf32>
    %332 = arith.addf %331, %330 : vector<2x32xf32>
    %333 = arith.divf %331, %332 : vector<2x32xf32>
    %334 = vector.extract_strided_slice %321 {offsets = [0, 64], sizes = [2, 32], strides = [1, 1]} : vector<2x128xf32> to vector<2x32xf32>
    %335 = math.tanh %334 : vector<2x32xf32>
    %336 = vector.extract_strided_slice %321 {offsets = [0, 96], sizes = [2, 32], strides = [1, 1]} : vector<2x128xf32> to vector<2x32xf32>
    %337 = arith.negf %336 : vector<2x32xf32>
    %338 = math.exp %337 : vector<2x32xf32>
    %cst_89 = arith.constant 1.000000e+00 : f32
    %339 = vector.broadcast %cst_89 : f32 to vector<2x32xf32>
    %340 = arith.addf %339, %338 : vector<2x32xf32>
    %341 = arith.divf %339, %340 : vector<2x32xf32>
    %342 = arith.mulf %333, %258 : vector<2x32xf32>
    %343 = arith.mulf %327, %335 : vector<2x32xf32>
    %344 = arith.addf %342, %343 : vector<2x32xf32>
    %345 = math.tanh %344 : vector<2x32xf32>
    %346 = arith.mulf %341, %345 : vector<2x32xf32>
    %347 = arith.truncf %346 : vector<2x32xf32> to vector<2x32xbf16>
    %cst_90 = arith.constant dense<0.000000e+00> : vector<2x288xf32>
    %348 = tpu.matmul %347, %17, %cst_90 {dimension_numbers = #tpu.dot_dimension_numbers<[1], [0], [0], [1], [0, 0, 1, 1], [], []>} : vector<2x32xbf16>, vector<32x288xbf16>, vector<2x288xf32> -> vector<2x288xf32>
    %349 = vector.extract_strided_slice %348 {offsets = [0, 0], sizes = [2, 128], strides = [1, 1]} : vector<2x288xf32> to vector<2x128xf32>
    %350 = arith.addf %349, %24 : vector<2x128xf32>
    %cst_91 = arith.constant dense<0xFF800000> : vector<2xf32>
    %351 = vector.multi_reduction <maximumf>, %350, %cst_91 [1] : vector<2x128xf32> to vector<2xf32>
    %352 = vector.shape_cast %351 : vector<2xf32> to vector<2x1xf32>
    %353 = vector.broadcast %352 : vector<2x1xf32> to vector<2x128xf32>
    %354 = arith.subf %350, %353 : vector<2x128xf32>
    %355 = math.exp %354 : vector<2x128xf32>
    %cst_92 = arith.constant dense<0.000000e+00> : vector<2xf32>
    %356 = vector.multi_reduction <add>, %355, %cst_92 [1] : vector<2x128xf32> to vector<2xf32>
    %357 = vector.shape_cast %356 : vector<2xf32> to vector<2x1xf32>
    %358 = math.log %357 : vector<2x1xf32>
    %359 = arith.addf %358, %352 : vector<2x1xf32>
    %360 = vector.broadcast %359 : vector<2x1xf32> to vector<2x128xf32>
    %361 = arith.subf %350, %360 : vector<2x128xf32>
    %c3 = arith.constant 3 : index
    %c0_93 = arith.constant 0 : index
    %c0_94 = arith.constant 0 : index
    %362 = vector.load %arg12[%c3, %c0_93, %c0_94] : memref<10x2x128xf32, #tpu.memory_space<vmem>>, vector<1x2x128xf32>
    %363 = vector.shape_cast %362 : vector<1x2x128xf32> to vector<2x128xf32>
    %364 = vector.shape_cast %361 : vector<2x128xf32> to vector<1x2x128xf32>
    tpu.vector_store %arg12[%c3, %c0_93, %c0_94], %364 {strides = array<i32>} : memref<10x2x128xf32, #tpu.memory_space<vmem>>, vector<1x2x128xf32>,
    %365 = tpu.concatenate %313, %33 in 1 : vector<2x8xf32>, vector<2x120xf32> -> vector<2x128xf32>
    %c3_95 = arith.constant 3 : index
    %c0_96 = arith.constant 0 : index
    %c0_97 = arith.constant 0 : index
    %366 = vector.load %arg13[%c3_95, %c0_96, %c0_97] : memref<10x2x128xf32, #tpu.memory_space<vmem>>, vector<1x2x128xf32>
    %367 = vector.shape_cast %366 : vector<1x2x128xf32> to vector<2x128xf32>
    %368 = vector.shape_cast %365 : vector<2x128xf32> to vector<1x2x128xf32>
    tpu.vector_store %arg13[%c3_95, %c0_96, %c0_97], %368 {strides = array<i32>} : memref<10x2x128xf32, #tpu.memory_space<vmem>>, vector<1x2x128xf32>,
    %369 = vector.broadcast %352 : vector<2x1xf32> to vector<2x128xf32>
    %370 = arith.cmpf oge, %350, %369 : vector<2x128xf32>
    %c128_i32_98 = arith.constant 128 : i32
    %371 = vector.broadcast %c128_i32_98 : i32 to vector<2x128xi32>
    %372 = arith.select %370, %27, %371 : vector<2x128xi1>, vector<2x128xi32>
    %cst_99 = arith.constant dense<2147483647> : vector<2xi32>
    %373 = vector.multi_reduction <minsi>, %372, %cst_99 [1] : vector<2x128xi32> to vector<2xi32>
    %374 = vector.shape_cast %373 : vector<2xi32> to vector<2x1xi32>
    %375 = vector.broadcast %374 : vector<2x1xi32> to vector<2x128xi32>
    %376 = arith.cmpi eq, %27, %375 : vector<2x128xi32>
    %377 = arith.extui %376 : vector<2x128xi1> to vector<2x128xi32>
    %378 = arith.sitofp %377 : vector<2x128xi32> to vector<2x128xf32>
    %379 = arith.truncf %378 : vector<2x128xf32> to vector<2x128xbf16>
    %380 = vector.extract_strided_slice %348 {offsets = [0, 128], sizes = [2, 128], strides = [1, 1]} : vector<2x288xf32> to vector<2x128xf32>
    %381 = vector.extract_strided_slice %348 {offsets = [0, 256], sizes = [2, 32], strides = [1, 1]} : vector<2x288xf32> to vector<2x32xf32>
    %382 = vector.shape_cast %381 : vector<2x32xf32> to vector<2x1x32xf32>
    %383 = vector.broadcast %382 : vector<2x1x32xf32> to vector<2x8x32xf32>
    %384 = arith.addf %383, %9 : vector<2x8x32xf32>
    %385 = math.tanh %384 : vector<2x8x32xf32>
    %386 = vector.shape_cast %18 : vector<1x32xf32> to vector<1x1x32xf32>
    %387 = vector.broadcast %386 : vector<1x1x32xf32> to vector<2x8x32xf32>
    %388 = arith.mulf %385, %387 : vector<2x8x32xf32>
    %cst_100 = arith.constant dense<0.000000e+00> : vector<2x8xf32>
    %389 = vector.multi_reduction <add>, %388, %cst_100 [2] : vector<2x8x32xf32> to vector<2x8xf32>
    %cst_101 = arith.constant dense<0xFF800000> : vector<2xf32>
    %390 = vector.multi_reduction <maximumf>, %389, %cst_101 [1] : vector<2x8xf32> to vector<2xf32>
    %391 = vector.shape_cast %390 : vector<2xf32> to vector<2x1xf32>
    %392 = vector.broadcast %391 : vector<2x1xf32> to vector<2x8xf32>
    %393 = arith.subf %389, %392 : vector<2x8xf32>
    %394 = math.exp %393 : vector<2x8xf32>
    %cst_102 = arith.constant dense<0.000000e+00> : vector<2xf32>
    %395 = vector.multi_reduction <add>, %394, %cst_102 [1] : vector<2x8xf32> to vector<2xf32>
    %396 = vector.shape_cast %395 : vector<2xf32> to vector<2x1xf32>
    %397 = tpu.reciprocal %396 {approx = true} : vector<2x1xf32> -> vector<2x1xf32>
    %398 = vector.broadcast %397 : vector<2x1xf32> to vector<2x8xf32>
    %399 = arith.mulf %394, %398 : vector<2x8xf32>
    %cst_103 = arith.constant dense<0.000000e+00> : vector<2x128xf32>
    %400 = tpu.matmul %379, %16, %cst_103 {dimension_numbers = #tpu.dot_dimension_numbers<[1], [0], [0], [1], [0, 0, 1, 1], [], []>} : vector<2x128xbf16>, vector<128x128xbf16>, vector<2x128xf32> -> vector<2x128xf32>
    %401 = vector.shape_cast %399 : vector<2x8xf32> to vector<2x8x1xf32>
    %402 = vector.broadcast %401 : vector<2x8x1xf32> to vector<2x8x128xf32>
    %403 = arith.mulf %402, %12 : vector<2x8x128xf32>
    %cst_104 = arith.constant dense<0.000000e+00> : vector<2x128xf32>
    %404 = vector.multi_reduction <add>, %403, %cst_104 [1] : vector<2x8x128xf32> to vector<2x128xf32>
    %405 = arith.addf %400, %404 : vector<2x128xf32>
    %406 = arith.addf %405, %380 : vector<2x128xf32>
    %407 = arith.addf %406, %21 : vector<2x128xf32>
    %408 = vector.extract_strided_slice %407 {offsets = [0, 0], sizes = [2, 32], strides = [1, 1]} : vector<2x128xf32> to vector<2x32xf32>
    %409 = arith.negf %408 : vector<2x32xf32>
    %410 = math.exp %409 : vector<2x32xf32>
    %cst_105 = arith.constant 1.000000e+00 : f32
    %411 = vector.broadcast %cst_105 : f32 to vector<2x32xf32>
    %412 = arith.addf %411, %410 : vector<2x32xf32>
    %413 = arith.divf %411, %412 : vector<2x32xf32>
    %414 = vector.extract_strided_slice %407 {offsets = [0, 32], sizes = [2, 32], strides = [1, 1]} : vector<2x128xf32> to vector<2x32xf32>
    %415 = arith.negf %414 : vector<2x32xf32>
    %416 = math.exp %415 : vector<2x32xf32>
    %cst_106 = arith.constant 1.000000e+00 : f32
    %417 = vector.broadcast %cst_106 : f32 to vector<2x32xf32>
    %418 = arith.addf %417, %416 : vector<2x32xf32>
    %419 = arith.divf %417, %418 : vector<2x32xf32>
    %420 = vector.extract_strided_slice %407 {offsets = [0, 64], sizes = [2, 32], strides = [1, 1]} : vector<2x128xf32> to vector<2x32xf32>
    %421 = math.tanh %420 : vector<2x32xf32>
    %422 = vector.extract_strided_slice %407 {offsets = [0, 96], sizes = [2, 32], strides = [1, 1]} : vector<2x128xf32> to vector<2x32xf32>
    %423 = arith.negf %422 : vector<2x32xf32>
    %424 = math.exp %423 : vector<2x32xf32>
    %cst_107 = arith.constant 1.000000e+00 : f32
    %425 = vector.broadcast %cst_107 : f32 to vector<2x32xf32>
    %426 = arith.addf %425, %424 : vector<2x32xf32>
    %427 = arith.divf %425, %426 : vector<2x32xf32>
    %428 = arith.mulf %419, %344 : vector<2x32xf32>
    %429 = arith.mulf %413, %421 : vector<2x32xf32>
    %430 = arith.addf %428, %429 : vector<2x32xf32>
    %431 = math.tanh %430 : vector<2x32xf32>
    %432 = arith.mulf %427, %431 : vector<2x32xf32>
    %433 = arith.truncf %432 : vector<2x32xf32> to vector<2x32xbf16>
    %cst_108 = arith.constant dense<0.000000e+00> : vector<2x288xf32>
    %434 = tpu.matmul %433, %17, %cst_108 {dimension_numbers = #tpu.dot_dimension_numbers<[1], [0], [0], [1], [0, 0, 1, 1], [], []>} : vector<2x32xbf16>, vector<32x288xbf16>, vector<2x288xf32> -> vector<2x288xf32>
    %435 = vector.extract_strided_slice %434 {offsets = [0, 0], sizes = [2, 128], strides = [1, 1]} : vector<2x288xf32> to vector<2x128xf32>
    %436 = arith.addf %435, %24 : vector<2x128xf32>
    %cst_109 = arith.constant dense<0xFF800000> : vector<2xf32>
    %437 = vector.multi_reduction <maximumf>, %436, %cst_109 [1] : vector<2x128xf32> to vector<2xf32>
    %438 = vector.shape_cast %437 : vector<2xf32> to vector<2x1xf32>
    %439 = vector.broadcast %438 : vector<2x1xf32> to vector<2x128xf32>
    %440 = arith.subf %436, %439 : vector<2x128xf32>
    %441 = math.exp %440 : vector<2x128xf32>
    %cst_110 = arith.constant dense<0.000000e+00> : vector<2xf32>
    %442 = vector.multi_reduction <add>, %441, %cst_110 [1] : vector<2x128xf32> to vector<2xf32>
    %443 = vector.shape_cast %442 : vector<2xf32> to vector<2x1xf32>
    %444 = math.log %443 : vector<2x1xf32>
    %445 = arith.addf %444, %438 : vector<2x1xf32>
    %446 = vector.broadcast %445 : vector<2x1xf32> to vector<2x128xf32>
    %447 = arith.subf %436, %446 : vector<2x128xf32>
    %c4 = arith.constant 4 : index
    %c0_111 = arith.constant 0 : index
    %c0_112 = arith.constant 0 : index
    %448 = vector.load %arg12[%c4, %c0_111, %c0_112] : memref<10x2x128xf32, #tpu.memory_space<vmem>>, vector<1x2x128xf32>
    %449 = vector.shape_cast %448 : vector<1x2x128xf32> to vector<2x128xf32>
    %450 = vector.shape_cast %447 : vector<2x128xf32> to vector<1x2x128xf32>
    tpu.vector_store %arg12[%c4, %c0_111, %c0_112], %450 {strides = array<i32>} : memref<10x2x128xf32, #tpu.memory_space<vmem>>, vector<1x2x128xf32>,
    %451 = tpu.concatenate %399, %33 in 1 : vector<2x8xf32>, vector<2x120xf32> -> vector<2x128xf32>
    %c4_113 = arith.constant 4 : index
    %c0_114 = arith.constant 0 : index
    %c0_115 = arith.constant 0 : index
    %452 = vector.load %arg13[%c4_113, %c0_114, %c0_115] : memref<10x2x128xf32, #tpu.memory_space<vmem>>, vector<1x2x128xf32>
    %453 = vector.shape_cast %452 : vector<1x2x128xf32> to vector<2x128xf32>
    %454 = vector.shape_cast %451 : vector<2x128xf32> to vector<1x2x128xf32>
    tpu.vector_store %arg13[%c4_113, %c0_114, %c0_115], %454 {strides = array<i32>} : memref<10x2x128xf32, #tpu.memory_space<vmem>>, vector<1x2x128xf32>,
    %455 = vector.broadcast %438 : vector<2x1xf32> to vector<2x128xf32>
    %456 = arith.cmpf oge, %436, %455 : vector<2x128xf32>
    %c128_i32_116 = arith.constant 128 : i32
    %457 = vector.broadcast %c128_i32_116 : i32 to vector<2x128xi32>
    %458 = arith.select %456, %27, %457 : vector<2x128xi1>, vector<2x128xi32>
    %cst_117 = arith.constant dense<2147483647> : vector<2xi32>
    %459 = vector.multi_reduction <minsi>, %458, %cst_117 [1] : vector<2x128xi32> to vector<2xi32>
    %460 = vector.shape_cast %459 : vector<2xi32> to vector<2x1xi32>
    %461 = vector.broadcast %460 : vector<2x1xi32> to vector<2x128xi32>
    %462 = arith.cmpi eq, %27, %461 : vector<2x128xi32>
    %463 = arith.extui %462 : vector<2x128xi1> to vector<2x128xi32>
    %464 = arith.sitofp %463 : vector<2x128xi32> to vector<2x128xf32>
    %465 = arith.truncf %464 : vector<2x128xf32> to vector<2x128xbf16>
    %466 = vector.extract_strided_slice %434 {offsets = [0, 128], sizes = [2, 128], strides = [1, 1]} : vector<2x288xf32> to vector<2x128xf32>
    %467 = vector.extract_strided_slice %434 {offsets = [0, 256], sizes = [2, 32], strides = [1, 1]} : vector<2x288xf32> to vector<2x32xf32>
    %468 = vector.shape_cast %467 : vector<2x32xf32> to vector<2x1x32xf32>
    %469 = vector.broadcast %468 : vector<2x1x32xf32> to vector<2x8x32xf32>
    %470 = arith.addf %469, %9 : vector<2x8x32xf32>
    %471 = math.tanh %470 : vector<2x8x32xf32>
    %472 = vector.shape_cast %18 : vector<1x32xf32> to vector<1x1x32xf32>
    %473 = vector.broadcast %472 : vector<1x1x32xf32> to vector<2x8x32xf32>
    %474 = arith.mulf %471, %473 : vector<2x8x32xf32>
    %cst_118 = arith.constant dense<0.000000e+00> : vector<2x8xf32>
    %475 = vector.multi_reduction <add>, %474, %cst_118 [2] : vector<2x8x32xf32> to vector<2x8xf32>
    %cst_119 = arith.constant dense<0xFF800000> : vector<2xf32>
    %476 = vector.multi_reduction <maximumf>, %475, %cst_119 [1] : vector<2x8xf32> to vector<2xf32>
    %477 = vector.shape_cast %476 : vector<2xf32> to vector<2x1xf32>
    %478 = vector.broadcast %477 : vector<2x1xf32> to vector<2x8xf32>
    %479 = arith.subf %475, %478 : vector<2x8xf32>
    %480 = math.exp %479 : vector<2x8xf32>
    %cst_120 = arith.constant dense<0.000000e+00> : vector<2xf32>
    %481 = vector.multi_reduction <add>, %480, %cst_120 [1] : vector<2x8xf32> to vector<2xf32>
    %482 = vector.shape_cast %481 : vector<2xf32> to vector<2x1xf32>
    %483 = tpu.reciprocal %482 {approx = true} : vector<2x1xf32> -> vector<2x1xf32>
    %484 = vector.broadcast %483 : vector<2x1xf32> to vector<2x8xf32>
    %485 = arith.mulf %480, %484 : vector<2x8xf32>
    %cst_121 = arith.constant dense<0.000000e+00> : vector<2x128xf32>
    %486 = tpu.matmul %465, %16, %cst_121 {dimension_numbers = #tpu.dot_dimension_numbers<[1], [0], [0], [1], [0, 0, 1, 1], [], []>} : vector<2x128xbf16>, vector<128x128xbf16>, vector<2x128xf32> -> vector<2x128xf32>
    %487 = vector.shape_cast %485 : vector<2x8xf32> to vector<2x8x1xf32>
    %488 = vector.broadcast %487 : vector<2x8x1xf32> to vector<2x8x128xf32>
    %489 = arith.mulf %488, %12 : vector<2x8x128xf32>
    %cst_122 = arith.constant dense<0.000000e+00> : vector<2x128xf32>
    %490 = vector.multi_reduction <add>, %489, %cst_122 [1] : vector<2x8x128xf32> to vector<2x128xf32>
    %491 = arith.addf %486, %490 : vector<2x128xf32>
    %492 = arith.addf %491, %466 : vector<2x128xf32>
    %493 = arith.addf %492, %21 : vector<2x128xf32>
    %494 = vector.extract_strided_slice %493 {offsets = [0, 0], sizes = [2, 32], strides = [1, 1]} : vector<2x128xf32> to vector<2x32xf32>
    %495 = arith.negf %494 : vector<2x32xf32>
    %496 = math.exp %495 : vector<2x32xf32>
    %cst_123 = arith.constant 1.000000e+00 : f32
    %497 = vector.broadcast %cst_123 : f32 to vector<2x32xf32>
    %498 = arith.addf %497, %496 : vector<2x32xf32>
    %499 = arith.divf %497, %498 : vector<2x32xf32>
    %500 = vector.extract_strided_slice %493 {offsets = [0, 32], sizes = [2, 32], strides = [1, 1]} : vector<2x128xf32> to vector<2x32xf32>
    %501 = arith.negf %500 : vector<2x32xf32>
    %502 = math.exp %501 : vector<2x32xf32>
    %cst_124 = arith.constant 1.000000e+00 : f32
    %503 = vector.broadcast %cst_124 : f32 to vector<2x32xf32>
    %504 = arith.addf %503, %502 : vector<2x32xf32>
    %505 = arith.divf %503, %504 : vector<2x32xf32>
    %506 = vector.extract_strided_slice %493 {offsets = [0, 64], sizes = [2, 32], strides = [1, 1]} : vector<2x128xf32> to vector<2x32xf32>
    %507 = math.tanh %506 : vector<2x32xf32>
    %508 = vector.extract_strided_slice %493 {offsets = [0, 96], sizes = [2, 32], strides = [1, 1]} : vector<2x128xf32> to vector<2x32xf32>
    %509 = arith.negf %508 : vector<2x32xf32>
    %510 = math.exp %509 : vector<2x32xf32>
    %cst_125 = arith.constant 1.000000e+00 : f32
    %511 = vector.broadcast %cst_125 : f32 to vector<2x32xf32>
    %512 = arith.addf %511, %510 : vector<2x32xf32>
    %513 = arith.divf %511, %512 : vector<2x32xf32>
    %514 = arith.mulf %505, %430 : vector<2x32xf32>
    %515 = arith.mulf %499, %507 : vector<2x32xf32>
    %516 = arith.addf %514, %515 : vector<2x32xf32>
    %517 = math.tanh %516 : vector<2x32xf32>
    %518 = arith.mulf %513, %517 : vector<2x32xf32>
    %519 = arith.truncf %518 : vector<2x32xf32> to vector<2x32xbf16>
    %cst_126 = arith.constant dense<0.000000e+00> : vector<2x288xf32>
    %520 = tpu.matmul %519, %17, %cst_126 {dimension_numbers = #tpu.dot_dimension_numbers<[1], [0], [0], [1], [0, 0, 1, 1], [], []>} : vector<2x32xbf16>, vector<32x288xbf16>, vector<2x288xf32> -> vector<2x288xf32>
    %521 = vector.extract_strided_slice %520 {offsets = [0, 0], sizes = [2, 128], strides = [1, 1]} : vector<2x288xf32> to vector<2x128xf32>
    %522 = arith.addf %521, %24 : vector<2x128xf32>
    %cst_127 = arith.constant dense<0xFF800000> : vector<2xf32>
    %523 = vector.multi_reduction <maximumf>, %522, %cst_127 [1] : vector<2x128xf32> to vector<2xf32>
    %524 = vector.shape_cast %523 : vector<2xf32> to vector<2x1xf32>
    %525 = vector.broadcast %524 : vector<2x1xf32> to vector<2x128xf32>
    %526 = arith.subf %522, %525 : vector<2x128xf32>
    %527 = math.exp %526 : vector<2x128xf32>
    %cst_128 = arith.constant dense<0.000000e+00> : vector<2xf32>
    %528 = vector.multi_reduction <add>, %527, %cst_128 [1] : vector<2x128xf32> to vector<2xf32>
    %529 = vector.shape_cast %528 : vector<2xf32> to vector<2x1xf32>
    %530 = math.log %529 : vector<2x1xf32>
    %531 = arith.addf %530, %524 : vector<2x1xf32>
    %532 = vector.broadcast %531 : vector<2x1xf32> to vector<2x128xf32>
    %533 = arith.subf %522, %532 : vector<2x128xf32>
    %c5 = arith.constant 5 : index
    %c0_129 = arith.constant 0 : index
    %c0_130 = arith.constant 0 : index
    %534 = vector.load %arg12[%c5, %c0_129, %c0_130] : memref<10x2x128xf32, #tpu.memory_space<vmem>>, vector<1x2x128xf32>
    %535 = vector.shape_cast %534 : vector<1x2x128xf32> to vector<2x128xf32>
    %536 = vector.shape_cast %533 : vector<2x128xf32> to vector<1x2x128xf32>
    tpu.vector_store %arg12[%c5, %c0_129, %c0_130], %536 {strides = array<i32>} : memref<10x2x128xf32, #tpu.memory_space<vmem>>, vector<1x2x128xf32>,
    %537 = tpu.concatenate %485, %33 in 1 : vector<2x8xf32>, vector<2x120xf32> -> vector<2x128xf32>
    %c5_131 = arith.constant 5 : index
    %c0_132 = arith.constant 0 : index
    %c0_133 = arith.constant 0 : index
    %538 = vector.load %arg13[%c5_131, %c0_132, %c0_133] : memref<10x2x128xf32, #tpu.memory_space<vmem>>, vector<1x2x128xf32>
    %539 = vector.shape_cast %538 : vector<1x2x128xf32> to vector<2x128xf32>
    %540 = vector.shape_cast %537 : vector<2x128xf32> to vector<1x2x128xf32>
    tpu.vector_store %arg13[%c5_131, %c0_132, %c0_133], %540 {strides = array<i32>} : memref<10x2x128xf32, #tpu.memory_space<vmem>>, vector<1x2x128xf32>,
    %541 = vector.broadcast %524 : vector<2x1xf32> to vector<2x128xf32>
    %542 = arith.cmpf oge, %522, %541 : vector<2x128xf32>
    %c128_i32_134 = arith.constant 128 : i32
    %543 = vector.broadcast %c128_i32_134 : i32 to vector<2x128xi32>
    %544 = arith.select %542, %27, %543 : vector<2x128xi1>, vector<2x128xi32>
    %cst_135 = arith.constant dense<2147483647> : vector<2xi32>
    %545 = vector.multi_reduction <minsi>, %544, %cst_135 [1] : vector<2x128xi32> to vector<2xi32>
    %546 = vector.shape_cast %545 : vector<2xi32> to vector<2x1xi32>
    %547 = vector.broadcast %546 : vector<2x1xi32> to vector<2x128xi32>
    %548 = arith.cmpi eq, %27, %547 : vector<2x128xi32>
    %549 = arith.extui %548 : vector<2x128xi1> to vector<2x128xi32>
    %550 = arith.sitofp %549 : vector<2x128xi32> to vector<2x128xf32>
    %551 = arith.truncf %550 : vector<2x128xf32> to vector<2x128xbf16>
    %552 = vector.extract_strided_slice %520 {offsets = [0, 128], sizes = [2, 128], strides = [1, 1]} : vector<2x288xf32> to vector<2x128xf32>
    %553 = vector.extract_strided_slice %520 {offsets = [0, 256], sizes = [2, 32], strides = [1, 1]} : vector<2x288xf32> to vector<2x32xf32>
    %554 = vector.shape_cast %553 : vector<2x32xf32> to vector<2x1x32xf32>
    %555 = vector.broadcast %554 : vector<2x1x32xf32> to vector<2x8x32xf32>
    %556 = arith.addf %555, %9 : vector<2x8x32xf32>
    %557 = math.tanh %556 : vector<2x8x32xf32>
    %558 = vector.shape_cast %18 : vector<1x32xf32> to vector<1x1x32xf32>
    %559 = vector.broadcast %558 : vector<1x1x32xf32> to vector<2x8x32xf32>
    %560 = arith.mulf %557, %559 : vector<2x8x32xf32>
    %cst_136 = arith.constant dense<0.000000e+00> : vector<2x8xf32>
    %561 = vector.multi_reduction <add>, %560, %cst_136 [2] : vector<2x8x32xf32> to vector<2x8xf32>
    %cst_137 = arith.constant dense<0xFF800000> : vector<2xf32>
    %562 = vector.multi_reduction <maximumf>, %561, %cst_137 [1] : vector<2x8xf32> to vector<2xf32>
    %563 = vector.shape_cast %562 : vector<2xf32> to vector<2x1xf32>
    %564 = vector.broadcast %563 : vector<2x1xf32> to vector<2x8xf32>
    %565 = arith.subf %561, %564 : vector<2x8xf32>
    %566 = math.exp %565 : vector<2x8xf32>
    %cst_138 = arith.constant dense<0.000000e+00> : vector<2xf32>
    %567 = vector.multi_reduction <add>, %566, %cst_138 [1] : vector<2x8xf32> to vector<2xf32>
    %568 = vector.shape_cast %567 : vector<2xf32> to vector<2x1xf32>
    %569 = tpu.reciprocal %568 {approx = true} : vector<2x1xf32> -> vector<2x1xf32>
    %570 = vector.broadcast %569 : vector<2x1xf32> to vector<2x8xf32>
    %571 = arith.mulf %566, %570 : vector<2x8xf32>
    %cst_139 = arith.constant dense<0.000000e+00> : vector<2x128xf32>
    %572 = tpu.matmul %551, %16, %cst_139 {dimension_numbers = #tpu.dot_dimension_numbers<[1], [0], [0], [1], [0, 0, 1, 1], [], []>} : vector<2x128xbf16>, vector<128x128xbf16>, vector<2x128xf32> -> vector<2x128xf32>
    %573 = vector.shape_cast %571 : vector<2x8xf32> to vector<2x8x1xf32>
    %574 = vector.broadcast %573 : vector<2x8x1xf32> to vector<2x8x128xf32>
    %575 = arith.mulf %574, %12 : vector<2x8x128xf32>
    %cst_140 = arith.constant dense<0.000000e+00> : vector<2x128xf32>
    %576 = vector.multi_reduction <add>, %575, %cst_140 [1] : vector<2x8x128xf32> to vector<2x128xf32>
    %577 = arith.addf %572, %576 : vector<2x128xf32>
    %578 = arith.addf %577, %552 : vector<2x128xf32>
    %579 = arith.addf %578, %21 : vector<2x128xf32>
    %580 = vector.extract_strided_slice %579 {offsets = [0, 0], sizes = [2, 32], strides = [1, 1]} : vector<2x128xf32> to vector<2x32xf32>
    %581 = arith.negf %580 : vector<2x32xf32>
    %582 = math.exp %581 : vector<2x32xf32>
    %cst_141 = arith.constant 1.000000e+00 : f32
    %583 = vector.broadcast %cst_141 : f32 to vector<2x32xf32>
    %584 = arith.addf %583, %582 : vector<2x32xf32>
    %585 = arith.divf %583, %584 : vector<2x32xf32>
    %586 = vector.extract_strided_slice %579 {offsets = [0, 32], sizes = [2, 32], strides = [1, 1]} : vector<2x128xf32> to vector<2x32xf32>
    %587 = arith.negf %586 : vector<2x32xf32>
    %588 = math.exp %587 : vector<2x32xf32>
    %cst_142 = arith.constant 1.000000e+00 : f32
    %589 = vector.broadcast %cst_142 : f32 to vector<2x32xf32>
    %590 = arith.addf %589, %588 : vector<2x32xf32>
    %591 = arith.divf %589, %590 : vector<2x32xf32>
    %592 = vector.extract_strided_slice %579 {offsets = [0, 64], sizes = [2, 32], strides = [1, 1]} : vector<2x128xf32> to vector<2x32xf32>
    %593 = math.tanh %592 : vector<2x32xf32>
    %594 = vector.extract_strided_slice %579 {offsets = [0, 96], sizes = [2, 32], strides = [1, 1]} : vector<2x128xf32> to vector<2x32xf32>
    %595 = arith.negf %594 : vector<2x32xf32>
    %596 = math.exp %595 : vector<2x32xf32>
    %cst_143 = arith.constant 1.000000e+00 : f32
    %597 = vector.broadcast %cst_143 : f32 to vector<2x32xf32>
    %598 = arith.addf %597, %596 : vector<2x32xf32>
    %599 = arith.divf %597, %598 : vector<2x32xf32>
    %600 = arith.mulf %591, %516 : vector<2x32xf32>
    %601 = arith.mulf %585, %593 : vector<2x32xf32>
    %602 = arith.addf %600, %601 : vector<2x32xf32>
    %603 = math.tanh %602 : vector<2x32xf32>
    %604 = arith.mulf %599, %603 : vector<2x32xf32>
    %605 = arith.truncf %604 : vector<2x32xf32> to vector<2x32xbf16>
    %cst_144 = arith.constant dense<0.000000e+00> : vector<2x288xf32>
    %606 = tpu.matmul %605, %17, %cst_144 {dimension_numbers = #tpu.dot_dimension_numbers<[1], [0], [0], [1], [0, 0, 1, 1], [], []>} : vector<2x32xbf16>, vector<32x288xbf16>, vector<2x288xf32> -> vector<2x288xf32>
    %607 = vector.extract_strided_slice %606 {offsets = [0, 0], sizes = [2, 128], strides = [1, 1]} : vector<2x288xf32> to vector<2x128xf32>
    %608 = arith.addf %607, %24 : vector<2x128xf32>
    %cst_145 = arith.constant dense<0xFF800000> : vector<2xf32>
    %609 = vector.multi_reduction <maximumf>, %608, %cst_145 [1] : vector<2x128xf32> to vector<2xf32>
    %610 = vector.shape_cast %609 : vector<2xf32> to vector<2x1xf32>
    %611 = vector.broadcast %610 : vector<2x1xf32> to vector<2x128xf32>
    %612 = arith.subf %608, %611 : vector<2x128xf32>
    %613 = math.exp %612 : vector<2x128xf32>
    %cst_146 = arith.constant dense<0.000000e+00> : vector<2xf32>
    %614 = vector.multi_reduction <add>, %613, %cst_146 [1] : vector<2x128xf32> to vector<2xf32>
    %615 = vector.shape_cast %614 : vector<2xf32> to vector<2x1xf32>
    %616 = math.log %615 : vector<2x1xf32>
    %617 = arith.addf %616, %610 : vector<2x1xf32>
    %618 = vector.broadcast %617 : vector<2x1xf32> to vector<2x128xf32>
    %619 = arith.subf %608, %618 : vector<2x128xf32>
    %c6 = arith.constant 6 : index
    %c0_147 = arith.constant 0 : index
    %c0_148 = arith.constant 0 : index
    %620 = vector.load %arg12[%c6, %c0_147, %c0_148] : memref<10x2x128xf32, #tpu.memory_space<vmem>>, vector<1x2x128xf32>
    %621 = vector.shape_cast %620 : vector<1x2x128xf32> to vector<2x128xf32>
    %622 = vector.shape_cast %619 : vector<2x128xf32> to vector<1x2x128xf32>
    tpu.vector_store %arg12[%c6, %c0_147, %c0_148], %622 {strides = array<i32>} : memref<10x2x128xf32, #tpu.memory_space<vmem>>, vector<1x2x128xf32>,
    %623 = tpu.concatenate %571, %33 in 1 : vector<2x8xf32>, vector<2x120xf32> -> vector<2x128xf32>
    %c6_149 = arith.constant 6 : index
    %c0_150 = arith.constant 0 : index
    %c0_151 = arith.constant 0 : index
    %624 = vector.load %arg13[%c6_149, %c0_150, %c0_151] : memref<10x2x128xf32, #tpu.memory_space<vmem>>, vector<1x2x128xf32>
    %625 = vector.shape_cast %624 : vector<1x2x128xf32> to vector<2x128xf32>
    %626 = vector.shape_cast %623 : vector<2x128xf32> to vector<1x2x128xf32>
    tpu.vector_store %arg13[%c6_149, %c0_150, %c0_151], %626 {strides = array<i32>} : memref<10x2x128xf32, #tpu.memory_space<vmem>>, vector<1x2x128xf32>,
    %627 = vector.broadcast %610 : vector<2x1xf32> to vector<2x128xf32>
    %628 = arith.cmpf oge, %608, %627 : vector<2x128xf32>
    %c128_i32_152 = arith.constant 128 : i32
    %629 = vector.broadcast %c128_i32_152 : i32 to vector<2x128xi32>
    %630 = arith.select %628, %27, %629 : vector<2x128xi1>, vector<2x128xi32>
    %cst_153 = arith.constant dense<2147483647> : vector<2xi32>
    %631 = vector.multi_reduction <minsi>, %630, %cst_153 [1] : vector<2x128xi32> to vector<2xi32>
    %632 = vector.shape_cast %631 : vector<2xi32> to vector<2x1xi32>
    %633 = vector.broadcast %632 : vector<2x1xi32> to vector<2x128xi32>
    %634 = arith.cmpi eq, %27, %633 : vector<2x128xi32>
    %635 = arith.extui %634 : vector<2x128xi1> to vector<2x128xi32>
    %636 = arith.sitofp %635 : vector<2x128xi32> to vector<2x128xf32>
    %637 = arith.truncf %636 : vector<2x128xf32> to vector<2x128xbf16>
    %638 = vector.extract_strided_slice %606 {offsets = [0, 128], sizes = [2, 128], strides = [1, 1]} : vector<2x288xf32> to vector<2x128xf32>
    %639 = vector.extract_strided_slice %606 {offsets = [0, 256], sizes = [2, 32], strides = [1, 1]} : vector<2x288xf32> to vector<2x32xf32>
    %640 = vector.shape_cast %639 : vector<2x32xf32> to vector<2x1x32xf32>
    %641 = vector.broadcast %640 : vector<2x1x32xf32> to vector<2x8x32xf32>
    %642 = arith.addf %641, %9 : vector<2x8x32xf32>
    %643 = math.tanh %642 : vector<2x8x32xf32>
    %644 = vector.shape_cast %18 : vector<1x32xf32> to vector<1x1x32xf32>
    %645 = vector.broadcast %644 : vector<1x1x32xf32> to vector<2x8x32xf32>
    %646 = arith.mulf %643, %645 : vector<2x8x32xf32>
    %cst_154 = arith.constant dense<0.000000e+00> : vector<2x8xf32>
    %647 = vector.multi_reduction <add>, %646, %cst_154 [2] : vector<2x8x32xf32> to vector<2x8xf32>
    %cst_155 = arith.constant dense<0xFF800000> : vector<2xf32>
    %648 = vector.multi_reduction <maximumf>, %647, %cst_155 [1] : vector<2x8xf32> to vector<2xf32>
    %649 = vector.shape_cast %648 : vector<2xf32> to vector<2x1xf32>
    %650 = vector.broadcast %649 : vector<2x1xf32> to vector<2x8xf32>
    %651 = arith.subf %647, %650 : vector<2x8xf32>
    %652 = math.exp %651 : vector<2x8xf32>
    %cst_156 = arith.constant dense<0.000000e+00> : vector<2xf32>
    %653 = vector.multi_reduction <add>, %652, %cst_156 [1] : vector<2x8xf32> to vector<2xf32>
    %654 = vector.shape_cast %653 : vector<2xf32> to vector<2x1xf32>
    %655 = tpu.reciprocal %654 {approx = true} : vector<2x1xf32> -> vector<2x1xf32>
    %656 = vector.broadcast %655 : vector<2x1xf32> to vector<2x8xf32>
    %657 = arith.mulf %652, %656 : vector<2x8xf32>
    %cst_157 = arith.constant dense<0.000000e+00> : vector<2x128xf32>
    %658 = tpu.matmul %637, %16, %cst_157 {dimension_numbers = #tpu.dot_dimension_numbers<[1], [0], [0], [1], [0, 0, 1, 1], [], []>} : vector<2x128xbf16>, vector<128x128xbf16>, vector<2x128xf32> -> vector<2x128xf32>
    %659 = vector.shape_cast %657 : vector<2x8xf32> to vector<2x8x1xf32>
    %660 = vector.broadcast %659 : vector<2x8x1xf32> to vector<2x8x128xf32>
    %661 = arith.mulf %660, %12 : vector<2x8x128xf32>
    %cst_158 = arith.constant dense<0.000000e+00> : vector<2x128xf32>
    %662 = vector.multi_reduction <add>, %661, %cst_158 [1] : vector<2x8x128xf32> to vector<2x128xf32>
    %663 = arith.addf %658, %662 : vector<2x128xf32>
    %664 = arith.addf %663, %638 : vector<2x128xf32>
    %665 = arith.addf %664, %21 : vector<2x128xf32>
    %666 = vector.extract_strided_slice %665 {offsets = [0, 0], sizes = [2, 32], strides = [1, 1]} : vector<2x128xf32> to vector<2x32xf32>
    %667 = arith.negf %666 : vector<2x32xf32>
    %668 = math.exp %667 : vector<2x32xf32>
    %cst_159 = arith.constant 1.000000e+00 : f32
    %669 = vector.broadcast %cst_159 : f32 to vector<2x32xf32>
    %670 = arith.addf %669, %668 : vector<2x32xf32>
    %671 = arith.divf %669, %670 : vector<2x32xf32>
    %672 = vector.extract_strided_slice %665 {offsets = [0, 32], sizes = [2, 32], strides = [1, 1]} : vector<2x128xf32> to vector<2x32xf32>
    %673 = arith.negf %672 : vector<2x32xf32>
    %674 = math.exp %673 : vector<2x32xf32>
    %cst_160 = arith.constant 1.000000e+00 : f32
    %675 = vector.broadcast %cst_160 : f32 to vector<2x32xf32>
    %676 = arith.addf %675, %674 : vector<2x32xf32>
    %677 = arith.divf %675, %676 : vector<2x32xf32>
    %678 = vector.extract_strided_slice %665 {offsets = [0, 64], sizes = [2, 32], strides = [1, 1]} : vector<2x128xf32> to vector<2x32xf32>
    %679 = math.tanh %678 : vector<2x32xf32>
    %680 = vector.extract_strided_slice %665 {offsets = [0, 96], sizes = [2, 32], strides = [1, 1]} : vector<2x128xf32> to vector<2x32xf32>
    %681 = arith.negf %680 : vector<2x32xf32>
    %682 = math.exp %681 : vector<2x32xf32>
    %cst_161 = arith.constant 1.000000e+00 : f32
    %683 = vector.broadcast %cst_161 : f32 to vector<2x32xf32>
    %684 = arith.addf %683, %682 : vector<2x32xf32>
    %685 = arith.divf %683, %684 : vector<2x32xf32>
    %686 = arith.mulf %677, %602 : vector<2x32xf32>
    %687 = arith.mulf %671, %679 : vector<2x32xf32>
    %688 = arith.addf %686, %687 : vector<2x32xf32>
    %689 = math.tanh %688 : vector<2x32xf32>
    %690 = arith.mulf %685, %689 : vector<2x32xf32>
    %691 = arith.truncf %690 : vector<2x32xf32> to vector<2x32xbf16>
    %cst_162 = arith.constant dense<0.000000e+00> : vector<2x288xf32>
    %692 = tpu.matmul %691, %17, %cst_162 {dimension_numbers = #tpu.dot_dimension_numbers<[1], [0], [0], [1], [0, 0, 1, 1], [], []>} : vector<2x32xbf16>, vector<32x288xbf16>, vector<2x288xf32> -> vector<2x288xf32>
    %693 = vector.extract_strided_slice %692 {offsets = [0, 0], sizes = [2, 128], strides = [1, 1]} : vector<2x288xf32> to vector<2x128xf32>
    %694 = arith.addf %693, %24 : vector<2x128xf32>
    %cst_163 = arith.constant dense<0xFF800000> : vector<2xf32>
    %695 = vector.multi_reduction <maximumf>, %694, %cst_163 [1] : vector<2x128xf32> to vector<2xf32>
    %696 = vector.shape_cast %695 : vector<2xf32> to vector<2x1xf32>
    %697 = vector.broadcast %696 : vector<2x1xf32> to vector<2x128xf32>
    %698 = arith.subf %694, %697 : vector<2x128xf32>
    %699 = math.exp %698 : vector<2x128xf32>
    %cst_164 = arith.constant dense<0.000000e+00> : vector<2xf32>
    %700 = vector.multi_reduction <add>, %699, %cst_164 [1] : vector<2x128xf32> to vector<2xf32>
    %701 = vector.shape_cast %700 : vector<2xf32> to vector<2x1xf32>
    %702 = math.log %701 : vector<2x1xf32>
    %703 = arith.addf %702, %696 : vector<2x1xf32>
    %704 = vector.broadcast %703 : vector<2x1xf32> to vector<2x128xf32>
    %705 = arith.subf %694, %704 : vector<2x128xf32>
    %c7 = arith.constant 7 : index
    %c0_165 = arith.constant 0 : index
    %c0_166 = arith.constant 0 : index
    %706 = vector.load %arg12[%c7, %c0_165, %c0_166] : memref<10x2x128xf32, #tpu.memory_space<vmem>>, vector<1x2x128xf32>
    %707 = vector.shape_cast %706 : vector<1x2x128xf32> to vector<2x128xf32>
    %708 = vector.shape_cast %705 : vector<2x128xf32> to vector<1x2x128xf32>
    tpu.vector_store %arg12[%c7, %c0_165, %c0_166], %708 {strides = array<i32>} : memref<10x2x128xf32, #tpu.memory_space<vmem>>, vector<1x2x128xf32>,
    %709 = tpu.concatenate %657, %33 in 1 : vector<2x8xf32>, vector<2x120xf32> -> vector<2x128xf32>
    %c7_167 = arith.constant 7 : index
    %c0_168 = arith.constant 0 : index
    %c0_169 = arith.constant 0 : index
    %710 = vector.load %arg13[%c7_167, %c0_168, %c0_169] : memref<10x2x128xf32, #tpu.memory_space<vmem>>, vector<1x2x128xf32>
    %711 = vector.shape_cast %710 : vector<1x2x128xf32> to vector<2x128xf32>
    %712 = vector.shape_cast %709 : vector<2x128xf32> to vector<1x2x128xf32>
    tpu.vector_store %arg13[%c7_167, %c0_168, %c0_169], %712 {strides = array<i32>} : memref<10x2x128xf32, #tpu.memory_space<vmem>>, vector<1x2x128xf32>,
    %713 = vector.broadcast %696 : vector<2x1xf32> to vector<2x128xf32>
    %714 = arith.cmpf oge, %694, %713 : vector<2x128xf32>
    %c128_i32_170 = arith.constant 128 : i32
    %715 = vector.broadcast %c128_i32_170 : i32 to vector<2x128xi32>
    %716 = arith.select %714, %27, %715 : vector<2x128xi1>, vector<2x128xi32>
    %cst_171 = arith.constant dense<2147483647> : vector<2xi32>
    %717 = vector.multi_reduction <minsi>, %716, %cst_171 [1] : vector<2x128xi32> to vector<2xi32>
    %718 = vector.shape_cast %717 : vector<2xi32> to vector<2x1xi32>
    %719 = vector.broadcast %718 : vector<2x1xi32> to vector<2x128xi32>
    %720 = arith.cmpi eq, %27, %719 : vector<2x128xi32>
    %721 = arith.extui %720 : vector<2x128xi1> to vector<2x128xi32>
    %722 = arith.sitofp %721 : vector<2x128xi32> to vector<2x128xf32>
    %723 = arith.truncf %722 : vector<2x128xf32> to vector<2x128xbf16>
    %724 = vector.extract_strided_slice %692 {offsets = [0, 128], sizes = [2, 128], strides = [1, 1]} : vector<2x288xf32> to vector<2x128xf32>
    %725 = vector.extract_strided_slice %692 {offsets = [0, 256], sizes = [2, 32], strides = [1, 1]} : vector<2x288xf32> to vector<2x32xf32>
    %726 = vector.shape_cast %725 : vector<2x32xf32> to vector<2x1x32xf32>
    %727 = vector.broadcast %726 : vector<2x1x32xf32> to vector<2x8x32xf32>
    %728 = arith.addf %727, %9 : vector<2x8x32xf32>
    %729 = math.tanh %728 : vector<2x8x32xf32>
    %730 = vector.shape_cast %18 : vector<1x32xf32> to vector<1x1x32xf32>
    %731 = vector.broadcast %730 : vector<1x1x32xf32> to vector<2x8x32xf32>
    %732 = arith.mulf %729, %731 : vector<2x8x32xf32>
    %cst_172 = arith.constant dense<0.000000e+00> : vector<2x8xf32>
    %733 = vector.multi_reduction <add>, %732, %cst_172 [2] : vector<2x8x32xf32> to vector<2x8xf32>
    %cst_173 = arith.constant dense<0xFF800000> : vector<2xf32>
    %734 = vector.multi_reduction <maximumf>, %733, %cst_173 [1] : vector<2x8xf32> to vector<2xf32>
    %735 = vector.shape_cast %734 : vector<2xf32> to vector<2x1xf32>
    %736 = vector.broadcast %735 : vector<2x1xf32> to vector<2x8xf32>
    %737 = arith.subf %733, %736 : vector<2x8xf32>
    %738 = math.exp %737 : vector<2x8xf32>
    %cst_174 = arith.constant dense<0.000000e+00> : vector<2xf32>
    %739 = vector.multi_reduction <add>, %738, %cst_174 [1] : vector<2x8xf32> to vector<2xf32>
    %740 = vector.shape_cast %739 : vector<2xf32> to vector<2x1xf32>
    %741 = tpu.reciprocal %740 {approx = true} : vector<2x1xf32> -> vector<2x1xf32>
    %742 = vector.broadcast %741 : vector<2x1xf32> to vector<2x8xf32>
    %743 = arith.mulf %738, %742 : vector<2x8xf32>
    %cst_175 = arith.constant dense<0.000000e+00> : vector<2x128xf32>
    %744 = tpu.matmul %723, %16, %cst_175 {dimension_numbers = #tpu.dot_dimension_numbers<[1], [0], [0], [1], [0, 0, 1, 1], [], []>} : vector<2x128xbf16>, vector<128x128xbf16>, vector<2x128xf32> -> vector<2x128xf32>
    %745 = vector.shape_cast %743 : vector<2x8xf32> to vector<2x8x1xf32>
    %746 = vector.broadcast %745 : vector<2x8x1xf32> to vector<2x8x128xf32>
    %747 = arith.mulf %746, %12 : vector<2x8x128xf32>
    %cst_176 = arith.constant dense<0.000000e+00> : vector<2x128xf32>
    %748 = vector.multi_reduction <add>, %747, %cst_176 [1] : vector<2x8x128xf32> to vector<2x128xf32>
    %749 = arith.addf %744, %748 : vector<2x128xf32>
    %750 = arith.addf %749, %724 : vector<2x128xf32>
    %751 = arith.addf %750, %21 : vector<2x128xf32>
    %752 = vector.extract_strided_slice %751 {offsets = [0, 0], sizes = [2, 32], strides = [1, 1]} : vector<2x128xf32> to vector<2x32xf32>
    %753 = arith.negf %752 : vector<2x32xf32>
    %754 = math.exp %753 : vector<2x32xf32>
    %cst_177 = arith.constant 1.000000e+00 : f32
    %755 = vector.broadcast %cst_177 : f32 to vector<2x32xf32>
    %756 = arith.addf %755, %754 : vector<2x32xf32>
    %757 = arith.divf %755, %756 : vector<2x32xf32>
    %758 = vector.extract_strided_slice %751 {offsets = [0, 32], sizes = [2, 32], strides = [1, 1]} : vector<2x128xf32> to vector<2x32xf32>
    %759 = arith.negf %758 : vector<2x32xf32>
    %760 = math.exp %759 : vector<2x32xf32>
    %cst_178 = arith.constant 1.000000e+00 : f32
    %761 = vector.broadcast %cst_178 : f32 to vector<2x32xf32>
    %762 = arith.addf %761, %760 : vector<2x32xf32>
    %763 = arith.divf %761, %762 : vector<2x32xf32>
    %764 = vector.extract_strided_slice %751 {offsets = [0, 64], sizes = [2, 32], strides = [1, 1]} : vector<2x128xf32> to vector<2x32xf32>
    %765 = math.tanh %764 : vector<2x32xf32>
    %766 = vector.extract_strided_slice %751 {offsets = [0, 96], sizes = [2, 32], strides = [1, 1]} : vector<2x128xf32> to vector<2x32xf32>
    %767 = arith.negf %766 : vector<2x32xf32>
    %768 = math.exp %767 : vector<2x32xf32>
    %cst_179 = arith.constant 1.000000e+00 : f32
    %769 = vector.broadcast %cst_179 : f32 to vector<2x32xf32>
    %770 = arith.addf %769, %768 : vector<2x32xf32>
    %771 = arith.divf %769, %770 : vector<2x32xf32>
    %772 = arith.mulf %763, %688 : vector<2x32xf32>
    %773 = arith.mulf %757, %765 : vector<2x32xf32>
    %774 = arith.addf %772, %773 : vector<2x32xf32>
    %775 = math.tanh %774 : vector<2x32xf32>
    %776 = arith.mulf %771, %775 : vector<2x32xf32>
    %777 = arith.truncf %776 : vector<2x32xf32> to vector<2x32xbf16>
    %cst_180 = arith.constant dense<0.000000e+00> : vector<2x288xf32>
    %778 = tpu.matmul %777, %17, %cst_180 {dimension_numbers = #tpu.dot_dimension_numbers<[1], [0], [0], [1], [0, 0, 1, 1], [], []>} : vector<2x32xbf16>, vector<32x288xbf16>, vector<2x288xf32> -> vector<2x288xf32>
    %779 = vector.extract_strided_slice %778 {offsets = [0, 0], sizes = [2, 128], strides = [1, 1]} : vector<2x288xf32> to vector<2x128xf32>
    %780 = arith.addf %779, %24 : vector<2x128xf32>
    %cst_181 = arith.constant dense<0xFF800000> : vector<2xf32>
    %781 = vector.multi_reduction <maximumf>, %780, %cst_181 [1] : vector<2x128xf32> to vector<2xf32>
    %782 = vector.shape_cast %781 : vector<2xf32> to vector<2x1xf32>
    %783 = vector.broadcast %782 : vector<2x1xf32> to vector<2x128xf32>
    %784 = arith.subf %780, %783 : vector<2x128xf32>
    %785 = math.exp %784 : vector<2x128xf32>
    %cst_182 = arith.constant dense<0.000000e+00> : vector<2xf32>
    %786 = vector.multi_reduction <add>, %785, %cst_182 [1] : vector<2x128xf32> to vector<2xf32>
    %787 = vector.shape_cast %786 : vector<2xf32> to vector<2x1xf32>
    %788 = math.log %787 : vector<2x1xf32>
    %789 = arith.addf %788, %782 : vector<2x1xf32>
    %790 = vector.broadcast %789 : vector<2x1xf32> to vector<2x128xf32>
    %791 = arith.subf %780, %790 : vector<2x128xf32>
    %c8 = arith.constant 8 : index
    %c0_183 = arith.constant 0 : index
    %c0_184 = arith.constant 0 : index
    %792 = vector.load %arg12[%c8, %c0_183, %c0_184] : memref<10x2x128xf32, #tpu.memory_space<vmem>>, vector<1x2x128xf32>
    %793 = vector.shape_cast %792 : vector<1x2x128xf32> to vector<2x128xf32>
    %794 = vector.shape_cast %791 : vector<2x128xf32> to vector<1x2x128xf32>
    tpu.vector_store %arg12[%c8, %c0_183, %c0_184], %794 {strides = array<i32>} : memref<10x2x128xf32, #tpu.memory_space<vmem>>, vector<1x2x128xf32>,
    %795 = tpu.concatenate %743, %33 in 1 : vector<2x8xf32>, vector<2x120xf32> -> vector<2x128xf32>
    %c8_185 = arith.constant 8 : index
    %c0_186 = arith.constant 0 : index
    %c0_187 = arith.constant 0 : index
    %796 = vector.load %arg13[%c8_185, %c0_186, %c0_187] : memref<10x2x128xf32, #tpu.memory_space<vmem>>, vector<1x2x128xf32>
    %797 = vector.shape_cast %796 : vector<1x2x128xf32> to vector<2x128xf32>
    %798 = vector.shape_cast %795 : vector<2x128xf32> to vector<1x2x128xf32>
    tpu.vector_store %arg13[%c8_185, %c0_186, %c0_187], %798 {strides = array<i32>} : memref<10x2x128xf32, #tpu.memory_space<vmem>>, vector<1x2x128xf32>,
    %799 = vector.broadcast %782 : vector<2x1xf32> to vector<2x128xf32>
    %800 = arith.cmpf oge, %780, %799 : vector<2x128xf32>
    %c128_i32_188 = arith.constant 128 : i32
    %801 = vector.broadcast %c128_i32_188 : i32 to vector<2x128xi32>
    %802 = arith.select %800, %27, %801 : vector<2x128xi1>, vector<2x128xi32>
    %cst_189 = arith.constant dense<2147483647> : vector<2xi32>
    %803 = vector.multi_reduction <minsi>, %802, %cst_189 [1] : vector<2x128xi32> to vector<2xi32>
    %804 = vector.shape_cast %803 : vector<2xi32> to vector<2x1xi32>
    %805 = vector.broadcast %804 : vector<2x1xi32> to vector<2x128xi32>
    %806 = arith.cmpi eq, %27, %805 : vector<2x128xi32>
    %807 = arith.extui %806 : vector<2x128xi1> to vector<2x128xi32>
    %808 = arith.sitofp %807 : vector<2x128xi32> to vector<2x128xf32>
    %809 = arith.truncf %808 : vector<2x128xf32> to vector<2x128xbf16>
    %810 = vector.extract_strided_slice %778 {offsets = [0, 128], sizes = [2, 128], strides = [1, 1]} : vector<2x288xf32> to vector<2x128xf32>
    %811 = vector.extract_strided_slice %778 {offsets = [0, 256], sizes = [2, 32], strides = [1, 1]} : vector<2x288xf32> to vector<2x32xf32>
    %812 = vector.shape_cast %811 : vector<2x32xf32> to vector<2x1x32xf32>
    %813 = vector.broadcast %812 : vector<2x1x32xf32> to vector<2x8x32xf32>
    %814 = arith.addf %813, %9 : vector<2x8x32xf32>
    %815 = math.tanh %814 : vector<2x8x32xf32>
    %816 = vector.shape_cast %18 : vector<1x32xf32> to vector<1x1x32xf32>
    %817 = vector.broadcast %816 : vector<1x1x32xf32> to vector<2x8x32xf32>
    %818 = arith.mulf %815, %817 : vector<2x8x32xf32>
    %cst_190 = arith.constant dense<0.000000e+00> : vector<2x8xf32>
    %819 = vector.multi_reduction <add>, %818, %cst_190 [2] : vector<2x8x32xf32> to vector<2x8xf32>
    %cst_191 = arith.constant dense<0xFF800000> : vector<2xf32>
    %820 = vector.multi_reduction <maximumf>, %819, %cst_191 [1] : vector<2x8xf32> to vector<2xf32>
    %821 = vector.shape_cast %820 : vector<2xf32> to vector<2x1xf32>
    %822 = vector.broadcast %821 : vector<2x1xf32> to vector<2x8xf32>
    %823 = arith.subf %819, %822 : vector<2x8xf32>
    %824 = math.exp %823 : vector<2x8xf32>
    %cst_192 = arith.constant dense<0.000000e+00> : vector<2xf32>
    %825 = vector.multi_reduction <add>, %824, %cst_192 [1] : vector<2x8xf32> to vector<2xf32>
    %826 = vector.shape_cast %825 : vector<2xf32> to vector<2x1xf32>
    %827 = tpu.reciprocal %826 {approx = true} : vector<2x1xf32> -> vector<2x1xf32>
    %828 = vector.broadcast %827 : vector<2x1xf32> to vector<2x8xf32>
    %829 = arith.mulf %824, %828 : vector<2x8xf32>
    %cst_193 = arith.constant dense<0.000000e+00> : vector<2x128xf32>
    %830 = tpu.matmul %809, %16, %cst_193 {dimension_numbers = #tpu.dot_dimension_numbers<[1], [0], [0], [1], [0, 0, 1, 1], [], []>} : vector<2x128xbf16>, vector<128x128xbf16>, vector<2x128xf32> -> vector<2x128xf32>
    %831 = vector.shape_cast %829 : vector<2x8xf32> to vector<2x8x1xf32>
    %832 = vector.broadcast %831 : vector<2x8x1xf32> to vector<2x8x128xf32>
    %833 = arith.mulf %832, %12 : vector<2x8x128xf32>
    %cst_194 = arith.constant dense<0.000000e+00> : vector<2x128xf32>
    %834 = vector.multi_reduction <add>, %833, %cst_194 [1] : vector<2x8x128xf32> to vector<2x128xf32>
    %835 = arith.addf %830, %834 : vector<2x128xf32>
    %836 = arith.addf %835, %810 : vector<2x128xf32>
    %837 = arith.addf %836, %21 : vector<2x128xf32>
    %838 = vector.extract_strided_slice %837 {offsets = [0, 0], sizes = [2, 32], strides = [1, 1]} : vector<2x128xf32> to vector<2x32xf32>
    %839 = arith.negf %838 : vector<2x32xf32>
    %840 = math.exp %839 : vector<2x32xf32>
    %cst_195 = arith.constant 1.000000e+00 : f32
    %841 = vector.broadcast %cst_195 : f32 to vector<2x32xf32>
    %842 = arith.addf %841, %840 : vector<2x32xf32>
    %843 = arith.divf %841, %842 : vector<2x32xf32>
    %844 = vector.extract_strided_slice %837 {offsets = [0, 32], sizes = [2, 32], strides = [1, 1]} : vector<2x128xf32> to vector<2x32xf32>
    %845 = arith.negf %844 : vector<2x32xf32>
    %846 = math.exp %845 : vector<2x32xf32>
    %cst_196 = arith.constant 1.000000e+00 : f32
    %847 = vector.broadcast %cst_196 : f32 to vector<2x32xf32>
    %848 = arith.addf %847, %846 : vector<2x32xf32>
    %849 = arith.divf %847, %848 : vector<2x32xf32>
    %850 = vector.extract_strided_slice %837 {offsets = [0, 64], sizes = [2, 32], strides = [1, 1]} : vector<2x128xf32> to vector<2x32xf32>
    %851 = math.tanh %850 : vector<2x32xf32>
    %852 = vector.extract_strided_slice %837 {offsets = [0, 96], sizes = [2, 32], strides = [1, 1]} : vector<2x128xf32> to vector<2x32xf32>
    %853 = arith.negf %852 : vector<2x32xf32>
    %854 = math.exp %853 : vector<2x32xf32>
    %cst_197 = arith.constant 1.000000e+00 : f32
    %855 = vector.broadcast %cst_197 : f32 to vector<2x32xf32>
    %856 = arith.addf %855, %854 : vector<2x32xf32>
    %857 = arith.divf %855, %856 : vector<2x32xf32>
    %858 = arith.mulf %849, %774 : vector<2x32xf32>
    %859 = arith.mulf %843, %851 : vector<2x32xf32>
    %860 = arith.addf %858, %859 : vector<2x32xf32>
    %861 = math.tanh %860 : vector<2x32xf32>
    %862 = arith.mulf %857, %861 : vector<2x32xf32>
    %863 = arith.truncf %862 : vector<2x32xf32> to vector<2x32xbf16>
    %cst_198 = arith.constant dense<0.000000e+00> : vector<2x288xf32>
    %864 = tpu.matmul %863, %17, %cst_198 {dimension_numbers = #tpu.dot_dimension_numbers<[1], [0], [0], [1], [0, 0, 1, 1], [], []>} : vector<2x32xbf16>, vector<32x288xbf16>, vector<2x288xf32> -> vector<2x288xf32>
    %865 = vector.extract_strided_slice %864 {offsets = [0, 0], sizes = [2, 128], strides = [1, 1]} : vector<2x288xf32> to vector<2x128xf32>
    %866 = arith.addf %865, %24 : vector<2x128xf32>
    %cst_199 = arith.constant dense<0xFF800000> : vector<2xf32>
    %867 = vector.multi_reduction <maximumf>, %866, %cst_199 [1] : vector<2x128xf32> to vector<2xf32>
    %868 = vector.shape_cast %867 : vector<2xf32> to vector<2x1xf32>
    %869 = vector.broadcast %868 : vector<2x1xf32> to vector<2x128xf32>
    %870 = arith.subf %866, %869 : vector<2x128xf32>
    %871 = math.exp %870 : vector<2x128xf32>
    %cst_200 = arith.constant dense<0.000000e+00> : vector<2xf32>
    %872 = vector.multi_reduction <add>, %871, %cst_200 [1] : vector<2x128xf32> to vector<2xf32>
    %873 = vector.shape_cast %872 : vector<2xf32> to vector<2x1xf32>
    %874 = math.log %873 : vector<2x1xf32>
    %875 = arith.addf %874, %868 : vector<2x1xf32>
    %876 = vector.broadcast %875 : vector<2x1xf32> to vector<2x128xf32>
    %877 = arith.subf %866, %876 : vector<2x128xf32>
    %c9 = arith.constant 9 : index
    %c0_201 = arith.constant 0 : index
    %c0_202 = arith.constant 0 : index
    %878 = vector.load %arg12[%c9, %c0_201, %c0_202] : memref<10x2x128xf32, #tpu.memory_space<vmem>>, vector<1x2x128xf32>
    %879 = vector.shape_cast %878 : vector<1x2x128xf32> to vector<2x128xf32>
    %880 = vector.shape_cast %877 : vector<2x128xf32> to vector<1x2x128xf32>
    tpu.vector_store %arg12[%c9, %c0_201, %c0_202], %880 {strides = array<i32>} : memref<10x2x128xf32, #tpu.memory_space<vmem>>, vector<1x2x128xf32>,
    %881 = tpu.concatenate %829, %33 in 1 : vector<2x8xf32>, vector<2x120xf32> -> vector<2x128xf32>
    %c9_203 = arith.constant 9 : index
    %c0_204 = arith.constant 0 : index
    %c0_205 = arith.constant 0 : index
    %882 = vector.load %arg13[%c9_203, %c0_204, %c0_205] : memref<10x2x128xf32, #tpu.memory_space<vmem>>, vector<1x2x128xf32>
    %883 = vector.shape_cast %882 : vector<1x2x128xf32> to vector<2x128xf32>
    %884 = vector.shape_cast %881 : vector<2x128xf32> to vector<1x2x128xf32>
    tpu.vector_store %arg13[%c9_203, %c0_204, %c0_205], %884 {strides = array<i32>} : memref<10x2x128xf32, #tpu.memory_space<vmem>>, vector<1x2x128xf32>,
    %c0_206 = arith.constant 0 : index
    %c0_207 = arith.constant 0 : index
    %885 = vector.load %arg14[%c0_206, %c0_207] : memref<2x32xf32, #tpu.memory_space<vmem>>, vector<2x32xf32>
    tpu.vector_store %arg14[%c0_206, %c0_207], %862 {strides = array<i32>} : memref<2x32xf32, #tpu.memory_space<vmem>>, vector<2x32xf32>,
    %c0_208 = arith.constant 0 : index
    %c0_209 = arith.constant 0 : index
    %886 = vector.load %arg15[%c0_208, %c0_209] : memref<2x32xf32, #tpu.memory_space<vmem>>, vector<2x32xf32>
    tpu.vector_store %arg15[%c0_208, %c0_209], %860 {strides = array<i32>} : memref<2x32xf32, #tpu.memory_space<vmem>>, vector<2x32xf32>,
    return
  }
}

</mosaic_0001>

<bundles_post_ra>
// kernel: attn_decoder_forward.1
= control target key start
LH: loop header
LB: loop body
LE: loop exit
PB: predicated region body
PF: predicated region fallthrough
CT: control target
= control target key end

     0   :  { %21 = vsyncpa [#allocation3], 0  ;;  %v6239_v2 = vmov 0   ;;  %v4883_v5 = vmov 0.0   ;;  %vm4884_vm0 = vmmov 0   ;;  %vm73_vm1 = vcmask 261120   ;;  %s6223_s0 = inlined_call_operand.vmem [shape: f32[2,8,32], index: 0, kind: input, shape index: {}]   ;;  %s6224_s1 = inlined_call_operand.vmem [shape: f32[2,32], index: 1, kind: input, shape index: {}]   ;;  %s6225_s2 = inlined_call_operand.vmem [shape: f32[2,32], index: 2, kind: input, shape index: {}]   ;;  %s6226_s3 = inlined_call_operand.vmem [shape: bf16[128,32], index: 3, kind: input, shape index: {}]   ;;  %s6227_s4 = inlined_call_operand.vmem [shape: bf16[32,32], index: 4, kind: input, shape index: {}]   ;;  %s6228_s5 = inlined_call_operand.vmem [shape: f32[1,32], index: 5, kind: input, shape index: {}]   ;;  %s6229_s6 = inlined_call_operand.vmem [shape: f32[1,32], index: 6, kind: input, shape index: {}]   ;;  %s6230_s7 = inlined_call_operand.vmem [shape: bf16[32,128], index: 7, kind: input, shape index: {}]   ;;  %s6231_s8 = inlined_call_operand.vmem [shape: bf16[32,128], index: 8, kind: input, shape index: {}]   ;;  %s6232_s9 = inlined_call_operand.vmem [shape: bf16[32,288], index: 9, kind: input, shape index: {}]   ;;  %s6233_s10 = inlined_call_operand.vmem [shape: f32[1,128], index: 10, kind: input, shape index: {}]   ;;  %s6234_s11 = inlined_call_operand.vmem [shape: f32[1,128], index: 11, kind: input, shape index: {}]   ;;  %s6235_s12 = inlined_call_operand.hbm [shape: f32[10,2,128], index: 12, kind: output, shape index: {0}]   ;;  %s6236_s13 = inlined_call_operand.vmem [shape: f32[10,2,128], index: 13, kind: output, shape index: {1}]   ;;  %s6237_s14 = inlined_call_operand.hbm [shape: f32[2,32], index: 14, kind: output, shape index: {2}]   ;;  %s6238_s15 = inlined_call_operand.hbm [shape: f32[2,32], index: 15, kind: output, shape index: {3}]  }
   0x1   :  { %v4977_v0 = vld [vmem:[%s6232_s9 + $0x4] ss:$12 sps:$4 sm:$0xff]   ;;  %v4982_v1 = vld [vmem:[%s6232_s9] ss:$12 sps:$4 sm:$0xff]   ;;  %484 = vmatprep.mubr.bf16.mxu1 %v6239_v2  ;;  %4551 = vset.pattern.permute.xlu0 %v6239_v2  ;;  %v4990_v3 = vld [vmem:[%s6232_s9 + $0x1c] ss:$12 sps:$4 sm:$0xff]  }
   0x2   :  { %452 = vmatprep.subr.bf16.mxu1 %v4977_v0  ;;  %v4995_v4 = vld [vmem:[%s6232_s9 + $0x18] ss:$12 sps:$4 sm:$0xff]   ;;  %4222 = vmatprep.subr.bf16.mxu0 %v4883_v5  ;;  %v408_v6 = vld [vmem:[%s6224_s1] sm:$0x3]  ;;  %v5012_v8 = vld [vmem:[%s6232_s9 + $0x8] ss:$12 sps:$4 sm:$0xff]  }
   0x3   :  { %453 = vmatpush1.bf16.msra.mxu1 %v4982_v1  ;;  %4226 = vmatprep.mubr.msk.bf16.mxu0 %vm4884_vm0, %v4883_v5  ;;  %v4559_v7 = vld [vmem:[%s6227_s4] sm:$0xff]   ;;  %v416_v9 = vpack.c.bf16 %v408_v6, %v408_v6  ;;  %v4561_v10 = vld [vmem:[%s6227_s4 + $0x8] sm:$0xff]  }
   0x4   :  { %454 = vmatprep.subr.bf16.mxu1 %v4990_v3  ;;  %4550 = vset.pattern.permute.xlu1 %v6239_v2  ;;  %v48_v11 = vld [vmem:[%s6223_s0] sm:$0xff]  ;;  %v49_v12 = vld [vmem:[%s6223_s0 + $0x8] sm:$0xff] }
   0x5   :  { %4223 = vmatpush3.bf16.msra.mxu0 %v4559_v7  ;;  %v5029_v13 = vld [vmem:[%s6232_s9 + $0x20] ss:$12 sps:$4 sm:$0xff]   ;;  %v5031_v14 = vpack.c.bf16 %v49_v12, %v48_v11 }
   0x6   :  { %4224 = vmatprep.subr.bf16.mxu0 %v4883_v5 }
   0x7   :  { %455 = vmatpush1.bf16.msra.mxu1 %v4995_v4 }
   0x8   :  { %4258 = vmatprep.subr.bf16.mxu1 %v4883_v5 }
   0x9   :  { %4225 = vmatpush3.bf16.msra.mxu0 %v4561_v10 }
   0xa   :  { %4015 = vmatmul.mubr.msk.bf16.vlgmr.msra.gmra.mrb[0].mxu1 %vm73_vm1, %v416_v9  ;;  %4230 = vmatprep.subr.bf16.mxu0 %v4883_v5 }
   0xb   :  { %4259 = vmatpush3.bf16.msra.mxu1 %v5012_v8  ;;  %4262 = vmatprep.mubr.msk.bf16.mxu1 %vm4884_vm0, %v4883_v5 }
   0xc   :  { %4260 = vmatprep.subr.bf16.mxu1 %v4883_v5  ;;  %4227 = vmatmul.mubr.msk.bf16.vlgmr.msra.gmra.mrb[0].mxu0 %vm73_vm1, %v5031_v14 }
   0xd   :  { %4234 = vmatprep.mubr.msk.bf16.mxu0 %vm4884_vm0, %v4883_v5 }
   0xf   :  { %4261 = vmatpush3.bf16.msra.mxu1 %v5029_v13 }
  0x10   :  { %22 = vsyncpa [#allocation5], 0  ;;  %757 = vmatprep.subr.bf16.mxu1 %v4977_v0  ;;  %v410_v15 = vlaneseq  ;;  %v4885_v16 = vmov 1966171168   ;;  %v3984_v30 = vld [vmem:[%s6228_s5] ss:$0 sm:$0xff] }
  0x11   :  { %v534_v17 = vunpack.c.l.s4 %v4885_v16  ;;  %v5078_v45 = vld [vmem:[%s6229_s6] ss:$0 sm:$0xff]  ;;  %v4563_v53 = vld [vmem:[%s6231_s8 + $0x8] sm:$0xff]   ;;  %v4568_v58 = vld [vmem:[%s6226_s3 + $0x10] sm:$0xff]   ;;  %vm593_vm2 = vcmask 1041409   ;;  %vm596_vm3 = vcmask 58368  }
  0x12   :  { %4263 = vmatmul.mubr.msk.bf16.vlgmr.msra.gmra.mrb[4].mxu1 %vm73_vm1, %v416_v9  ;;  %v5053_v21 = vshrl.u32 %v410_v15, 7  ;;  %v4562_v52 = vld [vmem:[%s6231_s8] sm:$0xff]   ;;  %v4565_v56 = vld [vmem:[%s6230_s7 + $0x8] sm:$0xff]   ;;  %v4569_v59 = vld [vmem:[%s6226_s3 + $0x18] sm:$0xff]   ;;  %v5116_v60 = vand.u32 127, %v410_v15  ;;  %s4887_s29 = smov 32  }
  0x13   :  { %758 = vmatpush1.bf16.msra.mxu1 %v4982_v1  ;;  %789 = vmatprep.mubr.bf16.mxu1 %v6239_v2  ;;  %v535_v20 = vunpack.c.0.s8 %v534_v17  ;;  %v4564_v54 = vld [vmem:[%s6230_s7] sm:$0xff]   ;;  %v4567_v57 = vld [vmem:[%s6226_s3 + $0x8] sm:$0xff]   ;;  %v4573_v15 = vld [vmem:[%s6226_s3 + $0x38] sm:$0xff]   ;;  %vm864_vm6 = vcmask 64512   ;;  %s4888_s17 = smov 64   ;;  %vm839_vm7 = vcmask 1041408  }
  0x14   :  { %759 = vmatprep.subr.bf16.mxu1 %v4990_v3  ;;  %v5063_v32 = vsub.s32 0, %v5053_v21  ;;  %4231 = vmatpush3.bf16.msra.mxu0 %v4562_v52  ;;  %v4566_v55 = vld [vmem:[%s6226_s3] sm:$0xff]   ;;  %v5120_v62 = vsub.s32 %v5116_v60, %v5053_v21  ;;  %v4571_v12 = vld [vmem:[%s6226_s3 + $0x28] sm:$0xff]   ;;  %v5145_v16 = vsub.s32 1, %v5053_v21  ;;  %vm412_vm4 = vcmp.eq.s32.totalorder %v5116_v60, 0 }
  0x15   :  { %v5056_v26 = vsub.s32 %v535_v20, %v5053_v21  ;;  %4232 = vmatprep.subr.bf16.mxu0 %v4883_v5  ;;  %v4570_v11 = vld [vmem:[%s6226_s3 + $0x20] sm:$0xff]   ;;  %vm4018_vm5 = vmpackc.low %vm412_vm4, %vm412_vm4 }
  0x17   :  { %760 = vmatpush1.bf16.msra.mxu1 %v4995_v4 }
  0x18   :  { %4286 = vmatprep.subr.bf16.mxu1 %v4883_v5  ;;  %4233 = vmatpush3.bf16.msra.mxu0 %v4563_v53 }
  0x19   :  { %4238 = vmatprep.subr.bf16.mxu0 %v4564_v54 }
  0x1b   :  { %4235 = vmatmul.mubr.msk.bf16.vlgmr.msra.gmra.mrb[4].mxu0 %vm73_vm1, %v5031_v14  ;;  %v4572_v14 = vld [vmem:[%s6226_s3 + $0x30] sm:$0xff]  }
  0x1c   :  { %4239 = vmatpush3.bf16.msra.mxu0 %v4564_v54  ;;  %4242 = vmatprep.mubr.msk.bf16.mxu0 %vm73_vm1, %v4566_v55 }
  0x1d   :  { %4240 = vmatprep.subr.bf16.mxu0 %v4565_v56 }
  0x20   :  { %4241 = vmatpush3.bf16.msra.mxu0 %v4565_v56 }
  0x21   :  { %4266 = vmatprep.subr.bf16.mxu0 %v4883_v5 }
  0x23   :  { %4243 = vmatmul.mubr.msk.bf16.vlgmr.msra.gmra.mrb[8].mxu0 %vm73_vm1, %v4567_v57 }
  0x24   :  { %4246 = vmatprep.mubr.msk.bf16.mxu0 %vm73_vm1, %v4568_v58 }
  0x2b   :  { %4247 = vmatmul.mubr.msk.bf16.gmra.mrb[12].mxu0 %vm73_vm1, %v4569_v59 }
  0x2c   :  { %4250 = vmatprep.mubr.msk.bf16.mxu0 %vm73_vm1, %v4570_v11 }
  0x33   :  { %4251 = vmatmul.mubr.msk.bf16.gmra.mrb[16].mxu0 %vm73_vm1, %v4571_v12 }
  0x34   :  { %4254 = vmatprep.mubr.msk.bf16.mxu0 %vm73_vm1, %v4572_v14 }
  0x3b   :  { %4255 = vmatmul.mubr.msk.bf16.gmra.mrb[20].mxu0 %vm73_vm1, %v4573_v15 }
  0x3c   :  { %4282 = vmatprep.mubr.msk.bf16.mxu0 %vm4884_vm0, %v4883_v5 }
  0xdd   :  { %v486_v18 = vpop.f32.mrb[0].mxu1 }
  0xde   :  { %v5051_v19 = vpop.f32.mrb[1].mxu1 }
  0xdf   :  { %v489_v22 = vpop.f32.mrb[2].mxu1  ;;  %v111_v24 = vpop.f32.mrb[0].mxu0 }
  0xe0   :  { %v490_v23 = vpop.f32.mrb[3].mxu1  ;;  %v4228_v25 = vpop.f32.mrb[1].mxu0  ;;  %v5066_v37 = vadd.f32 %v3984_v30, %v111_v24 }
  0xe1   :  { %v114_v27 = vpop.f32.mrb[2].mxu0 }
  0xe2   :  { %v4229_v28 = vpop.f32.mrb[3].mxu0  ;;  %v5071_v42 = vadd.f32 %v3984_v30, %v114_v27 }
  0xe5   :  { %v526_v29 = vpop.f32.mrb[4].mxu1 }
  0xe6   :  { %v539_v31 = vrot.slane %v526_v29, %v5056_v26  ;;  %v4264_v33 = vpop.f32.mrb[5].mxu1 }
  0xe7   :  { %v529_v34 = vpop.f32.mrb[6].mxu1 }
  0xe8   :  { %v540_v35 = vcombine.high %v539_v31, %v539_v31  ;;  %v547_v36 = vrot.slane %v539_v31, %v5056_v26  ;;  %v4265_v38 = vpop.f32.mrb[7].mxu1 }
  0xea   :  { %v554_v39 = vrot.slane %v540_v35, %v5056_v26  ;;  %v558_v40 = vrot.slane %v547_v36, %v5063_v32 }
  0xec   :  { %v562_v41 = vrot.slane %v554_v39, %v5063_v32  ;;  %v565_v43 = vadd.f32 %v558_v40, %v5066_v37 }
  0xee   :  { %4574 = vtanh.f32 %v565_v43  ;;  %v566_v44 = vadd.f32 %v562_v41, %v5071_v42  ;;  %v5155_v21 = vpop.f32.mrb[4].mxu0 }
  0xef   :  { %v4236_v29 = vpop.f32.mrb[5].mxu0 }
  0xf0   :  { %4576 = vtanh.f32 %v566_v44  ;;  %v5157_v30 = vpop.f32.mrb[6].mxu0 }
  0xf1   :  { %v4237_v31 = vpop.f32.mrb[7].mxu0 }
  0xf6   :  { %v4244_v33 = vpop.f32.mrb[8].mxu0 }
  0xf7   :  { %v314_v34 = vpop.f32.mrb[9].mxu0 }
  0xf8   :  { %v4575_v46 = vpop.eup %4574  ;;  %v4245_v35 = vpop.f32.mrb[10].mxu0 }
  0xf9   :  { %v575_v47 = vmul.f32 %v4575_v46, %v5078_v45  ;;  %v5159_v36 = vpack.c.bf16 %v4245_v35, %v4244_v33  ;;  %v317_v38 = vpop.f32.mrb[11].mxu0 }
  0xfa   :  { %v4577_v48 = vpop.eup %4576  ;;  %v5161_v39 = vpack.c.bf16 %v317_v38, %v314_v34 }
  0xfb   :  { %v577_v49 = vsel %vm73_vm1, %v575_v47, 0.0  ;;  %v576_v50 = vmul.f32 %v4577_v48, %v5078_v45 }
  0xfc   :  { %578 = vadd.xlane.f32.xlu0 %v577_v49  ;;  %4267 = vmatpush3.bf16.msra.mxu0 %v5161_v39 }
  0xfd   :  { %v580_v51 = vsel %vm73_vm1, %v576_v50, 0.0  ;;  %4268 = vmatprep.subr.bf16.mxu0 %v4883_v5 }
  0xfe   :  { %v4248_v40 = vpop.f32.mrb[12].mxu0 }
  0xff   :  { %v330_v41 = vpop.f32.mrb[13].mxu0 }
 0x100   :  { %581 = vadd.xlane.f32.xlu0 %v580_v51  ;;  %v4249_v43 = vpop.f32.mrb[14].mxu0  ;;  %4269 = vmatpush3.bf16.msra.mxu0 %v5159_v36 }
 0x101   :  { %v5165_v44 = vpack.c.bf16 %v4249_v43, %v4248_v40  ;;  %v333_v46 = vpop.f32.mrb[15].mxu0  ;;  %4270 = vmatprep.subr.bf16.mxu0 %v4883_v5 }
 0x102   :  { %v5167_v47 = vpack.c.bf16 %v333_v46, %v330_v41 }
 0x104   :  { %4271 = vmatpush3.bf16.msra.mxu0 %v5167_v47 }
 0x105   :  { %4272 = vmatprep.subr.bf16.mxu0 %v4883_v5 }
 0x106   :  { %v4252_v48 = vpop.f32.mrb[16].mxu0 }
 0x107   :  { %v346_v49 = vpop.f32.mrb[17].mxu0 }
 0x108   :  { %4273 = vmatpush3.bf16.msra.mxu0 %v5165_v44  ;;  %v4253_v50 = vpop.f32.mrb[18].mxu0 }
 0x109   :  { %4274 = vmatprep.subr.bf16.mxu0 %v4883_v5  ;;  %v5175_v51 = vpack.c.bf16 %v4253_v50, %v4252_v48  ;;  %v349_v52 = vpop.f32.mrb[19].mxu0 }
 0x10a   :  { %v5177_v53 = vpack.c.bf16 %v349_v52, %v346_v49 }
 0x10c   :  { %4275 = vmatpush3.bf16.msra.mxu0 %v5177_v53 }
 0x10d   :  { %4276 = vmatprep.subr.bf16.mxu0 %v4883_v5 }
 0x10e   :  { %v4256_v54 = vpop.f32.mrb[20].mxu0 }
 0x10f   :  { %v362_v55 = vpop.f32.mrb[21].mxu0 }
 0x110   :  { %v4257_v56 = vpop.f32.mrb[22].mxu0  ;;  %4277 = vmatpush3.bf16.msra.mxu0 %v5175_v51 }
 0x111   :  { %v5182_v57 = vpack.c.bf16 %v4257_v56, %v4256_v54  ;;  %v365_v58 = vpop.f32.mrb[23].mxu0  ;;  %4278 = vmatprep.subr.bf16.mxu0 %v4883_v5 }
 0x112   :  { %v5185_v59 = vpack.c.bf16 %v365_v58, %v362_v55 }
 0x114   :  { %4279 = vmatpush3.bf16.msra.mxu0 %v5185_v59 }
 0x115   :  { %4280 = vmatprep.subr.bf16.mxu0 %v4883_v5 }
 0x118   :  { %4281 = vmatpush3.bf16.msra.mxu0 %v5182_v57 }
 0x119   :  { %1101 = vmatprep.subr.bf16.mxu0 %v4977_v0 }
 0x189   :  { %v579_v61 = vpop.xlane.xlu0 %578 }
 0x18a   :  { %v588_v6 = vrot.slane %v579_v61, %v5120_v62 }
 0x18d   :  { %v582_v63 = vpop.xlane.xlu0 %581 }
 0x18e   :  { %v592_v7 = vrot.slane %v582_v63, %v5120_v62 }
 0x190   :  { %v594_v9 = vsel %vm593_vm2, %v592_v7, %v588_v6 }
 0x191   :  { %v597_v10 = vsel %vm596_vm3, %v594_v9, -inf }
 0x192   :  { %598 = vmax.xlane.f32.xlu1 %v597_v10 }
 0x21f   :  { %v599_v17 = vpop.xlane.xlu1 %598 }
 0x220   :  { %v604_v18 = vrot.slane %v599_v17, %v5063_v32  ;;  %v608_v20 = vrot.slane %v599_v17, %v5145_v16 }
 0x222   :  { %v611_v22 = vsub.f32 %v579_v61, %v604_v18  ;;  %v612_v23 = vsub.f32 %v582_v63, %v608_v20  ;;  %v4886_v61 = vmov 1.0|1.0  }
 0x223   :  { %4283 = vmatmul.mubr.msk.bf16.vlgmr.msra.gmra.mrb[24].mxu0 %vm4018_vm5, %v4886_v61 }
 0x224   :  { %v613_v24 = vmul.f32 1.442695, %v611_v22  ;;  %v615_v25 = vmul.f32 1.442695, %v612_v23  ;;  %1102 = vmatpush1.bf16.msra.mxu0 %v4982_v1  ;;  %1133 = vmatprep.mubr.bf16.mxu0 %v6239_v2  ;;  %v409_v22 = vld [vmem:[%s6225_s2] sm:$0x3] }
 0x225   :  { %1103 = vmatprep.subr.bf16.mxu0 %v4990_v3 }
 0x226   :  { %4578 = vpow2.f32 %v613_v24 }
 0x227   :  { %4580 = vpow2.f32 %v615_v25 }
 0x228   :  { %1104 = vmatpush1.bf16.msra.mxu0 %v4995_v4 }
 0x229   :  { %4314 = vmatprep.subr.bf16.mxu0 %v4883_v5 }
 0x230   :  { %v5149_v27 = vpop.eup %4578 }
 0x231   :  { %v5151_v28 = vpop.eup %4580  ;;  %620 = vperm.xlu1 %4550, %v5149_v27  }
 0x232   :  { %623 = vperm.xlu0 %4551, %v5151_v28  }
 0x2b0   :  { %v621_v63 = vpop.permute.xlu1 %620 }
 0x2b1   :  { %v624_v6 = vpop.permute.xlu0 %623  ;;  %v628_v7 = vrot.slane %v621_v63, %v5120_v62 }
 0x2b2   :  { %v632_v9 = vrot.slane %v624_v6, %v5120_v62 }
 0x2b4   :  { %v633_v10 = vsel %vm593_vm2, %v632_v9, %v628_v7  ;;  %v5223_v9 = vld [vmem:[%s6233_s10] ss:$0 sm:$0xff] }
 0x2b5   :  { %v635_v11 = vsel %vm596_vm3, %v633_v10, 0.0 }
 0x2b6   :  { %636 = vadd.xlane.f32.xlu1 %v635_v11 }
 0x2f6   :  { %v714_v23 = vpop.f32.mrb[24].mxu0 }
 0x2f7   :  { %v4284_v24 = vpop.f32.mrb[25].mxu0 }
 0x2f8   :  { %v717_v25 = vpop.f32.mrb[26].mxu0 }
 0x2f9   :  { %v4285_v29 = vpop.f32.mrb[27].mxu0 }
 0x343   :  { %v637_v12 = vpop.xlane.xlu1 %636 }
 0x344   :  { %4582 = vrcp.f32 %v637_v12 }
 0x34e   :  { %v4583_v14 = vpop.eup %4582 }
 0x34f   :  { %v643_v15 = vrot.slane %v4583_v14, %v5063_v32  ;;  %v647_v18 = vrot.slane %v4583_v14, %v5145_v16 }
 0x351   :  { %v650_v17 = vmul.f32 %v5149_v27, %v643_v15  ;;  %v651_v20 = vmul.f32 %v5151_v28, %v647_v18 }
 0x353   :  { %654 = vperm.xlu0 %4551, %v650_v17  }
 0x357   :  { %659 = vperm.xlu0 %4551, %v651_v20  }
 0x35b   :  { %730 = vrot.lane.b32.xlu0 %v409_v22, %s4887_s29 }
 0x3d2   :  { %v655_v31 = vpop.permute.xlu0 %654 }
 0x3d3   :  { %v662_v27 = vmul.f32 %v655_v31, %v5155_v21  ;;  %v857_v28 = vrot.slane %v655_v31, %v5120_v62 }
 0x3d5   :  { %v664_v33 = vrot.slane %v662_v27, 4 }
 0x3d6   :  { %v660_v34 = vpop.permute.xlu0 %659 }
 0x3d7   :  { %v665_v35 = vadd.f32 %v664_v33, %v662_v27  ;;  %v663_v38 = vmul.f32 %v660_v34, %v5157_v30  ;;  %v861_v40 = vrot.slane %v660_v34, %v5120_v62 }
 0x3d9   :  { %v666_v41 = vrot.slane %v665_v35, 2  ;;  %v670_v43 = vrot.slane %v663_v38, 4  ;;  %v862_v46 = vsel %vm593_vm2, %v861_v40, %v857_v28 }
 0x3da   :  { %v865_v48 = vsel %vm864_vm6, %v862_v46, 0.0 }
 0x3db   :  { %v667_v49 = vadd.f32 %v666_v41, %v665_v35  ;;  %v671_v50 = vadd.f32 %v670_v43, %v663_v38  ;;  %866 = vst [vmem:[%s6236_s13] sm:$0x3] %v865_v48  ;;  %v5263_v35 = vld [vmem:[%s6234_s11] ss:$0 sm:$0xff] }
 0x3dd   :  { %v672_v52 = vrot.slane %v671_v50, 2  ;;  %v668_v55 = vrot.slane %v667_v49, 1 }
 0x3df   :  { %v673_v54 = vadd.f32 %v672_v52, %v671_v50  ;;  %v669_v58 = vadd.f32 %v668_v55, %v667_v49 }
 0x3e1   :  { %v674_v56 = vrot.slane %v673_v54, 1 }
 0x3e3   :  { %v675_v63 = vadd.f32 %v674_v56, %v673_v54 }
 0x3e5   :  { %v678_v6 = vsel %vm593_vm2, %v675_v63, %v669_v58 }
 0x3e6   :  { %v715_v7 = vadd.f32 %v714_v23, %v678_v6  ;;  %v731_v23 = vpop.permute.xlu0 %730 }
 0x3e8   :  { %v720_v10 = vadd.f32 %v715_v7, %v5051_v19 }
 0x3ea   :  { %v721_v11 = vadd.f32 %v5223_v9, %v720_v10 }
 0x3ec   :  { %4584 = vtanh.f32 %v721_v11  ;;  %v4020_v14 = vmul.f32 -1.442695, %v721_v11 }
 0x3ee   :  { %4586 = vpow2.f32 %v4020_v14 }
 0x3f6   :  { %v4585_v12 = vpop.eup %4584 }
 0x3f7   :  { %735 = vrot.lane.b32.xlu1 %v4585_v12, %s4888_s17 }
 0x3f8   :  { %v4587_v15 = vpop.eup %4586 }
 0x3f9   :  { %v725_v17 = vadd.f32 1.0, %v4587_v15 }
 0x3fb   :  { %4588 = vrcp.f32 %v725_v17 }
 0x405   :  { %v4589_v18 = vpop.eup %4588 }
 0x406   :  { %v733_v24 = vmul.f32 %v4589_v18, %v731_v23 }
 0x469   :  { %v736_v20 = vpop.permute.xlu1 %735 }
 0x46a   :  { %v738_v22 = vmul.f32 %v4589_v18, %v736_v20 }
 0x46c   :  { %740 = vrot.lane.b32.xlu0 %v738_v22, %s4887_s29 }
 0x4de   :  { %v741_v19 = vpop.permute.xlu0 %740 }
 0x4df   :  { %v5229_v25 = vadd.f32 %v741_v19, %v733_v24 }
 0x4e1   :  { %4590 = vtanh.f32 %v5229_v25 }
 0x4eb   :  { %v4591_v29 = vpop.eup %4590 }
 0x4ec   :  { %746 = vrot.lane.b32.xlu0 %v4591_v29, %s4888_s17 }
 0x55e   :  { %v747_v31 = vpop.permute.xlu0 %746 }
 0x55f   :  { %v749_v27 = vmul.f32 %v4589_v18, %v747_v31 }
 0x561   :  { %v750_v33 = vpack.c.bf16 %v749_v27, %v749_v27 }
 0x563   :  { %752 = vrot.lane.b32.xlu0 %v750_v33, %s4887_s29 }
 0x5d5   :  { %v753_v34 = vpop.permute.xlu0 %752 }
 0x5d6   :  { %4021 = vmatmul.mubr.msk.bf16.vlgmr.msra.gmra.mrb[8].mxu1 %vm73_vm1, %v753_v34 }
 0x5d7   :  { %4287 = vmatpush3.bf16.msra.mxu1 %v5012_v8  ;;  %4290 = vmatprep.mubr.msk.bf16.mxu1 %vm4884_vm0, %v4883_v5 }
 0x5d8   :  { %4288 = vmatprep.subr.bf16.mxu1 %v4883_v5 }
 0x5db   :  { %4289 = vmatpush3.bf16.msra.mxu1 %v5029_v13 }
 0x5dc   :  { %4294 = vmatprep.subr.bf16.mxu1 %v4883_v5 }
 0x5de   :  { %4291 = vmatmul.mubr.msk.bf16.vlgmr.msra.gmra.mrb[12].mxu1 %vm73_vm1, %v753_v34 }
 0x5df   :  { %4295 = vmatpush3.bf16.msra.mxu1 %v5161_v39  ;;  %4310 = vmatprep.mubr.msk.bf16.mxu1 %vm4884_vm0, %v4883_v5 }
 0x5e0   :  { %4296 = vmatprep.subr.bf16.mxu1 %v4883_v5 }
 0x5e3   :  { %4297 = vmatpush3.bf16.msra.mxu1 %v5159_v36 }
 0x5e4   :  { %4298 = vmatprep.subr.bf16.mxu1 %v4883_v5 }
 0x5e7   :  { %4299 = vmatpush3.bf16.msra.mxu1 %v5167_v47 }
 0x5e8   :  { %4300 = vmatprep.subr.bf16.mxu1 %v4883_v5 }
 0x5eb   :  { %4301 = vmatpush3.bf16.msra.mxu1 %v5165_v44 }
 0x5ec   :  { %4302 = vmatprep.subr.bf16.mxu1 %v4883_v5 }
 0x5ef   :  { %4303 = vmatpush3.bf16.msra.mxu1 %v5177_v53 }
 0x5f0   :  { %4304 = vmatprep.subr.bf16.mxu1 %v4883_v5 }
 0x5f3   :  { %4305 = vmatpush3.bf16.msra.mxu1 %v5175_v51 }
 0x5f4   :  { %4306 = vmatprep.subr.bf16.mxu1 %v4883_v5 }
 0x5f7   :  { %4307 = vmatpush3.bf16.msra.mxu1 %v5185_v59 }
 0x5f8   :  { %4308 = vmatprep.subr.bf16.mxu1 %v4883_v5 }
 0x5fb   :  { %4309 = vmatpush3.bf16.msra.mxu1 %v5182_v57 }
 0x5fc   :  { %1445 = vmatprep.subr.bf16.mxu1 %v4977_v0 }
 0x6a9   :  { %v791_v28 = vpop.f32.mrb[8].mxu1 }
 0x6aa   :  { %v5266_v38 = vadd.f32 %v5263_v35, %v791_v28  ;;  %v5268_v40 = vpop.f32.mrb[9].mxu1 }
 0x6ab   :  { %v795_v41 = vpop.f32.mrb[10].mxu1 }
 0x6ac   :  { %v796_v43 = vpop.f32.mrb[11].mxu1  ;;  %v840_v46 = vsel %vm839_vm7, %v5266_v38, -inf }
 0x6ad   :  { %841 = vmax.xlane.f32.xlu1 %v840_v46 }
 0x6b1   :  { %v832_v48 = vpop.f32.mrb[12].mxu1 }
 0x6b2   :  { %v895_v49 = vrot.slane %v832_v48, %v5056_v26  ;;  %v4292_v50 = vpop.f32.mrb[13].mxu1 }
 0x6b3   :  { %v835_v52 = vpop.f32.mrb[14].mxu1 }
 0x6b4   :  { %v896_v54 = vcombine.high %v895_v49, %v895_v49  ;;  %v903_v55 = vrot.slane %v895_v49, %v5056_v26  ;;  %v4293_v56 = vpop.f32.mrb[15].mxu1 }
 0x6b6   :  { %v910_v58 = vrot.slane %v896_v54, %v5056_v26  ;;  %v914_v63 = vrot.slane %v903_v55, %v5063_v32 }
 0x6b8   :  { %v918_v6 = vrot.slane %v910_v58, %v5063_v32  ;;  %v921_v7 = vadd.f32 %v914_v63, %v5066_v37 }
 0x6ba   :  { %v922_v10 = vadd.f32 %v918_v6, %v5071_v42  ;;  %4592 = vtanh.f32 %v921_v7 }
 0x6bc   :  { %4594 = vtanh.f32 %v922_v10 }
 0x6c4   :  { %v4593_v11 = vpop.eup %4592 }
 0x6c5   :  { %v925_v12 = vmul.f32 %v4593_v11, %v5078_v45 }
 0x6c6   :  { %v4595_v14 = vpop.eup %4594 }
 0x6c7   :  { %v927_v15 = vsel %vm73_vm1, %v925_v12, 0.0  ;;  %v926_v17 = vmul.f32 %v4595_v14, %v5078_v45 }
 0x6c8   :  { %928 = vadd.xlane.f32.xlu0 %v927_v15 }
 0x6c9   :  { %v930_v18 = vsel %vm73_vm1, %v926_v17, 0.0 }
 0x6cc   :  { %931 = vadd.xlane.f32.xlu0 %v930_v18 }
 0x73a   :  { %v5283_v20 = vpop.xlane.xlu1 %841 }
 0x73b   :  { %vm867_vm8 = vcmp.ge.f32.partialorder %v5266_v38, %v5283_v20 }
 0x73c   :  { %v868_v22 = vsel %vm867_vm8, %v5116_v60, 128 }
 0x73d   :  { %v869_v23 = vsel %vm839_vm7, %v868_v22, 2147483647 }
 0x73e   :  { %v871_v24 = vshra.s32 %v869_v23, 16  ;;  %v870_v41 = vand.u32 65535, %v869_v23 }
 0x740   :  { %v873_v19 = vcvt.s32.f32 %v871_v24  ;;  %v872_v46 = vcvt.s32.f32 %v870_v41 }
 0x742   :  { %874 = vmin.xlane.f32.xlu1 %v873_v19 }
 0x755   :  { %v929_v29 = vpop.xlane.xlu0 %928 }
 0x756   :  { %v938_v27 = vrot.slane %v929_v29, %v5120_v62 }
 0x759   :  { %v932_v31 = vpop.xlane.xlu0 %931 }
 0x75a   :  { %v942_v33 = vrot.slane %v932_v31, %v5120_v62 }
 0x75c   :  { %v943_v34 = vsel %vm593_vm2, %v942_v33, %v938_v27 }
 0x75d   :  { %v945_v28 = vsel %vm596_vm3, %v943_v34, -inf }
 0x75e   :  { %946 = vmax.xlane.f32.xlu0 %v945_v28 }
 0x7cf   :  { %v875_v43 = vpop.xlane.xlu1 %874 }
 0x7d0   :  { %vm876_vm9 = vcmp.eq.f32.partialorder %v873_v19, %v875_v43  ;;  %v881_v7 = vcvt.f32.s32 %v875_v43 }
 0x7d1   :  { %v877_v48 = vsel %vm876_vm9, %v872_v46, inf }
 0x7d2   :  { %878 = vmin.xlane.f32.xlu1 %v877_v48  ;;  %v882_v11 = vshll.u32 %v881_v7, 16 }
 0x7eb   :  { %v947_v49 = vpop.xlane.xlu0 %946 }
 0x7ec   :  { %v952_v50 = vrot.slane %v947_v49, %v5063_v32  ;;  %v956_v52 = vrot.slane %v947_v49, %v5145_v16 }
 0x7ee   :  { %v959_v54 = vsub.f32 %v929_v29, %v952_v50  ;;  %v960_v55 = vsub.f32 %v932_v31, %v956_v52 }
 0x7f0   :  { %v961_v56 = vmul.f32 1.442695, %v959_v54  ;;  %v963_v58 = vmul.f32 1.442695, %v960_v55 }
 0x7f2   :  { %4596 = vpow2.f32 %v961_v56 }
 0x7f3   :  { %4598 = vpow2.f32 %v963_v58 }
 0x7fc   :  { %v4597_v63 = vpop.eup %4596 }
 0x7fd   :  { %v4599_v6 = vpop.eup %4598  ;;  %968 = vperm.xlu0 %4551, %v4597_v63  }
 0x7fe   :  { %971 = vperm.xlu1 %4550, %v4599_v6  }
 0x85f   :  { %v879_v10 = vpop.xlane.xlu1 %878 }
 0x860   :  { %v880_v12 = vcvt.f32.s32 %v879_v10 }
 0x862   :  { %v883_v14 = vadd.s32 %v882_v11, %v880_v12 }
 0x864   :  { %vm884_vm10 = vcmp.eq.s32.totalorder %v5116_v60, %v883_v14 }
 0x865   :  { %vm4024_vm11 = vmpackc.low %vm884_vm10, %vm884_vm10 }
 0x866   :  { %4311 = vmatmul.mubr.msk.bf16.vlgmr.msra.gmra.mrb[16].mxu1 %vm4024_vm11, %v4886_v61 }
 0x867   :  { %1446 = vmatpush1.bf16.msra.mxu1 %v4982_v1  ;;  %1477 = vmatprep.mubr.bf16.mxu1 %v6239_v2 }
 0x868   :  { %1447 = vmatprep.subr.bf16.mxu1 %v4990_v3 }
 0x86b   :  { %1448 = vmatpush1.bf16.msra.mxu1 %v4995_v4 }
 0x86c   :  { %4342 = vmatprep.subr.bf16.mxu1 %v4883_v5 }
 0x87c   :  { %v969_v15 = vpop.permute.xlu0 %968 }
 0x87d   :  { %v972_v17 = vpop.permute.xlu1 %971  ;;  %v976_v18 = vrot.slane %v969_v15, %v5120_v62 }
 0x87e   :  { %v980_v22 = vrot.slane %v972_v17, %v5120_v62 }
 0x880   :  { %v981_v23 = vsel %vm593_vm2, %v980_v22, %v976_v18 }
 0x881   :  { %v983_v24 = vsel %vm596_vm3, %v981_v23, 0.0 }
 0x882   :  { %984 = vadd.xlane.f32.xlu1 %v983_v24 }
 0x90f   :  { %v985_v1 = vpop.xlane.xlu1 %984 }
 0x910   :  { %4600 = vrcp.f32 %v985_v1 }
 0x91a   :  { %v4601_v19 = vpop.eup %4600 }
 0x91b   :  { %v991_v3 = vrot.slane %v4601_v19, %v5063_v32  ;;  %v995_v4 = vrot.slane %v4601_v19, %v5145_v16 }
 0x91d   :  { %v998_v29 = vmul.f32 %v4597_v63, %v991_v3  ;;  %v999_v31 = vmul.f32 %v4599_v6, %v995_v4 }
 0x91f   :  { %1002 = vperm.xlu0 %4551, %v998_v29  }
 0x923   :  { %1007 = vperm.xlu0 %4551, %v999_v31  }
 0x939   :  { %v1062_v27 = vpop.f32.mrb[16].mxu1 }
 0x93a   :  { %v4312_v33 = vpop.f32.mrb[17].mxu1 }
 0x93b   :  { %v1065_v34 = vpop.f32.mrb[18].mxu1 }
 0x93c   :  { %v4313_v28 = vpop.f32.mrb[19].mxu1 }
 0x99e   :  { %v1003_v41 = vpop.permute.xlu0 %1002 }
 0x99f   :  { %v1010_v43 = vmul.f32 %v1003_v41, %v5155_v21  ;;  %v1201_v50 = vrot.slane %v1003_v41, %v5120_v62 }
 0x9a1   :  { %v1012_v46 = vrot.slane %v1010_v43, 4 }
 0x9a2   :  { %v1008_v48 = vpop.permute.xlu0 %1007 }
 0x9a3   :  { %v1013_v49 = vadd.f32 %v1012_v46, %v1010_v43  ;;  %v1011_v52 = vmul.f32 %v1008_v48, %v5157_v30  ;;  %v1205_v54 = vrot.slane %v1008_v48, %v5120_v62 }
 0x9a5   :  { %v1014_v55 = vrot.slane %v1013_v49, 2  ;;  %v1018_v56 = vrot.slane %v1011_v52, 4  ;;  %v1206_v58 = vsel %vm593_vm2, %v1205_v54, %v1201_v50 }
 0x9a6   :  { %v1208_v63 = vsel %vm864_vm6, %v1206_v58, 0.0 }
 0x9a7   :  { %v1015_v6 = vadd.f32 %v1014_v55, %v1013_v49  ;;  %v1019_v7 = vadd.f32 %v1018_v56, %v1011_v52  ;;  %4029 = vst [vmem:[%s6236_s13 + $0x2] sm:$0x3] %v1208_v63 }
 0x9a9   :  { %v1020_v10 = vrot.slane %v1019_v7, 2  ;;  %v1016_v11 = vrot.slane %v1015_v6, 1 }
 0x9ab   :  { %v1021_v12 = vadd.f32 %v1020_v10, %v1019_v7  ;;  %v1017_v15 = vadd.f32 %v1016_v11, %v1015_v6 }
 0x9ad   :  { %v1022_v14 = vrot.slane %v1021_v12, 1 }
 0x9af   :  { %v1023_v17 = vadd.f32 %v1022_v14, %v1021_v12 }
 0x9b1   :  { %v1026_v18 = vsel %vm593_vm2, %v1023_v17, %v1017_v15 }
 0x9b2   :  { %v1063_v22 = vadd.f32 %v1062_v27, %v1026_v18 }
 0x9b4   :  { %v1068_v23 = vadd.f32 %v1063_v22, %v5268_v40 }
 0x9b6   :  { %v1069_v24 = vadd.f32 %v5223_v9, %v1068_v23 }
 0x9b8   :  { %4602 = vtanh.f32 %v1069_v24  ;;  %v4026_v19 = vmul.f32 -1.442695, %v1069_v24 }
 0x9ba   :  { %4604 = vpow2.f32 %v4026_v19 }
 0x9c2   :  { %v4603_v1 = vpop.eup %4602 }
 0x9c3   :  { %1079 = vrot.lane.b32.xlu0 %v4603_v1, %s4888_s17 }
 0x9c4   :  { %v4605_v3 = vpop.eup %4604 }
 0x9c5   :  { %v1073_v29 = vadd.f32 1.0, %v4605_v3 }
 0x9c7   :  { %4606 = vrcp.f32 %v1073_v29 }
 0x9d1   :  { %v4607_v4 = vpop.eup %4606 }
 0x9d2   :  { %v1077_v27 = vmul.f32 %v4607_v4, %v5229_v25 }
 0xa35   :  { %v1080_v31 = vpop.permute.xlu0 %1079 }
 0xa36   :  { %v1082_v33 = vmul.f32 %v4607_v4, %v1080_v31 }
 0xa38   :  { %1084 = vrot.lane.b32.xlu0 %v1082_v33, %s4887_s29 }
 0xaaa   :  { %v1085_v34 = vpop.permute.xlu0 %1084 }
 0xaab   :  { %v5323_v40 = vadd.f32 %v1085_v34, %v1077_v27 }
 0xaad   :  { %4608 = vtanh.f32 %v5323_v40 }
 0xab7   :  { %v4609_v28 = vpop.eup %4608 }
 0xab8   :  { %1090 = vrot.lane.b32.xlu0 %v4609_v28, %s4888_s17 }
 0xb2a   :  { %v1091_v41 = vpop.permute.xlu0 %1090 }
 0xb2b   :  { %v1093_v43 = vmul.f32 %v4607_v4, %v1091_v41 }
 0xb2d   :  { %v1094_v46 = vpack.c.bf16 %v1093_v43, %v1093_v43 }
 0xb2f   :  { %1096 = vrot.lane.b32.xlu0 %v1094_v46, %s4887_s29 }
 0xba1   :  { %v1097_v48 = vpop.permute.xlu0 %1096 }
 0xba2   :  { %4027 = vmatmul.mubr.msk.bf16.vlgmr.msra.gmra.mrb[28].mxu0 %vm73_vm1, %v1097_v48 }
 0xba3   :  { %4315 = vmatpush3.bf16.msra.mxu0 %v5012_v8  ;;  %4318 = vmatprep.mubr.msk.bf16.mxu0 %vm4884_vm0, %v4883_v5 }
 0xba4   :  { %4316 = vmatprep.subr.bf16.mxu0 %v4883_v5 }
 0xba7   :  { %4317 = vmatpush3.bf16.msra.mxu0 %v5029_v13 }
 0xba8   :  { %4322 = vmatprep.subr.bf16.mxu0 %v4883_v5 }
 0xbaa   :  { %4319 = vmatmul.mubr.msk.bf16.vlgmr.msra.gmra.mrb[32].mxu0 %vm73_vm1, %v1097_v48 }
 0xbab   :  { %4323 = vmatpush3.bf16.msra.mxu0 %v5161_v39  ;;  %4338 = vmatprep.mubr.msk.bf16.mxu0 %vm4884_vm0, %v4883_v5 }
 0xbac   :  { %4324 = vmatprep.subr.bf16.mxu0 %v4883_v5 }
 0xbaf   :  { %4325 = vmatpush3.bf16.msra.mxu0 %v5159_v36 }
 0xbb0   :  { %4326 = vmatprep.subr.bf16.mxu0 %v4883_v5 }
 0xbb3   :  { %4327 = vmatpush3.bf16.msra.mxu0 %v5167_v47 }
 0xbb4   :  { %4328 = vmatprep.subr.bf16.mxu0 %v4883_v5 }
 0xbb7   :  { %4329 = vmatpush3.bf16.msra.mxu0 %v5165_v44 }
 0xbb8   :  { %4330 = vmatprep.subr.bf16.mxu0 %v4883_v5 }
 0xbbb   :  { %4331 = vmatpush3.bf16.msra.mxu0 %v5177_v53 }
 0xbbc   :  { %4332 = vmatprep.subr.bf16.mxu0 %v4883_v5 }
 0xbbf   :  { %4333 = vmatpush3.bf16.msra.mxu0 %v5175_v51 }
 0xbc0   :  { %4334 = vmatprep.subr.bf16.mxu0 %v4883_v5 }
 0xbc3   :  { %4335 = vmatpush3.bf16.msra.mxu0 %v5185_v59 }
 0xbc4   :  { %4336 = vmatprep.subr.bf16.mxu0 %v4883_v5 }
 0xbc7   :  { %4337 = vmatpush3.bf16.msra.mxu0 %v5182_v57 }
 0xbc8   :  { %1789 = vmatprep.subr.bf16.mxu0 %v4977_v0 }
 0xc75   :  { %v1135_v8 = vpop.f32.mrb[28].mxu0 }
 0xc76   :  { %v5355_v13 = vadd.f32 %v5263_v35, %v1135_v8  ;;  %v5357_v25 = vpop.f32.mrb[29].mxu0 }
 0xc77   :  { %v1139_v49 = vpop.f32.mrb[30].mxu0 }
 0xc78   :  { %v1140_v50 = vpop.f32.mrb[31].mxu0  ;;  %v1183_v52 = vsel %vm839_vm7, %v5355_v13, -inf }
 0xc79   :  { %1184 = vmax.xlane.f32.xlu0 %v1183_v52 }
 0xc7d   :  { %v1176_v54 = vpop.f32.mrb[32].mxu0 }
 0xc7e   :  { %v1239_v55 = vrot.slane %v1176_v54, %v5056_v26  ;;  %v4320_v56 = vpop.f32.mrb[33].mxu0 }
 0xc7f   :  { %v1179_v58 = vpop.f32.mrb[34].mxu0 }
 0xc80   :  { %v1240_v63 = vcombine.high %v1239_v55, %v1239_v55  ;;  %v1247_v0 = vrot.slane %v1239_v55, %v5056_v26  ;;  %v4321_v6 = vpop.f32.mrb[35].mxu0 }
 0xc82   :  { %v1254_v7 = vrot.slane %v1240_v63, %v5056_v26  ;;  %v1258_v10 = vrot.slane %v1247_v0, %v5063_v32 }
 0xc84   :  { %v1262_v11 = vrot.slane %v1254_v7, %v5063_v32  ;;  %v1265_v12 = vadd.f32 %v1258_v10, %v5066_v37 }
 0xc86   :  { %v1266_v14 = vadd.f32 %v1262_v11, %v5071_v42  ;;  %4610 = vtanh.f32 %v1265_v12  ;;  %v5389_v12 = vld [vmem:[%s6232_s9] ss:$12 sps:$4 sm:$0xff]  }
 0xc88   :  { %4612 = vtanh.f32 %v1266_v14  ;;  %v5396_v14 = vld [vmem:[%s6232_s9 + $0x1c] ss:$12 sps:$4 sm:$0xff]  }
 0xc90   :  { %v4611_v15 = vpop.eup %4610 }
 0xc91   :  { %v1269_v17 = vmul.f32 %v4611_v15, %v5078_v45  ;;  %v5402_v15 = vld [vmem:[%s6232_s9 + $0x18] ss:$12 sps:$4 sm:$0xff]  }
 0xc92   :  { %v4613_v18 = vpop.eup %4612 }
 0xc93   :  { %v1271_v22 = vsel %vm73_vm1, %v1269_v17, 0.0  ;;  %v1270_v23 = vmul.f32 %v4613_v18, %v5078_v45 }
 0xc94   :  { %1272 = vadd.xlane.f32.xlu1 %v1271_v22 }
 0xc95   :  { %v1274_v24 = vsel %vm73_vm1, %v1270_v23, 0.0 }
 0xc98   :  { %1275 = vadd.xlane.f32.xlu1 %v1274_v24 }
 0xd06   :  { %v5372_v1 = vpop.xlane.xlu0 %1184 }
 0xd07   :  { %vm1211_vm12 = vcmp.ge.f32.partialorder %v5355_v13, %v5372_v1 }
 0xd08   :  { %v1212_v19 = vsel %vm1211_vm12, %v5116_v60, 128 }
 0xd09   :  { %v1213_v3 = vsel %vm839_vm7, %v1212_v19, 2147483647 }
 0xd0a   :  { %v1215_v29 = vshra.s32 %v1213_v3, 16  ;;  %v1214_v41 = vand.u32 65535, %v1213_v3 }
 0xd0c   :  { %v1217_v4 = vcvt.s32.f32 %v1215_v29  ;;  %v1216_v46 = vcvt.s32.f32 %v1214_v41 }
 0xd0e   :  { %1218 = vmin.xlane.f32.xlu1 %v1217_v4 }
 0xd21   :  { %v1273_v31 = vpop.xlane.xlu1 %1272 }
 0xd22   :  { %v1282_v45 = vrot.slane %v1273_v31, %v5120_v62 }
 0xd25   :  { %v1276_v33 = vpop.xlane.xlu1 %1275 }
 0xd26   :  { %v1286_v27 = vrot.slane %v1276_v33, %v5120_v62 }
 0xd28   :  { %v1287_v34 = vsel %vm593_vm2, %v1286_v27, %v1282_v45 }
 0xd29   :  { %v1289_v28 = vsel %vm596_vm3, %v1287_v34, -inf }
 0xd2a   :  { %1290 = vmax.xlane.f32.xlu1 %v1289_v28 }
 0xd9b   :  { %v1219_v43 = vpop.xlane.xlu1 %1218 }
 0xd9c   :  { %vm1220_vm13 = vcmp.eq.f32.partialorder %v1217_v4, %v1219_v43  ;;  %v1225_v0 = vcvt.f32.s32 %v1219_v43 }
 0xd9d   :  { %v1221_v48 = vsel %vm1220_vm13, %v1216_v46, inf }
 0xd9e   :  { %1222 = vmin.xlane.f32.xlu1 %v1221_v48  ;;  %v1226_v7 = vshll.u32 %v1225_v0, 16 }
 0xdb7   :  { %v1291_v8 = vpop.xlane.xlu1 %1290 }
 0xdb8   :  { %v1296_v49 = vrot.slane %v1291_v8, %v5063_v32  ;;  %v1300_v50 = vrot.slane %v1291_v8, %v5145_v16 }
 0xdba   :  { %v1303_v52 = vsub.f32 %v1273_v31, %v1296_v49  ;;  %v1304_v54 = vsub.f32 %v1276_v33, %v1300_v50 }
 0xdbc   :  { %v1305_v55 = vmul.f32 1.442695, %v1303_v52  ;;  %v1307_v56 = vmul.f32 1.442695, %v1304_v54 }
 0xdbe   :  { %4614 = vpow2.f32 %v1305_v55 }
 0xdbf   :  { %4616 = vpow2.f32 %v1307_v56 }
 0xdc8   :  { %v4615_v58 = vpop.eup %4614 }
 0xdc9   :  { %v4617_v63 = vpop.eup %4616  ;;  %1312 = vperm.xlu1 %4550, %v4615_v58  }
 0xdca   :  { %1315 = vperm.xlu0 %4551, %v4617_v63  }
 0xe2b   :  { %v1223_v6 = vpop.xlane.xlu1 %1222 }
 0xe2c   :  { %v1224_v10 = vcvt.f32.s32 %v1223_v6 }
 0xe2e   :  { %v1227_v11 = vadd.s32 %v1226_v7, %v1224_v10 }
 0xe30   :  { %vm1228_vm14 = vcmp.eq.s32.totalorder %v5116_v60, %v1227_v11 }
 0xe31   :  { %vm4031_vm15 = vmpackc.low %vm1228_vm14, %vm1228_vm14 }
 0xe32   :  { %4339 = vmatmul.mubr.msk.bf16.vlgmr.msra.gmra.mrb[36].mxu0 %vm4031_vm15, %v4886_v61 }
 0xe33   :  { %1790 = vmatpush1.bf16.msra.mxu0 %v5389_v12  ;;  %1821 = vmatprep.mubr.bf16.mxu0 %v6239_v2 }
 0xe34   :  { %1791 = vmatprep.subr.bf16.mxu0 %v5396_v14 }
 0xe37   :  { %1792 = vmatpush1.bf16.msra.mxu0 %v5402_v15 }
 0xe38   :  { %4370 = vmatprep.subr.bf16.mxu0 %v4883_v5 }
 0xe48   :  { %v1313_v17 = vpop.permute.xlu1 %1312 }
 0xe49   :  { %v1316_v18 = vpop.permute.xlu0 %1315  ;;  %v1320_v22 = vrot.slane %v1313_v17, %v5120_v62 }
 0xe4a   :  { %v1324_v23 = vrot.slane %v1316_v18, %v5120_v62 }
 0xe4c   :  { %v1325_v24 = vsel %vm593_vm2, %v1324_v23, %v1320_v22 }
 0xe4d   :  { %v1327_v19 = vsel %vm596_vm3, %v1325_v24, 0.0 }
 0xe4e   :  { %1328 = vadd.xlane.f32.xlu1 %v1327_v19 }
 0xedb   :  { %v1329_v3 = vpop.xlane.xlu1 %1328 }
 0xedc   :  { %4618 = vrcp.f32 %v1329_v3 }
 0xee6   :  { %v4619_v29 = vpop.eup %4618 }
 0xee7   :  { %v1335_v4 = vrot.slane %v4619_v29, %v5063_v32  ;;  %v1339_v33 = vrot.slane %v4619_v29, %v5145_v16 }
 0xee9   :  { %v1342_v31 = vmul.f32 %v4615_v58, %v1335_v4  ;;  %v1343_v45 = vmul.f32 %v4617_v63, %v1339_v33 }
 0xeeb   :  { %1346 = vperm.xlu0 %4551, %v1342_v31  }
 0xeef   :  { %1351 = vperm.xlu0 %4551, %v1343_v45  }
 0xf05   :  { %v1406_v27 = vpop.f32.mrb[36].mxu0 }
 0xf06   :  { %v4340_v34 = vpop.f32.mrb[37].mxu0 }
 0xf07   :  { %v1409_v28 = vpop.f32.mrb[38].mxu0 }
 0xf08   :  { %v4341_v41 = vpop.f32.mrb[39].mxu0 }
 0xf6a   :  { %v1347_v43 = vpop.permute.xlu0 %1346 }
 0xf6b   :  { %v1354_v46 = vmul.f32 %v1347_v43, %v5155_v21  ;;  %v1545_v50 = vrot.slane %v1347_v43, %v5120_v62 }
 0xf6d   :  { %v1356_v48 = vrot.slane %v1354_v46, 4 }
 0xf6e   :  { %v1352_v8 = vpop.permute.xlu0 %1351 }
 0xf6f   :  { %v1357_v49 = vadd.f32 %v1356_v48, %v1354_v46  ;;  %v1355_v52 = vmul.f32 %v1352_v8, %v5157_v30  ;;  %v1549_v54 = vrot.slane %v1352_v8, %v5120_v62 }
 0xf71   :  { %v1358_v55 = vrot.slane %v1357_v49, 2  ;;  %v1362_v56 = vrot.slane %v1355_v52, 4  ;;  %v1550_v58 = vsel %vm593_vm2, %v1549_v54, %v1545_v50  ;;  %v5445_v50 = vld [vmem:[%s6232_s9 + $0x20] ss:$12 sps:$4 sm:$0xff]  }
 0xf72   :  { %v1552_v63 = vsel %vm864_vm6, %v1550_v58, 0.0 }
 0xf73   :  { %v1359_v0 = vadd.f32 %v1358_v55, %v1357_v49  ;;  %v1363_v6 = vadd.f32 %v1362_v56, %v1355_v52  ;;  %4036 = vst [vmem:[%s6236_s13 + $0x4] sm:$0x3] %v1552_v63  ;;  %v5470_v52 = vld [vmem:[%s6232_s9 + $0x4] ss:$12 sps:$4 sm:$0xff]  }
 0xf75   :  { %v1364_v7 = vrot.slane %v1363_v6, 2  ;;  %v1360_v10 = vrot.slane %v1359_v0, 1 }
 0xf77   :  { %v1365_v11 = vadd.f32 %v1364_v7, %v1363_v6  ;;  %v1361_v18 = vadd.f32 %v1360_v10, %v1359_v0 }
 0xf79   :  { %v1366_v17 = vrot.slane %v1365_v11, 1 }
 0xf7b   :  { %v1367_v22 = vadd.f32 %v1366_v17, %v1365_v11 }
 0xf7d   :  { %v1370_v23 = vsel %vm593_vm2, %v1367_v22, %v1361_v18 }
 0xf7e   :  { %v1407_v24 = vadd.f32 %v1406_v27, %v1370_v23 }
 0xf80   :  { %v1412_v19 = vadd.f32 %v1407_v24, %v5357_v25 }
 0xf82   :  { %v1413_v3 = vadd.f32 %v5223_v9, %v1412_v19 }
 0xf84   :  { %4620 = vtanh.f32 %v1413_v3  ;;  %v4033_v4 = vmul.f32 -1.442695, %v1413_v3 }
 0xf86   :  { %4622 = vpow2.f32 %v4033_v4 }
 0xf8e   :  { %v4621_v29 = vpop.eup %4620 }
 0xf8f   :  { %1423 = vrot.lane.b32.xlu0 %v4621_v29, %s4888_s17 }
 0xf90   :  { %v4623_v31 = vpop.eup %4622 }
 0xf91   :  { %v1417_v33 = vadd.f32 1.0, %v4623_v31  ;;  %v5490_v31 = vld [vmem:[%s6229_s6] ss:$0 sm:$0xff] }
 0xf93   :  { %4624 = vrcp.f32 %v1417_v33 }
 0xf9d   :  { %v4625_v45 = vpop.eup %4624 }
 0xf9e   :  { %v1421_v27 = vmul.f32 %v4625_v45, %v5323_v40  ;;  %v5436_v40 = vld [vmem:[%s6232_s9 + $0x8] ss:$12 sps:$4 sm:$0xff]  }
0x1001   :  { %v1424_v34 = vpop.permute.xlu0 %1423 }
0x1002   :  { %v1426_v28 = vmul.f32 %v4625_v45, %v1424_v34 }
0x1004   :  { %1428 = vrot.lane.b32.xlu0 %v1426_v28, %s4887_s29 }
0x1076   :  { %v1429_v41 = vpop.permute.xlu0 %1428 }
0x1077   :  { %v5427_v25 = vadd.f32 %v1429_v41, %v1421_v27 }
0x1079   :  { %4626 = vtanh.f32 %v5427_v25 }
0x1083   :  { %v4627_v43 = vpop.eup %4626 }
0x1084   :  { %1434 = vrot.lane.b32.xlu0 %v4627_v43, %s4888_s17 }
0x10f6   :  { %v1435_v46 = vpop.permute.xlu0 %1434 }
0x10f7   :  { %v1437_v48 = vmul.f32 %v4625_v45, %v1435_v46 }
0x10f9   :  { %v1438_v8 = vpack.c.bf16 %v1437_v48, %v1437_v48 }
0x10fb   :  { %1440 = vrot.lane.b32.xlu0 %v1438_v8, %s4887_s29 }
0x116d   :  { %v1441_v49 = vpop.permute.xlu0 %1440 }
0x116e   :  { %4034 = vmatmul.mubr.msk.bf16.vlgmr.msra.gmra.mrb[20].mxu1 %vm73_vm1, %v1441_v49 }
0x116f   :  { %4343 = vmatpush3.bf16.msra.mxu1 %v5436_v40  ;;  %4346 = vmatprep.mubr.msk.bf16.mxu1 %vm4884_vm0, %v4883_v5 }
0x1170   :  { %4344 = vmatprep.subr.bf16.mxu1 %v4883_v5 }
0x1173   :  { %4345 = vmatpush3.bf16.msra.mxu1 %v5445_v50 }
0x1174   :  { %4350 = vmatprep.subr.bf16.mxu1 %v4883_v5 }
0x1176   :  { %4347 = vmatmul.mubr.msk.bf16.vlgmr.msra.gmra.mrb[24].mxu1 %vm73_vm1, %v1441_v49 }
0x1177   :  { %4351 = vmatpush3.bf16.msra.mxu1 %v5161_v39  ;;  %4366 = vmatprep.mubr.msk.bf16.mxu1 %vm4884_vm0, %v4883_v5 }
0x1178   :  { %4352 = vmatprep.subr.bf16.mxu1 %v4883_v5 }
0x117b   :  { %4353 = vmatpush3.bf16.msra.mxu1 %v5159_v36 }
0x117c   :  { %4354 = vmatprep.subr.bf16.mxu1 %v4883_v5 }
0x117f   :  { %4355 = vmatpush3.bf16.msra.mxu1 %v5167_v47 }
0x1180   :  { %4356 = vmatprep.subr.bf16.mxu1 %v4883_v5 }
0x1183   :  { %4357 = vmatpush3.bf16.msra.mxu1 %v5165_v44 }
0x1184   :  { %4358 = vmatprep.subr.bf16.mxu1 %v4883_v5 }
0x1187   :  { %4359 = vmatpush3.bf16.msra.mxu1 %v5177_v53 }
0x1188   :  { %4360 = vmatprep.subr.bf16.mxu1 %v4883_v5 }
0x118b   :  { %4361 = vmatpush3.bf16.msra.mxu1 %v5175_v51 }
0x118c   :  { %4362 = vmatprep.subr.bf16.mxu1 %v4883_v5 }
0x118f   :  { %4363 = vmatpush3.bf16.msra.mxu1 %v5185_v59 }
0x1190   :  { %4364 = vmatprep.subr.bf16.mxu1 %v4883_v5 }
0x1193   :  { %4365 = vmatpush3.bf16.msra.mxu1 %v5182_v57 }
0x1194   :  { %2133 = vmatprep.subr.bf16.mxu1 %v5470_v52 }
0x1241   :  { %v1479_v54 = vpop.f32.mrb[20].mxu1 }
0x1242   :  { %v5474_v55 = vadd.f32 %v5263_v35, %v1479_v54  ;;  %v5476_v56 = vpop.f32.mrb[21].mxu1 }
0x1243   :  { %v1483_v58 = vpop.f32.mrb[22].mxu1 }
0x1244   :  { %v1484_v63 = vpop.f32.mrb[23].mxu1  ;;  %v1527_v0 = vsel %vm839_vm7, %v5474_v55, -inf }
0x1245   :  { %1528 = vmax.xlane.f32.xlu0 %v1527_v0 }
0x1249   :  { %v1520_v6 = vpop.f32.mrb[24].mxu1 }
0x124a   :  { %v1583_v7 = vrot.slane %v1520_v6, %v5056_v26  ;;  %v4348_v10 = vpop.f32.mrb[25].mxu1 }
0x124b   :  { %v1523_v11 = vpop.f32.mrb[26].mxu1 }
0x124c   :  { %v1584_v17 = vcombine.high %v1583_v7, %v1583_v7  ;;  %v1591_v18 = vrot.slane %v1583_v7, %v5056_v26  ;;  %v4349_v22 = vpop.f32.mrb[27].mxu1 }
0x124e   :  { %v1598_v23 = vrot.slane %v1584_v17, %v5056_v26  ;;  %v1602_v24 = vrot.slane %v1591_v18, %v5063_v32 }
0x1250   :  { %v1606_v19 = vrot.slane %v1598_v23, %v5063_v32  ;;  %v1609_v3 = vadd.f32 %v1602_v24, %v5066_v37 }
0x1252   :  { %v1610_v29 = vadd.f32 %v1606_v19, %v5071_v42  ;;  %4628 = vtanh.f32 %v1609_v3 }
0x1254   :  { %4630 = vtanh.f32 %v1610_v29 }
0x125c   :  { %v4629_v4 = vpop.eup %4628 }
0x125d   :  { %v1613_v33 = vmul.f32 %v5490_v31, %v4629_v4 }
0x125e   :  { %v4631_v45 = vpop.eup %4630 }
0x125f   :  { %v1615_v34 = vsel %vm73_vm1, %v1613_v33, 0.0  ;;  %v1614_v28 = vmul.f32 %v5490_v31, %v4631_v45 }
0x1260   :  { %1616 = vadd.xlane.f32.xlu1 %v1615_v34 }
0x1261   :  { %v1618_v27 = vsel %vm73_vm1, %v1614_v28, 0.0 }
0x1264   :  { %1619 = vadd.xlane.f32.xlu1 %v1618_v27 }
0x12d2   :  { %v5496_v41 = vpop.xlane.xlu0 %1528 }
0x12d3   :  { %vm1555_vm4 = vcmp.ge.f32.partialorder %v5474_v55, %v5496_v41 }
0x12d4   :  { %v1556_v43 = vsel %vm1555_vm4, %v5116_v60, 128 }
0x12d5   :  { %v1557_v46 = vsel %vm839_vm7, %v1556_v43, 2147483647 }
0x12d6   :  { %v1559_v48 = vshra.s32 %v1557_v46, 16  ;;  %v1558_v7 = vand.u32 65535, %v1557_v46 }
0x12d8   :  { %v1561_v8 = vcvt.s32.f32 %v1559_v48  ;;  %v1560_v11 = vcvt.s32.f32 %v1558_v7 }
0x12da   :  { %1562 = vmin.xlane.f32.xlu1 %v1561_v8 }
0x12ed   :  { %v1617_v49 = vpop.xlane.xlu1 %1616 }
0x12ee   :  { %v1626_v58 = vrot.slane %v1617_v49, %v5120_v62 }
0x12f1   :  { %v1620_v54 = vpop.xlane.xlu1 %1619 }
0x12f2   :  { %v1630_v63 = vrot.slane %v1620_v54, %v5120_v62 }
0x12f4   :  { %v1631_v0 = vsel %vm593_vm2, %v1630_v63, %v1626_v58 }
0x12f5   :  { %v1633_v6 = vsel %vm596_vm3, %v1631_v0, -inf }
0x12f6   :  { %1634 = vmax.xlane.f32.xlu1 %v1633_v6 }
0x1367   :  { %v1563_v10 = vpop.xlane.xlu1 %1562 }
0x1368   :  { %vm1564_vm5 = vcmp.eq.f32.partialorder %v1561_v8, %v1563_v10  ;;  %v1569_v45 = vcvt.f32.s32 %v1563_v10 }
0x1369   :  { %v1565_v17 = vsel %vm1564_vm5, %v1560_v11, inf }
0x136a   :  { %1566 = vmin.xlane.f32.xlu1 %v1565_v17  ;;  %v1570_v28 = vshll.u32 %v1569_v45, 16 }
0x1383   :  { %v1635_v18 = vpop.xlane.xlu1 %1634 }
0x1384   :  { %v1640_v22 = vrot.slane %v1635_v18, %v5063_v32  ;;  %v1644_v23 = vrot.slane %v1635_v18, %v5145_v16 }
0x1386   :  { %v1647_v24 = vsub.f32 %v1617_v49, %v1640_v22  ;;  %v1648_v19 = vsub.f32 %v1620_v54, %v1644_v23 }
0x1388   :  { %v1649_v3 = vmul.f32 1.442695, %v1647_v24  ;;  %v1651_v29 = vmul.f32 1.442695, %v1648_v19 }
0x138a   :  { %4632 = vpow2.f32 %v1649_v3 }
0x138b   :  { %4634 = vpow2.f32 %v1651_v29 }
0x1394   :  { %v4633_v4 = vpop.eup %4632 }
0x1395   :  { %v4635_v33 = vpop.eup %4634  ;;  %1656 = vperm.xlu1 %4550, %v4633_v4  }
0x1396   :  { %1659 = vperm.xlu0 %4551, %v4635_v33  }
0x13f7   :  { %v1567_v34 = vpop.xlane.xlu1 %1566 }
0x13f8   :  { %v1568_v27 = vcvt.f32.s32 %v1567_v34 }
0x13fa   :  { %v1571_v43 = vadd.s32 %v1570_v28, %v1568_v27 }
0x13fc   :  { %vm1572_vm8 = vcmp.eq.s32.totalorder %v5116_v60, %v1571_v43 }
0x13fd   :  { %vm4038_vm9 = vmpackc.low %vm1572_vm8, %vm1572_vm8 }
0x13fe   :  { %4367 = vmatmul.mubr.msk.bf16.vlgmr.msra.gmra.mrb[28].mxu1 %vm4038_vm9, %v4886_v61 }
0x13ff   :  { %2134 = vmatpush1.bf16.msra.mxu1 %v5389_v12  ;;  %2165 = vmatprep.mubr.bf16.mxu1 %v6239_v2 }
0x1400   :  { %2135 = vmatprep.subr.bf16.mxu1 %v5396_v14 }
0x1403   :  { %2136 = vmatpush1.bf16.msra.mxu1 %v5402_v15 }
0x1404   :  { %4398 = vmatprep.subr.bf16.mxu1 %v4883_v5 }
0x1414   :  { %v1657_v46 = vpop.permute.xlu1 %1656 }
0x1415   :  { %v1660_v48 = vpop.permute.xlu0 %1659  ;;  %v1664_v8 = vrot.slane %v1657_v46, %v5120_v62 }
0x1416   :  { %v1668_v49 = vrot.slane %v1660_v48, %v5120_v62 }
0x1418   :  { %v1669_v54 = vsel %vm593_vm2, %v1668_v49, %v1664_v8 }
0x1419   :  { %v1671_v58 = vsel %vm596_vm3, %v1669_v54, 0.0 }
0x141a   :  { %1672 = vadd.xlane.f32.xlu1 %v1671_v58 }
0x14a7   :  { %v1673_v63 = vpop.xlane.xlu1 %1672 }
0x14a8   :  { %4636 = vrcp.f32 %v1673_v63 }
0x14b2   :  { %v4637_v0 = vpop.eup %4636 }
0x14b3   :  { %v1679_v6 = vrot.slane %v4637_v0, %v5063_v32  ;;  %v1683_v10 = vrot.slane %v4637_v0, %v5145_v16 }
0x14b5   :  { %v1686_v7 = vmul.f32 %v4633_v4, %v1679_v6  ;;  %v1687_v11 = vmul.f32 %v4635_v33, %v1683_v10 }
0x14b7   :  { %1690 = vperm.xlu0 %4551, %v1686_v7  }
0x14bb   :  { %1695 = vperm.xlu0 %4551, %v1687_v11  }
0x14d1   :  { %v1750_v17 = vpop.f32.mrb[28].mxu1 }
0x14d2   :  { %v4368_v18 = vpop.f32.mrb[29].mxu1 }
0x14d3   :  { %v1753_v22 = vpop.f32.mrb[30].mxu1 }
0x14d4   :  { %v4369_v23 = vpop.f32.mrb[31].mxu1 }
0x1536   :  { %v1691_v24 = vpop.permute.xlu0 %1690 }
0x1537   :  { %v1698_v19 = vmul.f32 %v1691_v24, %v5155_v21  ;;  %v1889_v34 = vrot.slane %v1691_v24, %v5120_v62 }
0x1539   :  { %v1700_v3 = vrot.slane %v1698_v19, 4 }
0x153a   :  { %v1696_v29 = vpop.permute.xlu0 %1695 }
0x153b   :  { %v1701_v45 = vadd.f32 %v1700_v3, %v1698_v19  ;;  %v1699_v28 = vmul.f32 %v1696_v29, %v5157_v30  ;;  %v1893_v4 = vrot.slane %v1696_v29, %v5120_v62 }
0x153d   :  { %v1702_v27 = vrot.slane %v1701_v45, 2  ;;  %v1706_v43 = vrot.slane %v1699_v28, 4  ;;  %v1894_v33 = vsel %vm593_vm2, %v1893_v4, %v1889_v34 }
0x153e   :  { %v1896_v46 = vsel %vm864_vm6, %v1894_v33, 0.0 }
0x153f   :  { %v1703_v48 = vadd.f32 %v1702_v27, %v1701_v45  ;;  %v1707_v8 = vadd.f32 %v1706_v43, %v1699_v28  ;;  %4043 = vst [vmem:[%s6236_s13 + $0x6] sm:$0x3] %v1896_v46 }
0x1541   :  { %v1708_v49 = vrot.slane %v1707_v8, 2  ;;  %v1704_v54 = vrot.slane %v1703_v48, 1 }
0x1543   :  { %v1709_v58 = vadd.f32 %v1708_v49, %v1707_v8  ;;  %v1705_v0 = vadd.f32 %v1704_v54, %v1703_v48 }
0x1545   :  { %v1710_v63 = vrot.slane %v1709_v58, 1 }
0x1547   :  { %v1711_v6 = vadd.f32 %v1710_v63, %v1709_v58 }
0x1549   :  { %v1714_v7 = vsel %vm593_vm2, %v1711_v6, %v1705_v0 }
0x154a   :  { %v1751_v10 = vadd.f32 %v1750_v17, %v1714_v7 }
0x154c   :  { %v1756_v11 = vadd.f32 %v1751_v10, %v5476_v56 }
0x154e   :  { %v1757_v18 = vadd.f32 %v5223_v9, %v1756_v11 }
0x1550   :  { %4638 = vtanh.f32 %v1757_v18  ;;  %v4040_v23 = vmul.f32 -1.442695, %v1757_v18 }
0x1552   :  { %4640 = vpow2.f32 %v4040_v23 }
0x155a   :  { %v4639_v22 = vpop.eup %4638 }
0x155b   :  { %1767 = vrot.lane.b32.xlu0 %v4639_v22, %s4888_s17 }
0x155c   :  { %v4641_v24 = vpop.eup %4640 }
0x155d   :  { %v1761_v19 = vadd.f32 1.0, %v4641_v24 }
0x155f   :  { %4642 = vrcp.f32 %v1761_v19 }
0x1569   :  { %v4643_v3 = vpop.eup %4642 }
0x156a   :  { %v1765_v17 = vmul.f32 %v4643_v3, %v5427_v25 }
0x15cd   :  { %v1768_v29 = vpop.permute.xlu0 %1767 }
0x15ce   :  { %v1770_v45 = vmul.f32 %v4643_v3, %v1768_v29 }
0x15d0   :  { %1772 = vrot.lane.b32.xlu0 %v1770_v45, %s4887_s29 }
0x1642   :  { %v1773_v34 = vpop.permute.xlu0 %1772 }
0x1643   :  { %v5536_v56 = vadd.f32 %v1773_v34, %v1765_v17 }
0x1645   :  { %4644 = vtanh.f32 %v5536_v56 }
0x164f   :  { %v4645_v9 = vpop.eup %4644 }
0x1650   :  { %1778 = vrot.lane.b32.xlu0 %v4645_v9, %s4888_s17 }
0x16c2   :  { %v1779_v28 = vpop.permute.xlu0 %1778 }
0x16c3   :  { %v1781_v4 = vmul.f32 %v4643_v3, %v1779_v28 }
0x16c5   :  { %v1782_v27 = vpack.c.bf16 %v1781_v4, %v1781_v4 }
0x16c7   :  { %1784 = vrot.lane.b32.xlu0 %v1782_v27, %s4887_s29 }
0x1739   :  { %v1785_v43 = vpop.permute.xlu0 %1784 }
0x173a   :  { %4041 = vmatmul.mubr.msk.bf16.vlgmr.msra.gmra.mrb[40].mxu0 %vm73_vm1, %v1785_v43 }
0x173b   :  { %4371 = vmatpush3.bf16.msra.mxu0 %v5436_v40  ;;  %4374 = vmatprep.mubr.msk.bf16.mxu0 %vm4884_vm0, %v4883_v5 }
0x173c   :  { %4372 = vmatprep.subr.bf16.mxu0 %v4883_v5 }
0x173f   :  { %4373 = vmatpush3.bf16.msra.mxu0 %v5445_v50 }
0x1740   :  { %4378 = vmatprep.subr.bf16.mxu0 %v4883_v5 }
0x1742   :  { %4375 = vmatmul.mubr.msk.bf16.vlgmr.msra.gmra.mrb[44].mxu0 %vm73_vm1, %v1785_v43 }
0x1743   :  { %4379 = vmatpush3.bf16.msra.mxu0 %v5161_v39  ;;  %4394 = vmatprep.mubr.msk.bf16.mxu0 %vm4884_vm0, %v4883_v5 }
0x1744   :  { %4380 = vmatprep.subr.bf16.mxu0 %v4883_v5 }
0x1747   :  { %4381 = vmatpush3.bf16.msra.mxu0 %v5159_v36 }
0x1748   :  { %4382 = vmatprep.subr.bf16.mxu0 %v4883_v5 }
0x174b   :  { %4383 = vmatpush3.bf16.msra.mxu0 %v5167_v47 }
0x174c   :  { %4384 = vmatprep.subr.bf16.mxu0 %v4883_v5 }
0x174f   :  { %4385 = vmatpush3.bf16.msra.mxu0 %v5165_v44 }
0x1750   :  { %4386 = vmatprep.subr.bf16.mxu0 %v4883_v5 }
0x1753   :  { %4387 = vmatpush3.bf16.msra.mxu0 %v5177_v53 }
0x1754   :  { %4388 = vmatprep.subr.bf16.mxu0 %v4883_v5 }
0x1757   :  { %4389 = vmatpush3.bf16.msra.mxu0 %v5175_v51 }
0x1758   :  { %4390 = vmatprep.subr.bf16.mxu0 %v4883_v5 }
0x175b   :  { %4391 = vmatpush3.bf16.msra.mxu0 %v5185_v59 }
0x175c   :  { %4392 = vmatprep.subr.bf16.mxu0 %v4883_v5 }
0x175f   :  { %4393 = vmatpush3.bf16.msra.mxu0 %v5182_v57 }
0x1760   :  { %2477 = vmatprep.subr.bf16.mxu0 %v5470_v52 }
0x180d   :  { %v1823_v25 = vpop.f32.mrb[40].mxu0 }
0x180e   :  { %v5568_v33 = vadd.f32 %v5263_v35, %v1823_v25  ;;  %v5570_v46 = vpop.f32.mrb[41].mxu0 }
0x180f   :  { %v1827_v48 = vpop.f32.mrb[42].mxu0 }
0x1810   :  { %v1828_v8 = vpop.f32.mrb[43].mxu0  ;;  %v1871_v49 = vsel %vm839_vm7, %v5568_v33, -inf }
0x1811   :  { %1872 = vmax.xlane.f32.xlu0 %v1871_v49 }
0x1815   :  { %v1864_v54 = vpop.f32.mrb[44].mxu0 }
0x1816   :  { %v1927_v58 = vrot.slane %v1864_v54, %v5056_v26  ;;  %v4376_v63 = vpop.f32.mrb[45].mxu0 }
0x1817   :  { %v1867_v0 = vpop.f32.mrb[46].mxu0 }
0x1818   :  { %v1928_v6 = vcombine.high %v1927_v58, %v1927_v58  ;;  %v1935_v7 = vrot.slane %v1927_v58, %v5056_v26  ;;  %v4377_v10 = vpop.f32.mrb[47].mxu0 }
0x181a   :  { %v1942_v35 = vrot.slane %v1928_v6, %v5056_v26  ;;  %v1946_v11 = vrot.slane %v1935_v7, %v5063_v32 }
0x181c   :  { %v1950_v18 = vrot.slane %v1942_v35, %v5063_v32  ;;  %v1953_v22 = vadd.f32 %v1946_v11, %v5066_v37 }
0x181e   :  { %v1954_v23 = vadd.f32 %v1950_v18, %v5071_v42  ;;  %4646 = vtanh.f32 %v1953_v22 }
0x1820   :  { %4648 = vtanh.f32 %v1954_v23 }
0x1828   :  { %v4647_v24 = vpop.eup %4646 }
0x1829   :  { %v1957_v19 = vmul.f32 %v5490_v31, %v4647_v24 }
0x182a   :  { %v4649_v3 = vpop.eup %4648 }
0x182b   :  { %v1959_v29 = vsel %vm73_vm1, %v1957_v19, 0.0  ;;  %v1958_v45 = vmul.f32 %v5490_v31, %v4649_v3 }
0x182c   :  { %1960 = vadd.xlane.f32.xlu1 %v1959_v29 }
0x182d   :  { %v1962_v17 = vsel %vm73_vm1, %v1958_v45, 0.0 }
0x1830   :  { %1963 = vadd.xlane.f32.xlu1 %v1962_v17 }
0x189e   :  { %v5585_v34 = vpop.xlane.xlu0 %1872 }
0x189f   :  { %vm1899_vm10 = vcmp.ge.f32.partialorder %v5568_v33, %v5585_v34 }
0x18a0   :  { %v1900_v9 = vsel %vm1899_vm10, %v5116_v60, 128 }
0x18a1   :  { %v1901_v28 = vsel %vm839_vm7, %v1900_v9, 2147483647 }
0x18a2   :  { %v1903_v4 = vshra.s32 %v1901_v28, 16  ;;  %v1902_v58 = vand.u32 65535, %v1901_v28 }
0x18a4   :  { %v1905_v27 = vcvt.s32.f32 %v1903_v4  ;;  %v1904_v0 = vcvt.s32.f32 %v1902_v58 }
0x18a6   :  { %1906 = vmin.xlane.f32.xlu1 %v1905_v27 }
0x18b9   :  { %v1961_v43 = vpop.xlane.xlu1 %1960 }
0x18ba   :  { %v1970_v48 = vrot.slane %v1961_v43, %v5120_v62 }
0x18bd   :  { %v1964_v25 = vpop.xlane.xlu1 %1963 }
0x18be   :  { %v1974_v8 = vrot.slane %v1964_v25, %v5120_v62 }
0x18c0   :  { %v1975_v49 = vsel %vm593_vm2, %v1974_v8, %v1970_v48 }
0x18c1   :  { %v1977_v54 = vsel %vm596_vm3, %v1975_v49, -inf }
0x18c2   :  { %1978 = vmax.xlane.f32.xlu1 %v1977_v54 }
0x1933   :  { %v1907_v63 = vpop.xlane.xlu1 %1906 }
0x1934   :  { %vm1908_vm11 = vcmp.eq.f32.partialorder %v1905_v27, %v1907_v63  ;;  %v1913_v3 = vcvt.f32.s32 %v1907_v63 }
0x1935   :  { %v1909_v6 = vsel %vm1908_vm11, %v1904_v0, inf }
0x1936   :  { %1910 = vmin.xlane.f32.xlu1 %v1909_v6  ;;  %v1914_v45 = vshll.u32 %v1913_v3, 16 }
0x194f   :  { %v1979_v7 = vpop.xlane.xlu1 %1978 }
0x1950   :  { %v1984_v10 = vrot.slane %v1979_v7, %v5063_v32  ;;  %v1988_v35 = vrot.slane %v1979_v7, %v5145_v16 }
0x1952   :  { %v1991_v11 = vsub.f32 %v1961_v43, %v1984_v10  ;;  %v1992_v18 = vsub.f32 %v1964_v25, %v1988_v35 }
0x1954   :  { %v1993_v22 = vmul.f32 1.442695, %v1991_v11  ;;  %v1995_v23 = vmul.f32 1.442695, %v1992_v18 }
0x1956   :  { %4650 = vpow2.f32 %v1993_v22 }
0x1957   :  { %4652 = vpow2.f32 %v1995_v23 }
0x1960   :  { %v4651_v24 = vpop.eup %4650 }
0x1961   :  { %v4653_v19 = vpop.eup %4652  ;;  %2000 = vperm.xlu1 %4550, %v4651_v24  }
0x1962   :  { %2003 = vperm.xlu0 %4551, %v4653_v19  }
0x19c3   :  { %v1911_v29 = vpop.xlane.xlu1 %1910 }
0x19c4   :  { %v1912_v17 = vcvt.f32.s32 %v1911_v29 }
0x19c6   :  { %v1915_v9 = vadd.s32 %v1914_v45, %v1912_v17 }
0x19c8   :  { %vm1916_vm12 = vcmp.eq.s32.totalorder %v5116_v60, %v1915_v9 }
0x19c9   :  { %vm4045_vm13 = vmpackc.low %vm1916_vm12, %vm1916_vm12 }
0x19ca   :  { %4395 = vmatmul.mubr.msk.bf16.vlgmr.msra.gmra.mrb[48].mxu0 %vm4045_vm13, %v4886_v61 }
0x19cb   :  { %2478 = vmatpush1.bf16.msra.mxu0 %v5389_v12  ;;  %2509 = vmatprep.mubr.bf16.mxu0 %v6239_v2 }
0x19cc   :  { %2479 = vmatprep.subr.bf16.mxu0 %v5396_v14 }
0x19cf   :  { %2480 = vmatpush1.bf16.msra.mxu0 %v5402_v15 }
0x19d0   :  { %4426 = vmatprep.subr.bf16.mxu0 %v4883_v5 }
0x19e0   :  { %v2001_v28 = vpop.permute.xlu1 %2000 }
0x19e1   :  { %v2004_v4 = vpop.permute.xlu0 %2003  ;;  %v2008_v27 = vrot.slane %v2001_v28, %v5120_v62 }
0x19e2   :  { %v2012_v43 = vrot.slane %v2004_v4, %v5120_v62 }
0x19e4   :  { %v2013_v25 = vsel %vm593_vm2, %v2012_v43, %v2008_v27 }
0x19e5   :  { %v2015_v48 = vsel %vm596_vm3, %v2013_v25, 0.0 }
0x19e6   :  { %2016 = vadd.xlane.f32.xlu1 %v2015_v48 }
0x1a73   :  { %v2017_v8 = vpop.xlane.xlu1 %2016 }
0x1a74   :  { %4654 = vrcp.f32 %v2017_v8 }
0x1a7e   :  { %v4655_v49 = vpop.eup %4654 }
0x1a7f   :  { %v2023_v54 = vrot.slane %v4655_v49, %v5063_v32  ;;  %v2027_v63 = vrot.slane %v4655_v49, %v5145_v16 }
0x1a81   :  { %v2030_v58 = vmul.f32 %v4651_v24, %v2023_v54  ;;  %v2031_v0 = vmul.f32 %v4653_v19, %v2027_v63 }
0x1a83   :  { %2034 = vperm.xlu0 %4551, %v2030_v58  }
0x1a87   :  { %2039 = vperm.xlu0 %4551, %v2031_v0  }
0x1a9d   :  { %v2094_v6 = vpop.f32.mrb[48].mxu0 }
0x1a9e   :  { %v4396_v7 = vpop.f32.mrb[49].mxu0 }
0x1a9f   :  { %v2097_v10 = vpop.f32.mrb[50].mxu0  ;;  %v5624_v7 = vld [vmem:[%s6233_s10] ss:$0 sm:$0xff] }
0x1aa0   :  { %v4397_v35 = vpop.f32.mrb[51].mxu0 }
0x1b02   :  { %v2035_v11 = vpop.permute.xlu0 %2034 }
0x1b03   :  { %v2042_v18 = vmul.f32 %v2035_v11, %v5155_v21  ;;  %v2233_v29 = vrot.slane %v2035_v11, %v5120_v62 }
0x1b05   :  { %v2044_v22 = vrot.slane %v2042_v18, 4 }
0x1b06   :  { %v2040_v23 = vpop.permute.xlu0 %2039 }
0x1b07   :  { %v2045_v3 = vadd.f32 %v2044_v22, %v2042_v18  ;;  %v2043_v45 = vmul.f32 %v2040_v23, %v5157_v30  ;;  %v2237_v24 = vrot.slane %v2040_v23, %v5120_v62 }
0x1b09   :  { %v2046_v17 = vrot.slane %v2045_v3, 2  ;;  %v2050_v9 = vrot.slane %v2043_v45, 4  ;;  %v2238_v19 = vsel %vm593_vm2, %v2237_v24, %v2233_v29 }
0x1b0a   :  { %v2240_v28 = vsel %vm864_vm6, %v2238_v19, 0.0 }
0x1b0b   :  { %v2047_v4 = vadd.f32 %v2046_v17, %v2045_v3  ;;  %v2051_v27 = vadd.f32 %v2050_v9, %v2043_v45  ;;  %4050 = vst [vmem:[%s6236_s13 + $0x8] sm:$0x3] %v2240_v28 }
0x1b0d   :  { %v2052_v43 = vrot.slane %v2051_v27, 2  ;;  %v2048_v25 = vrot.slane %v2047_v4, 1 }
0x1b0f   :  { %v2053_v48 = vadd.f32 %v2052_v43, %v2051_v27  ;;  %v2049_v49 = vadd.f32 %v2048_v25, %v2047_v4  ;;  %v5664_v4 = vld [vmem:[%s6234_s11] ss:$0 sm:$0xff] }
0x1b11   :  { %v2054_v8 = vrot.slane %v2053_v48, 1 }
0x1b13   :  { %v2055_v54 = vadd.f32 %v2054_v8, %v2053_v48 }
0x1b15   :  { %v2058_v58 = vsel %vm593_vm2, %v2055_v54, %v2049_v49 }
0x1b16   :  { %v2095_v63 = vadd.f32 %v2094_v6, %v2058_v58 }
0x1b18   :  { %v2100_v0 = vadd.f32 %v2095_v63, %v5570_v46 }
0x1b1a   :  { %v2101_v10 = vadd.f32 %v5624_v7, %v2100_v0 }
0x1b1c   :  { %4656 = vtanh.f32 %v2101_v10  ;;  %v4047_v11 = vmul.f32 -1.442695, %v2101_v10 }
0x1b1e   :  { %4658 = vpow2.f32 %v4047_v11 }
0x1b26   :  { %v4657_v35 = vpop.eup %4656 }
0x1b27   :  { %2111 = vrot.lane.b32.xlu0 %v4657_v35, %s4888_s17 }
0x1b28   :  { %v4659_v18 = vpop.eup %4658 }
0x1b29   :  { %v2105_v22 = vadd.f32 1.0, %v4659_v18 }
0x1b2b   :  { %4660 = vrcp.f32 %v2105_v22 }
0x1b35   :  { %v4661_v23 = vpop.eup %4660 }
0x1b36   :  { %v2109_v46 = vmul.f32 %v4661_v23, %v5536_v56 }
0x1b99   :  { %v2112_v6 = vpop.permute.xlu0 %2111 }
0x1b9a   :  { %v2114_v3 = vmul.f32 %v4661_v23, %v2112_v6 }
0x1b9c   :  { %2116 = vrot.lane.b32.xlu0 %v2114_v3, %s4887_s29 }
0x1c0e   :  { %v2117_v29 = vpop.permute.xlu0 %2116 }
0x1c0f   :  { %v5630_v45 = vadd.f32 %v2117_v29, %v2109_v46 }
0x1c11   :  { %4662 = vtanh.f32 %v5630_v45 }
0x1c1b   :  { %v4663_v24 = vpop.eup %4662 }
0x1c1c   :  { %2122 = vrot.lane.b32.xlu0 %v4663_v24, %s4888_s17 }
0x1c8e   :  { %v2123_v17 = vpop.permute.xlu0 %2122 }
0x1c8f   :  { %v2125_v9 = vmul.f32 %v4661_v23, %v2123_v17 }
0x1c91   :  { %v2126_v19 = vpack.c.bf16 %v2125_v9, %v2125_v9 }
0x1c93   :  { %2128 = vrot.lane.b32.xlu0 %v2126_v19, %s4887_s29 }
0x1d05   :  { %v2129_v28 = vpop.permute.xlu0 %2128 }
0x1d06   :  { %4048 = vmatmul.mubr.msk.bf16.vlgmr.msra.gmra.mrb[32].mxu1 %vm73_vm1, %v2129_v28 }
0x1d07   :  { %4399 = vmatpush3.bf16.msra.mxu1 %v5436_v40  ;;  %4402 = vmatprep.mubr.msk.bf16.mxu1 %vm4884_vm0, %v4883_v5 }
0x1d08   :  { %4400 = vmatprep.subr.bf16.mxu1 %v4883_v5 }
0x1d0b   :  { %4401 = vmatpush3.bf16.msra.mxu1 %v5445_v50 }
0x1d0c   :  { %4406 = vmatprep.subr.bf16.mxu1 %v4883_v5 }
0x1d0e   :  { %4403 = vmatmul.mubr.msk.bf16.vlgmr.msra.gmra.mrb[36].mxu1 %vm73_vm1, %v2129_v28 }
0x1d0f   :  { %4407 = vmatpush3.bf16.msra.mxu1 %v5161_v39  ;;  %4422 = vmatprep.mubr.msk.bf16.mxu1 %vm4884_vm0, %v4883_v5 }
0x1d10   :  { %4408 = vmatprep.subr.bf16.mxu1 %v4883_v5 }
0x1d13   :  { %4409 = vmatpush3.bf16.msra.mxu1 %v5159_v36 }
0x1d14   :  { %4410 = vmatprep.subr.bf16.mxu1 %v4883_v5 }
0x1d17   :  { %4411 = vmatpush3.bf16.msra.mxu1 %v5167_v47 }
0x1d18   :  { %4412 = vmatprep.subr.bf16.mxu1 %v4883_v5 }
0x1d1b   :  { %4413 = vmatpush3.bf16.msra.mxu1 %v5165_v44 }
0x1d1c   :  { %4414 = vmatprep.subr.bf16.mxu1 %v4883_v5 }
0x1d1f   :  { %4415 = vmatpush3.bf16.msra.mxu1 %v5177_v53 }
0x1d20   :  { %4416 = vmatprep.subr.bf16.mxu1 %v4883_v5 }
0x1d23   :  { %4417 = vmatpush3.bf16.msra.mxu1 %v5175_v51 }
0x1d24   :  { %4418 = vmatprep.subr.bf16.mxu1 %v4883_v5 }
0x1d27   :  { %4419 = vmatpush3.bf16.msra.mxu1 %v5185_v59 }
0x1d28   :  { %4420 = vmatprep.subr.bf16.mxu1 %v4883_v5 }
0x1d2b   :  { %4421 = vmatpush3.bf16.msra.mxu1 %v5182_v57 }
0x1d2c   :  { %2821 = vmatprep.subr.bf16.mxu1 %v5470_v52 }
0x1dd9   :  { %v2167_v56 = vpop.f32.mrb[32].mxu1 }
0x1dda   :  { %v5667_v27 = vadd.f32 %v5664_v4, %v2167_v56  ;;  %v5669_v43 = vpop.f32.mrb[33].mxu1 }
0x1ddb   :  { %v2171_v25 = vpop.f32.mrb[34].mxu1 }
0x1ddc   :  { %v2172_v48 = vpop.f32.mrb[35].mxu1  ;;  %v2215_v8 = vsel %vm839_vm7, %v5667_v27, -inf }
0x1ddd   :  { %2216 = vmax.xlane.f32.xlu1 %v2215_v8 }
0x1de1   :  { %v2208_v49 = vpop.f32.mrb[36].mxu1 }
0x1de2   :  { %v2271_v54 = vrot.slane %v2208_v49, %v5056_v26  ;;  %v4404_v58 = vpop.f32.mrb[37].mxu1 }
0x1de3   :  { %v2211_v63 = vpop.f32.mrb[38].mxu1 }
0x1de4   :  { %v2272_v0 = vcombine.high %v2271_v54, %v2271_v54  ;;  %v2279_v10 = vrot.slane %v2271_v54, %v5056_v26  ;;  %v4405_v35 = vpop.f32.mrb[39].mxu1 }
0x1de6   :  { %v2286_v11 = vrot.slane %v2272_v0, %v5056_v26  ;;  %v2290_v18 = vrot.slane %v2279_v10, %v5063_v32 }
0x1de8   :  { %v2294_v22 = vrot.slane %v2286_v11, %v5063_v32  ;;  %v2297_v23 = vadd.f32 %v2290_v18, %v5066_v37 }
0x1dea   :  { %v2298_v6 = vadd.f32 %v2294_v22, %v5071_v42  ;;  %4664 = vtanh.f32 %v2297_v23 }
0x1dec   :  { %4666 = vtanh.f32 %v2298_v6 }
0x1df4   :  { %v4665_v3 = vpop.eup %4664 }
0x1df5   :  { %v2301_v46 = vmul.f32 %v5490_v31, %v4665_v3 }
0x1df6   :  { %v4667_v29 = vpop.eup %4666 }
0x1df7   :  { %v2303_v24 = vsel %vm73_vm1, %v2301_v46, 0.0  ;;  %v2302_v17 = vmul.f32 %v5490_v31, %v4667_v29 }
0x1df8   :  { %2304 = vadd.xlane.f32.xlu0 %v2303_v24 }
0x1df9   :  { %v2306_v9 = vsel %vm73_vm1, %v2302_v17, 0.0 }
0x1dfa   :  { %2307 = vadd.xlane.f32.xlu1 %v2306_v9 }
0x1e6a   :  { %v5684_v19 = vpop.xlane.xlu1 %2216 }
0x1e6b   :  { %vm2243_vm14 = vcmp.ge.f32.partialorder %v5667_v27, %v5684_v19 }
0x1e6c   :  { %v2244_v28 = vsel %vm2243_vm14, %v5116_v60, 128 }
0x1e6d   :  { %v2245_v56 = vsel %vm839_vm7, %v2244_v28, 2147483647 }
0x1e6e   :  { %v2247_v25 = vshra.s32 %v2245_v56, 16  ;;  %v2246_v10 = vand.u32 65535, %v2245_v56 }
0x1e70   :  { %v2249_v48 = vcvt.s32.f32 %v2247_v25  ;;  %v2248_v11 = vcvt.s32.f32 %v2246_v10 }
0x1e72   :  { %2250 = vmin.xlane.f32.xlu1 %v2249_v48 }
0x1e85   :  { %v2305_v8 = vpop.xlane.xlu0 %2304 }
0x1e86   :  { %v2314_v54 = vrot.slane %v2305_v8, %v5120_v62 }
0x1e87   :  { %v2308_v49 = vpop.xlane.xlu1 %2307 }
0x1e88   :  { %v2318_v58 = vrot.slane %v2308_v49, %v5120_v62 }
0x1e8a   :  { %v2319_v63 = vsel %vm593_vm2, %v2318_v58, %v2314_v54 }
0x1e8b   :  { %v2321_v0 = vsel %vm596_vm3, %v2319_v63, -inf }
0x1e8c   :  { %2322 = vmax.xlane.f32.xlu1 %v2321_v0 }
0x1eff   :  { %v2251_v35 = vpop.xlane.xlu1 %2250 }
0x1f00   :  { %vm2252_vm15 = vcmp.eq.f32.partialorder %v2249_v48, %v2251_v35  ;;  %v2257_v28 = vcvt.f32.s32 %v2251_v35 }
0x1f01   :  { %v2253_v18 = vsel %vm2252_vm15, %v2248_v11, inf }
0x1f02   :  { %2254 = vmin.xlane.f32.xlu1 %v2253_v18  ;;  %v2258_v25 = vshll.u32 %v2257_v28, 16 }
0x1f19   :  { %v2323_v22 = vpop.xlane.xlu1 %2322 }
0x1f1a   :  { %v2328_v23 = vrot.slane %v2323_v22, %v5063_v32  ;;  %v2332_v6 = vrot.slane %v2323_v22, %v5145_v16 }
0x1f1c   :  { %v2335_v3 = vsub.f32 %v2305_v8, %v2328_v23  ;;  %v2336_v46 = vsub.f32 %v2308_v49, %v2332_v6 }
0x1f1e   :  { %v2337_v29 = vmul.f32 1.442695, %v2335_v3  ;;  %v2339_v24 = vmul.f32 1.442695, %v2336_v46 }
0x1f20   :  { %4668 = vpow2.f32 %v2337_v29 }
0x1f21   :  { %4670 = vpow2.f32 %v2339_v24 }
0x1f2a   :  { %v4669_v17 = vpop.eup %4668 }
0x1f2b   :  { %v4671_v9 = vpop.eup %4670  ;;  %2344 = vperm.xlu1 %4550, %v4669_v17  }
0x1f2c   :  { %2347 = vperm.xlu0 %4551, %v4671_v9  }
0x1f8f   :  { %v2255_v56 = vpop.xlane.xlu1 %2254 }
0x1f90   :  { %v2256_v48 = vcvt.f32.s32 %v2255_v56 }
0x1f92   :  { %v2259_v54 = vadd.s32 %v2258_v25, %v2256_v48 }
0x1f94   :  { %vm2260_vm4 = vcmp.eq.s32.totalorder %v5116_v60, %v2259_v54 }
0x1f95   :  { %vm4052_vm5 = vmpackc.low %vm2260_vm4, %vm2260_vm4 }
0x1f96   :  { %4423 = vmatmul.mubr.msk.bf16.vlgmr.msra.gmra.mrb[40].mxu1 %vm4052_vm5, %v4886_v61 }
0x1f97   :  { %2822 = vmatpush1.bf16.msra.mxu1 %v5389_v12  ;;  %2853 = vmatprep.mubr.bf16.mxu1 %v6239_v2 }
0x1f98   :  { %2823 = vmatprep.subr.bf16.mxu1 %v5396_v14 }
0x1f9b   :  { %2824 = vmatpush1.bf16.msra.mxu1 %v5402_v15 }
0x1f9c   :  { %4454 = vmatprep.subr.bf16.mxu1 %v4883_v5 }
0x1faa   :  { %v2345_v8 = vpop.permute.xlu1 %2344 }
0x1fab   :  { %v2348_v49 = vpop.permute.xlu0 %2347  ;;  %v2352_v58 = vrot.slane %v2345_v8, %v5120_v62 }
0x1fac   :  { %v2356_v63 = vrot.slane %v2348_v49, %v5120_v62 }
0x1fae   :  { %v2357_v0 = vsel %vm593_vm2, %v2356_v63, %v2352_v58 }
0x1faf   :  { %v2359_v10 = vsel %vm596_vm3, %v2357_v0, 0.0 }
0x1fb0   :  { %2360 = vadd.xlane.f32.xlu1 %v2359_v10 }
0x203d   :  { %v2361_v12 = vpop.xlane.xlu1 %2360 }
0x203e   :  { %4672 = vrcp.f32 %v2361_v12 }
0x2048   :  { %v4673_v35 = vpop.eup %4672 }
0x2049   :  { %v2367_v14 = vrot.slane %v4673_v35, %v5063_v32  ;;  %v2371_v15 = vrot.slane %v4673_v35, %v5145_v16 }
0x204b   :  { %v2374_v11 = vmul.f32 %v4669_v17, %v2367_v14  ;;  %v2375_v18 = vmul.f32 %v4671_v9, %v2371_v15 }
0x204d   :  { %2378 = vperm.xlu0 %4551, %v2374_v11  }
0x2051   :  { %2383 = vperm.xlu0 %4551, %v2375_v18  }
0x2069   :  { %v2438_v22 = vpop.f32.mrb[40].mxu1 }
0x206a   :  { %v4424_v23 = vpop.f32.mrb[41].mxu1 }
0x206b   :  { %v2441_v6 = vpop.f32.mrb[42].mxu1 }
0x206c   :  { %v4425_v3 = vpop.f32.mrb[43].mxu1 }
0x20cc   :  { %v2379_v46 = vpop.permute.xlu0 %2378 }
0x20cd   :  { %v2386_v29 = vmul.f32 %v2379_v46, %v5155_v21  ;;  %v2577_v25 = vrot.slane %v2379_v46, %v5120_v62 }
0x20cf   :  { %v2388_v24 = vrot.slane %v2386_v29, 4 }
0x20d0   :  { %v2384_v28 = vpop.permute.xlu0 %2383 }
0x20d1   :  { %v2389_v56 = vadd.f32 %v2388_v24, %v2386_v29  ;;  %v2387_v48 = vmul.f32 %v2384_v28, %v5157_v30  ;;  %v2581_v17 = vrot.slane %v2384_v28, %v5120_v62 }
0x20d3   :  { %v2390_v54 = vrot.slane %v2389_v56, 2  ;;  %v2394_v8 = vrot.slane %v2387_v48, 4  ;;  %v2582_v9 = vsel %vm593_vm2, %v2581_v17, %v2577_v25 }
0x20d4   :  { %v2584_v49 = vsel %vm864_vm6, %v2582_v9, 0.0 }
0x20d5   :  { %v2391_v58 = vadd.f32 %v2390_v54, %v2389_v56  ;;  %v2395_v63 = vadd.f32 %v2394_v8, %v2387_v48  ;;  %4057 = vst [vmem:[%s6236_s13 + $0xa] sm:$0x3] %v2584_v49 }
0x20d7   :  { %v2396_v0 = vrot.slane %v2395_v63, 2  ;;  %v2392_v10 = vrot.slane %v2391_v58, 1 }
0x20d9   :  { %v2397_v12 = vadd.f32 %v2396_v0, %v2395_v63  ;;  %v2393_v14 = vadd.f32 %v2392_v10, %v2391_v58 }
0x20db   :  { %v2398_v35 = vrot.slane %v2397_v12, 1 }
0x20dd   :  { %v2399_v11 = vadd.f32 %v2398_v35, %v2397_v12 }
0x20df   :  { %v2402_v15 = vsel %vm593_vm2, %v2399_v11, %v2393_v14 }
0x20e0   :  { %v2439_v18 = vadd.f32 %v2438_v22, %v2402_v15 }
0x20e2   :  { %v2444_v23 = vadd.f32 %v2439_v18, %v5669_v43 }
0x20e4   :  { %v2445_v6 = vadd.f32 %v5624_v7, %v2444_v23 }
0x20e6   :  { %4674 = vtanh.f32 %v2445_v6  ;;  %v4054_v46 = vmul.f32 -1.442695, %v2445_v6 }
0x20e8   :  { %4676 = vpow2.f32 %v4054_v46 }
0x20f0   :  { %v4675_v3 = vpop.eup %4674 }
0x20f1   :  { %2455 = vrot.lane.b32.xlu0 %v4675_v3, %s4888_s17 }
0x20f2   :  { %v4677_v29 = vpop.eup %4676 }
0x20f3   :  { %v2449_v24 = vadd.f32 1.0, %v4677_v29 }
0x20f5   :  { %4678 = vrcp.f32 %v2449_v24 }
0x20ff   :  { %v4679_v28 = vpop.eup %4678 }
0x2100   :  { %v2453_v22 = vmul.f32 %v4679_v28, %v5630_v45 }
0x2163   :  { %v2456_v56 = vpop.permute.xlu0 %2455 }
0x2164   :  { %v2458_v25 = vmul.f32 %v4679_v28, %v2456_v56 }
0x2166   :  { %2460 = vrot.lane.b32.xlu0 %v2458_v25, %s4887_s29 }
0x21d8   :  { %v2461_v48 = vpop.permute.xlu0 %2460 }
0x21d9   :  { %v5724_v43 = vadd.f32 %v2461_v48, %v2453_v22 }
0x21db   :  { %4680 = vtanh.f32 %v5724_v43 }
0x21e5   :  { %v4681_v17 = vpop.eup %4680 }
0x21e6   :  { %2466 = vrot.lane.b32.xlu0 %v4681_v17, %s4888_s17 }
0x2258   :  { %v2467_v54 = vpop.permute.xlu0 %2466 }
0x2259   :  { %v2469_v8 = vmul.f32 %v4679_v28, %v2467_v54 }
0x225b   :  { %v2470_v9 = vpack.c.bf16 %v2469_v8, %v2469_v8 }
0x225d   :  { %2472 = vrot.lane.b32.xlu1 %v2470_v9, %s4887_s29 }
0x22cf   :  { %v2473_v49 = vpop.permute.xlu1 %2472 }
0x22d0   :  { %4055 = vmatmul.mubr.msk.bf16.vlgmr.msra.gmra.mrb[52].mxu0 %vm73_vm1, %v2473_v49 }
0x22d1   :  { %4427 = vmatpush3.bf16.msra.mxu0 %v5436_v40  ;;  %4430 = vmatprep.mubr.msk.bf16.mxu0 %vm4884_vm0, %v4883_v5 }
0x22d2   :  { %4428 = vmatprep.subr.bf16.mxu0 %v4883_v5 }
0x22d5   :  { %4429 = vmatpush3.bf16.msra.mxu0 %v5445_v50 }
0x22d6   :  { %4434 = vmatprep.subr.bf16.mxu0 %v4883_v5 }
0x22d8   :  { %4431 = vmatmul.mubr.msk.bf16.vlgmr.msra.gmra.mrb[56].mxu0 %vm73_vm1, %v2473_v49 }
0x22d9   :  { %4435 = vmatpush3.bf16.msra.mxu0 %v5161_v39  ;;  %4450 = vmatprep.mubr.msk.bf16.mxu0 %vm4884_vm0, %v4883_v5 }
0x22da   :  { %4436 = vmatprep.subr.bf16.mxu0 %v4883_v5 }
0x22dd   :  { %4437 = vmatpush3.bf16.msra.mxu0 %v5159_v36 }
0x22de   :  { %4438 = vmatprep.subr.bf16.mxu0 %v4883_v5 }
0x22e1   :  { %4439 = vmatpush3.bf16.msra.mxu0 %v5167_v47 }
0x22e2   :  { %4440 = vmatprep.subr.bf16.mxu0 %v4883_v5 }
0x22e5   :  { %4441 = vmatpush3.bf16.msra.mxu0 %v5165_v44 }
0x22e6   :  { %4442 = vmatprep.subr.bf16.mxu0 %v4883_v5 }
0x22e9   :  { %4443 = vmatpush3.bf16.msra.mxu0 %v5177_v53 }
0x22ea   :  { %4444 = vmatprep.subr.bf16.mxu0 %v4883_v5 }
0x22ed   :  { %4445 = vmatpush3.bf16.msra.mxu0 %v5175_v51 }
0x22ee   :  { %4446 = vmatprep.subr.bf16.mxu0 %v4883_v5 }
0x22f1   :  { %4447 = vmatpush3.bf16.msra.mxu0 %v5185_v59 }
0x22f2   :  { %4448 = vmatprep.subr.bf16.mxu0 %v4883_v5 }
0x22f5   :  { %4449 = vmatpush3.bf16.msra.mxu0 %v5182_v57 }
0x22f6   :  { %3165 = vmatprep.subr.bf16.mxu0 %v5470_v52 }
0x23a3   :  { %v2511_v40 = vpop.f32.mrb[52].mxu0 }
0x23a4   :  { %v5756_v50 = vadd.f32 %v5664_v4, %v2511_v40  ;;  %v5758_v45 = vpop.f32.mrb[53].mxu0 }
0x23a5   :  { %v2515_v58 = vpop.f32.mrb[54].mxu0 }
0x23a6   :  { %v2516_v63 = vpop.f32.mrb[55].mxu0  ;;  %v2559_v0 = vsel %vm839_vm7, %v5756_v50, -inf }
0x23a7   :  { %2560 = vmax.xlane.f32.xlu0 %v2559_v0 }
0x23ab   :  { %v2552_v10 = vpop.f32.mrb[56].mxu0 }
0x23ac   :  { %v2615_v12 = vrot.slane %v2552_v10, %v5056_v26  ;;  %v4432_v35 = vpop.f32.mrb[57].mxu0 }
0x23ad   :  { %v2555_v14 = vpop.f32.mrb[58].mxu0 }
0x23ae   :  { %v2616_v11 = vcombine.high %v2615_v12, %v2615_v12  ;;  %v2623_v52 = vrot.slane %v2615_v12, %v5056_v26  ;;  %v4433_v15 = vpop.f32.mrb[59].mxu0 }
0x23b0   :  { %v2630_v18 = vrot.slane %v2616_v11, %v5056_v26  ;;  %v2634_v23 = vrot.slane %v2623_v52, %v5063_v32 }
0x23b2   :  { %v2638_v6 = vrot.slane %v2630_v18, %v5063_v32  ;;  %v2641_v3 = vadd.f32 %v2634_v23, %v5066_v37 }
0x23b4   :  { %v2642_v46 = vadd.f32 %v2638_v6, %v5071_v42  ;;  %4682 = vtanh.f32 %v2641_v3 }
0x23b6   :  { %4684 = vtanh.f32 %v2642_v46 }
0x23be   :  { %v4683_v29 = vpop.eup %4682 }
0x23bf   :  { %v2645_v24 = vmul.f32 %v5490_v31, %v4683_v29 }
0x23c0   :  { %v4685_v28 = vpop.eup %4684 }
0x23c1   :  { %v2647_v56 = vsel %vm73_vm1, %v2645_v24, 0.0  ;;  %v2646_v25 = vmul.f32 %v5490_v31, %v4685_v28 }
0x23c2   :  { %2648 = vadd.xlane.f32.xlu1 %v2647_v56 }
0x23c3   :  { %v2650_v22 = vsel %vm73_vm1, %v2646_v25, 0.0 }
0x23c4   :  { %2651 = vadd.xlane.f32.xlu0 %v2650_v22 }
0x2434   :  { %v5773_v48 = vpop.xlane.xlu0 %2560 }
0x2435   :  { %vm2587_vm8 = vcmp.ge.f32.partialorder %v5756_v50, %v5773_v48 }
0x2436   :  { %v2588_v17 = vsel %vm2587_vm8, %v5116_v60, 128 }
0x2437   :  { %v2589_v54 = vsel %vm839_vm7, %v2588_v17, 2147483647  ;;  %v5790_v17 = vld [vmem:[%s6232_s9] ss:$12 sps:$4 sm:$0xff]  }
0x2438   :  { %v2591_v8 = vshra.s32 %v2589_v54, 16  ;;  %v2590_v10 = vand.u32 65535, %v2589_v54  ;;  %v5797_v54 = vld [vmem:[%s6232_s9 + $0x1c] ss:$12 sps:$4 sm:$0xff]  }
0x243a   :  { %v2593_v9 = vcvt.s32.f32 %v2591_v8  ;;  %v2592_v35 = vcvt.s32.f32 %v2590_v10  ;;  %v5803_v8 = vld [vmem:[%s6232_s9 + $0x18] ss:$12 sps:$4 sm:$0xff]  }
0x243c   :  { %2594 = vmin.xlane.f32.xlu0 %v2593_v9 }
0x244f   :  { %v2649_v49 = vpop.xlane.xlu1 %2648 }
0x2450   :  { %v2658_v31 = vrot.slane %v2649_v49, %v5120_v62 }
0x2451   :  { %v2652_v40 = vpop.xlane.xlu0 %2651 }
0x2452   :  { %v2662_v58 = vrot.slane %v2652_v40, %v5120_v62 }
0x2454   :  { %v2663_v63 = vsel %vm593_vm2, %v2662_v58, %v2658_v31 }
0x2455   :  { %v2665_v0 = vsel %vm596_vm3, %v2663_v63, -inf }
0x2456   :  { %2666 = vmax.xlane.f32.xlu0 %v2665_v0 }
0x24c9   :  { %v2595_v12 = vpop.xlane.xlu0 %2594 }
0x24ca   :  { %vm2596_vm9 = vcmp.eq.f32.partialorder %v2593_v9, %v2595_v12  ;;  %v2601_v24 = vcvt.f32.s32 %v2595_v12 }
0x24cb   :  { %v2597_v14 = vsel %vm2596_vm9, %v2592_v35, inf }
0x24cc   :  { %2598 = vmin.xlane.f32.xlu0 %v2597_v14  ;;  %v2602_v56 = vshll.u32 %v2601_v24, 16 }
0x24e3   :  { %v2667_v11 = vpop.xlane.xlu0 %2666 }
0x24e4   :  { %v2672_v52 = vrot.slane %v2667_v11, %v5063_v32  ;;  %v2676_v15 = vrot.slane %v2667_v11, %v5145_v16 }
0x24e6   :  { %v2679_v18 = vsub.f32 %v2649_v49, %v2672_v52  ;;  %v2680_v23 = vsub.f32 %v2652_v40, %v2676_v15 }
0x24e8   :  { %v2681_v6 = vmul.f32 1.442695, %v2679_v18  ;;  %v2683_v3 = vmul.f32 1.442695, %v2680_v23 }
0x24ea   :  { %4686 = vpow2.f32 %v2681_v6 }
0x24eb   :  { %4688 = vpow2.f32 %v2683_v3 }
0x24f4   :  { %v4687_v46 = vpop.eup %4686 }
0x24f5   :  { %v4689_v29 = vpop.eup %4688  ;;  %2688 = vperm.xlu0 %4551, %v4687_v46  }
0x24f6   :  { %2691 = vperm.xlu1 %4550, %v4689_v29  }
0x2559   :  { %v2599_v28 = vpop.xlane.xlu0 %2598 }
0x255a   :  { %v2600_v25 = vcvt.f32.s32 %v2599_v28 }
0x255c   :  { %v2603_v22 = vadd.s32 %v2602_v56, %v2600_v25 }
0x255e   :  { %vm2604_vm10 = vcmp.eq.s32.totalorder %v5116_v60, %v2603_v22 }
0x255f   :  { %vm4059_vm11 = vmpackc.low %vm2604_vm10, %vm2604_vm10 }
0x2560   :  { %4451 = vmatmul.mubr.msk.bf16.vlgmr.msra.gmra.mrb[60].mxu0 %vm4059_vm11, %v4886_v61 }
0x2561   :  { %3166 = vmatpush1.bf16.msra.mxu0 %v5790_v17  ;;  %3197 = vmatprep.mubr.bf16.mxu0 %v6239_v2 }
0x2562   :  { %3167 = vmatprep.subr.bf16.mxu0 %v5797_v54 }
0x2565   :  { %3168 = vmatpush1.bf16.msra.mxu0 %v5803_v8 }
0x2566   :  { %4482 = vmatprep.subr.bf16.mxu0 %v4883_v5 }
0x2574   :  { %v2689_v9 = vpop.permute.xlu0 %2688 }
0x2575   :  { %v2692_v49 = vpop.permute.xlu1 %2691  ;;  %v2696_v40 = vrot.slane %v2689_v9, %v5120_v62 }
0x2576   :  { %v2700_v31 = vrot.slane %v2692_v49, %v5120_v62 }
0x2578   :  { %v2701_v58 = vsel %vm593_vm2, %v2700_v31, %v2696_v40 }
0x2579   :  { %v2703_v63 = vsel %vm596_vm3, %v2701_v58, 0.0 }
0x257a   :  { %2704 = vadd.xlane.f32.xlu1 %v2703_v63 }
0x2607   :  { %v2705_v0 = vpop.xlane.xlu1 %2704 }
0x2608   :  { %4690 = vrcp.f32 %v2705_v0 }
0x2612   :  { %v4691_v10 = vpop.eup %4690 }
0x2613   :  { %v2711_v12 = vrot.slane %v4691_v10, %v5063_v32  ;;  %v2715_v14 = vrot.slane %v4691_v10, %v5145_v16 }
0x2615   :  { %v2718_v35 = vmul.f32 %v4687_v46, %v2711_v12  ;;  %v2719_v11 = vmul.f32 %v4689_v29, %v2715_v14 }
0x2617   :  { %2722 = vperm.xlu0 %4551, %v2718_v35  }
0x261b   :  { %2727 = vperm.xlu0 %4551, %v2719_v11  }
0x2633   :  { %v2782_v52 = vpop.f32.mrb[60].mxu0 }
0x2634   :  { %v4452_v15 = vpop.f32.mrb[61].mxu0 }
0x2635   :  { %v2785_v18 = vpop.f32.mrb[62].mxu0 }
0x2636   :  { %v4453_v23 = vpop.f32.mrb[63].mxu0 }
0x2696   :  { %v2723_v6 = vpop.permute.xlu0 %2722 }
0x2697   :  { %v2730_v3 = vmul.f32 %v2723_v6, %v5155_v21  ;;  %v2921_v25 = vrot.slane %v2723_v6, %v5120_v62 }
0x2699   :  { %v2732_v24 = vrot.slane %v2730_v3, 4 }
0x269a   :  { %v2728_v28 = vpop.permute.xlu0 %2727 }
0x269b   :  { %v2733_v56 = vadd.f32 %v2732_v24, %v2730_v3  ;;  %v2731_v22 = vmul.f32 %v2728_v28, %v5157_v30  ;;  %v2925_v46 = vrot.slane %v2728_v28, %v5120_v62 }
0x269d   :  { %v2734_v9 = vrot.slane %v2733_v56, 2  ;;  %v2738_v49 = vrot.slane %v2731_v22, 4  ;;  %v2926_v29 = vsel %vm593_vm2, %v2925_v46, %v2921_v25 }
0x269e   :  { %v2928_v40 = vsel %vm864_vm6, %v2926_v29, 0.0 }
0x269f   :  { %v2735_v31 = vadd.f32 %v2734_v9, %v2733_v56  ;;  %v2739_v58 = vadd.f32 %v2738_v49, %v2731_v22  ;;  %4064 = vst [vmem:[%s6236_s13 + $0xc] sm:$0x3] %v2928_v40 }
0x26a1   :  { %v2740_v63 = vrot.slane %v2739_v58, 2  ;;  %v2736_v0 = vrot.slane %v2735_v31, 1 }
0x26a3   :  { %v2741_v10 = vadd.f32 %v2740_v63, %v2739_v58  ;;  %v2737_v35 = vadd.f32 %v2736_v0, %v2735_v31  ;;  %v5846_v58 = vld [vmem:[%s6232_s9 + $0x20] ss:$12 sps:$4 sm:$0xff]   ;;  %v5871_v63 = vld [vmem:[%s6232_s9 + $0x4] ss:$12 sps:$4 sm:$0xff]  }
0x26a5   :  { %v2742_v12 = vrot.slane %v2741_v10, 1 }
0x26a7   :  { %v2743_v14 = vadd.f32 %v2742_v12, %v2741_v10 }
0x26a9   :  { %v2746_v11 = vsel %vm593_vm2, %v2743_v14, %v2737_v35 }
0x26aa   :  { %v2783_v15 = vadd.f32 %v2782_v52, %v2746_v11 }
0x26ac   :  { %v2788_v18 = vadd.f32 %v2783_v15, %v5758_v45 }
0x26ae   :  { %v2789_v23 = vadd.f32 %v5624_v7, %v2788_v18 }
0x26b0   :  { %4692 = vtanh.f32 %v2789_v23  ;;  %v4061_v3 = vmul.f32 -1.442695, %v2789_v23 }
0x26b2   :  { %4694 = vpow2.f32 %v4061_v3 }
0x26ba   :  { %v4693_v6 = vpop.eup %4692 }
0x26bb   :  { %2799 = vrot.lane.b32.xlu0 %v4693_v6, %s4888_s17 }
0x26bc   :  { %v4695_v24 = vpop.eup %4694 }
0x26bd   :  { %v2793_v28 = vadd.f32 1.0, %v4695_v24 }
0x26bf   :  { %4696 = vrcp.f32 %v2793_v28 }
0x26c9   :  { %v4697_v56 = vpop.eup %4696 }
0x26ca   :  { %v2797_v52 = vmul.f32 %v4697_v56, %v5724_v43  ;;  %v5837_v43 = vld [vmem:[%s6232_s9 + $0x8] ss:$12 sps:$4 sm:$0xff]  }
0x272d   :  { %v2800_v25 = vpop.permute.xlu0 %2799 }
0x272e   :  { %v2802_v22 = vmul.f32 %v4697_v56, %v2800_v25 }
0x2730   :  { %2804 = vrot.lane.b32.xlu0 %v2802_v22, %s4887_s29 }
0x27a2   :  { %v2805_v46 = vpop.permute.xlu0 %2804 }
0x27a3   :  { %v5828_v45 = vadd.f32 %v2805_v46, %v2797_v52 }
0x27a5   :  { %4698 = vtanh.f32 %v5828_v45 }
0x27af   :  { %v4699_v9 = vpop.eup %4698 }
0x27b0   :  { %2810 = vrot.lane.b32.xlu0 %v4699_v9, %s4888_s17 }
0x2822   :  { %v2811_v49 = vpop.permute.xlu0 %2810 }
0x2823   :  { %v2813_v29 = vmul.f32 %v4697_v56, %v2811_v49  ;;  %v5891_v49 = vld [vmem:[%s6229_s6] ss:$0 sm:$0xff] }
0x2825   :  { %v2814_v40 = vpack.c.bf16 %v2813_v29, %v2813_v29 }
0x2827   :  { %2816 = vrot.lane.b32.xlu0 %v2814_v40, %s4887_s29 }
0x2899   :  { %v2817_v31 = vpop.permute.xlu0 %2816 }
0x289a   :  { %4062 = vmatmul.mubr.msk.bf16.vlgmr.msra.gmra.mrb[44].mxu1 %vm73_vm1, %v2817_v31 }
0x289b   :  { %4455 = vmatpush3.bf16.msra.mxu1 %v5837_v43  ;;  %4458 = vmatprep.mubr.msk.bf16.mxu1 %vm4884_vm0, %v4883_v5 }
0x289c   :  { %4456 = vmatprep.subr.bf16.mxu1 %v4883_v5 }
0x289f   :  { %4457 = vmatpush3.bf16.msra.mxu1 %v5846_v58 }
0x28a0   :  { %4462 = vmatprep.subr.bf16.mxu1 %v4883_v5 }
0x28a2   :  { %4459 = vmatmul.mubr.msk.bf16.vlgmr.msra.gmra.mrb[48].mxu1 %vm73_vm1, %v2817_v31 }
0x28a3   :  { %4463 = vmatpush3.bf16.msra.mxu1 %v5161_v39  ;;  %4478 = vmatprep.mubr.msk.bf16.mxu1 %vm4884_vm0, %v4883_v5 }
0x28a4   :  { %4464 = vmatprep.subr.bf16.mxu1 %v4883_v5 }
0x28a7   :  { %4465 = vmatpush3.bf16.msra.mxu1 %v5159_v36 }
0x28a8   :  { %4466 = vmatprep.subr.bf16.mxu1 %v4883_v5 }
0x28ab   :  { %4467 = vmatpush3.bf16.msra.mxu1 %v5167_v47 }
0x28ac   :  { %4468 = vmatprep.subr.bf16.mxu1 %v4883_v5 }
0x28af   :  { %4469 = vmatpush3.bf16.msra.mxu1 %v5165_v44 }
0x28b0   :  { %4470 = vmatprep.subr.bf16.mxu1 %v4883_v5 }
0x28b3   :  { %4471 = vmatpush3.bf16.msra.mxu1 %v5177_v53 }
0x28b4   :  { %4472 = vmatprep.subr.bf16.mxu1 %v4883_v5 }
0x28b7   :  { %4473 = vmatpush3.bf16.msra.mxu1 %v5175_v51 }
0x28b8   :  { %4474 = vmatprep.subr.bf16.mxu1 %v4883_v5 }
0x28bb   :  { %4475 = vmatpush3.bf16.msra.mxu1 %v5185_v59 }
0x28bc   :  { %4476 = vmatprep.subr.bf16.mxu1 %v4883_v5 }
0x28bf   :  { %4477 = vmatpush3.bf16.msra.mxu1 %v5182_v57 }
0x28c0   :  { %3509 = vmatprep.subr.bf16.mxu1 %v5871_v63 }
0x296d   :  { %v2855_v0 = vpop.f32.mrb[44].mxu1 }
0x296e   :  { %v5875_v10 = vadd.f32 %v5664_v4, %v2855_v0  ;;  %v5877_v12 = vpop.f32.mrb[45].mxu1 }
0x296f   :  { %v2859_v35 = vpop.f32.mrb[46].mxu1 }
0x2970   :  { %v2860_v14 = vpop.f32.mrb[47].mxu1  ;;  %v2903_v11 = vsel %vm839_vm7, %v5875_v10, -inf }
0x2971   :  { %2904 = vmax.xlane.f32.xlu0 %v2903_v11 }
0x2975   :  { %v2896_v15 = vpop.f32.mrb[48].mxu1 }
0x2976   :  { %v2959_v18 = vrot.slane %v2896_v15, %v5056_v26  ;;  %v4460_v23 = vpop.f32.mrb[49].mxu1 }
0x2977   :  { %v2899_v6 = vpop.f32.mrb[50].mxu1 }
0x2978   :  { %v2960_v3 = vcombine.high %v2959_v18, %v2959_v18  ;;  %v2967_v24 = vrot.slane %v2959_v18, %v5056_v26  ;;  %v4461_v28 = vpop.f32.mrb[51].mxu1 }
0x297a   :  { %v2974_v56 = vrot.slane %v2960_v3, %v5056_v26  ;;  %v2978_v25 = vrot.slane %v2967_v24, %v5063_v32 }
0x297c   :  { %v2982_v22 = vrot.slane %v2974_v56, %v5063_v32  ;;  %v2985_v52 = vadd.f32 %v2978_v25, %v5066_v37 }
0x297e   :  { %v2986_v46 = vadd.f32 %v2982_v22, %v5071_v42  ;;  %4700 = vtanh.f32 %v2985_v52 }
0x2980   :  { %4702 = vtanh.f32 %v2986_v46 }
0x2988   :  { %v4701_v9 = vpop.eup %4700 }
0x2989   :  { %v2989_v29 = vmul.f32 %v5891_v49, %v4701_v9 }
0x298a   :  { %v4703_v40 = vpop.eup %4702 }
0x298b   :  { %v2991_v31 = vsel %vm73_vm1, %v2989_v29, 0.0  ;;  %v2990_v0 = vmul.f32 %v5891_v49, %v4703_v40 }
0x298c   :  { %2992 = vadd.xlane.f32.xlu1 %v2991_v31 }
0x298d   :  { %v2994_v35 = vsel %vm73_vm1, %v2990_v0, 0.0 }
0x2990   :  { %2995 = vadd.xlane.f32.xlu1 %v2994_v35 }
0x29fe   :  { %v5897_v14 = vpop.xlane.xlu0 %2904 }
0x29ff   :  { %vm2931_vm12 = vcmp.ge.f32.partialorder %v5875_v10, %v5897_v14 }
0x2a00   :  { %v2932_v11 = vsel %vm2931_vm12, %v5116_v60, 128 }
0x2a01   :  { %v2933_v15 = vsel %vm839_vm7, %v2932_v11, 2147483647 }
0x2a02   :  { %v2935_v18 = vshra.s32 %v2933_v15, 16  ;;  %v2934_v22 = vand.u32 65535, %v2933_v15 }
0x2a04   :  { %v2937_v23 = vcvt.s32.f32 %v2935_v18  ;;  %v2936_v46 = vcvt.s32.f32 %v2934_v22 }
0x2a06   :  { %2938 = vmin.xlane.f32.xlu1 %v2937_v23 }
0x2a19   :  { %v2993_v6 = vpop.xlane.xlu1 %2992 }
0x2a1a   :  { %v3002_v24 = vrot.slane %v2993_v6, %v5120_v62 }
0x2a1d   :  { %v2996_v3 = vpop.xlane.xlu1 %2995 }
0x2a1e   :  { %v3006_v28 = vrot.slane %v2996_v3, %v5120_v62 }
0x2a20   :  { %v3007_v56 = vsel %vm593_vm2, %v3006_v28, %v3002_v24 }
0x2a21   :  { %v3009_v25 = vsel %vm596_vm3, %v3007_v56, -inf }
0x2a22   :  { %3010 = vmax.xlane.f32.xlu1 %v3009_v25 }
0x2a93   :  { %v2939_v52 = vpop.xlane.xlu1 %2938 }
0x2a94   :  { %vm2940_vm13 = vcmp.eq.f32.partialorder %v2937_v23, %v2939_v52  ;;  %v2945_v15 = vcvt.f32.s32 %v2939_v52 }
0x2a95   :  { %v2941_v9 = vsel %vm2940_vm13, %v2936_v46, inf }
0x2a96   :  { %2942 = vmin.xlane.f32.xlu1 %v2941_v9  ;;  %v2946_v23 = vshll.u32 %v2945_v15, 16 }
0x2aaf   :  { %v3011_v29 = vpop.xlane.xlu1 %3010 }
0x2ab0   :  { %v3016_v40 = vrot.slane %v3011_v29, %v5063_v32  ;;  %v3020_v31 = vrot.slane %v3011_v29, %v5145_v16 }
0x2ab2   :  { %v3023_v0 = vsub.f32 %v2993_v6, %v3016_v40  ;;  %v3024_v35 = vsub.f32 %v2996_v3, %v3020_v31 }
0x2ab4   :  { %v3025_v11 = vmul.f32 1.442695, %v3023_v0  ;;  %v3027_v18 = vmul.f32 1.442695, %v3024_v35 }
0x2ab6   :  { %4704 = vpow2.f32 %v3025_v11 }
0x2ab7   :  { %4706 = vpow2.f32 %v3027_v18 }
0x2ac0   :  { %v4705_v24 = vpop.eup %4704 }
0x2ac1   :  { %v4707_v28 = vpop.eup %4706  ;;  %3032 = vperm.xlu0 %4551, %v4705_v24  }
0x2ac2   :  { %3035 = vperm.xlu1 %4550, %v4707_v28  }
0x2b23   :  { %v2943_v56 = vpop.xlane.xlu1 %2942 }
0x2b24   :  { %v2944_v25 = vcvt.f32.s32 %v2943_v56 }
0x2b26   :  { %v2947_v22 = vadd.s32 %v2946_v23, %v2944_v25 }
0x2b28   :  { %vm2948_vm14 = vcmp.eq.s32.totalorder %v5116_v60, %v2947_v22 }
0x2b29   :  { %vm4066_vm15 = vmpackc.low %vm2948_vm14, %vm2948_vm14 }
0x2b2a   :  { %4479 = vmatmul.mubr.msk.bf16.vlgmr.msra.gmra.mrb[52].mxu1 %vm4066_vm15, %v4886_v61 }
0x2b2b   :  { %3510 = vmatpush1.bf16.msra.mxu1 %v5790_v17  ;;  %3541 = vmatprep.mubr.bf16.mxu1 %v6239_v2 }
0x2b2c   :  { %3511 = vmatprep.subr.bf16.mxu1 %v5797_v54 }
0x2b2f   :  { %3512 = vmatpush1.bf16.msra.mxu1 %v5803_v8 }
0x2b30   :  { %4510 = vmatprep.subr.bf16.mxu1 %v4883_v5 }
0x2b40   :  { %v3033_v6 = vpop.permute.xlu0 %3032 }
0x2b41   :  { %v3040_v3 = vrot.slane %v3033_v6, %v5120_v62  ;;  %v3036_v52 = vpop.permute.xlu1 %3035 }
0x2b42   :  { %v3044_v46 = vrot.slane %v3036_v52, %v5120_v62 }
0x2b44   :  { %v3045_v9 = vsel %vm593_vm2, %v3044_v46, %v3040_v3 }
0x2b45   :  { %v3047_v29 = vsel %vm596_vm3, %v3045_v9, 0.0 }
0x2b46   :  { %3048 = vadd.xlane.f32.xlu1 %v3047_v29 }
0x2bd3   :  { %v3049_v40 = vpop.xlane.xlu1 %3048 }
0x2bd4   :  { %4708 = vrcp.f32 %v3049_v40 }
0x2bde   :  { %v4709_v31 = vpop.eup %4708 }
0x2bdf   :  { %v3055_v0 = vrot.slane %v4709_v31, %v5063_v32  ;;  %v3059_v11 = vrot.slane %v4709_v31, %v5145_v16 }
0x2be1   :  { %v3062_v35 = vmul.f32 %v4705_v24, %v3055_v0  ;;  %v3063_v18 = vmul.f32 %v4707_v28, %v3059_v11 }
0x2be3   :  { %3066 = vperm.xlu0 %4551, %v3062_v35  }
0x2be7   :  { %3071 = vperm.xlu0 %4551, %v3063_v18  }
0x2bfd   :  { %v3126_v15 = vpop.f32.mrb[52].mxu1 }
0x2bfe   :  { %v4480_v56 = vpop.f32.mrb[53].mxu1 }
0x2bff   :  { %v3129_v23 = vpop.f32.mrb[54].mxu1 }
0x2c00   :  { %v4481_v25 = vpop.f32.mrb[55].mxu1 }
0x2c62   :  { %v3067_v22 = vpop.permute.xlu0 %3066 }
0x2c63   :  { %v3074_v6 = vmul.f32 %v3067_v22, %v5155_v21  ;;  %v3265_v9 = vrot.slane %v3067_v22, %v5120_v62 }
0x2c65   :  { %v3076_v3 = vrot.slane %v3074_v6, 4 }
0x2c66   :  { %v3072_v52 = vpop.permute.xlu0 %3071 }
0x2c67   :  { %v3077_v46 = vadd.f32 %v3076_v3, %v3074_v6  ;;  %v3075_v29 = vmul.f32 %v3072_v52, %v5157_v30  ;;  %v3269_v24 = vrot.slane %v3072_v52, %v5120_v62 }
0x2c69   :  { %v3078_v40 = vrot.slane %v3077_v46, 2  ;;  %v3082_v31 = vrot.slane %v3075_v29, 4  ;;  %v3270_v28 = vsel %vm593_vm2, %v3269_v24, %v3265_v9 }
0x2c6a   :  { %v3272_v0 = vsel %vm864_vm6, %v3270_v28, 0.0 }
0x2c6b   :  { %v3079_v35 = vadd.f32 %v3078_v40, %v3077_v46  ;;  %v3083_v11 = vadd.f32 %v3082_v31, %v3075_v29  ;;  %4071 = vst [vmem:[%s6236_s13 + $0xe] sm:$0x3] %v3272_v0 }
0x2c6d   :  { %v3084_v18 = vrot.slane %v3083_v11, 2  ;;  %v3080_v56 = vrot.slane %v3079_v35, 1 }
0x2c6f   :  { %v3085_v23 = vadd.f32 %v3084_v18, %v3083_v11  ;;  %v3081_v22 = vadd.f32 %v3080_v56, %v3079_v35 }
0x2c71   :  { %v3086_v25 = vrot.slane %v3085_v23, 1 }
0x2c73   :  { %v3087_v6 = vadd.f32 %v3086_v25, %v3085_v23 }
0x2c75   :  { %v3090_v3 = vsel %vm593_vm2, %v3087_v6, %v3081_v22 }
0x2c76   :  { %v3127_v52 = vadd.f32 %v3126_v15, %v3090_v3 }
0x2c78   :  { %v3132_v2 = vadd.f32 %v3127_v52, %v5877_v12 }
0x2c7a   :  { %v3133_v9 = vadd.f32 %v5624_v7, %v3132_v2 }
0x2c7c   :  { %4710 = vtanh.f32 %v3133_v9  ;;  %v4068_v29 = vmul.f32 -1.442695, %v3133_v9 }
0x2c7e   :  { %4712 = vpow2.f32 %v4068_v29 }
0x2c86   :  { %v4711_v46 = vpop.eup %4710 }
0x2c87   :  { %3143 = vrot.lane.b32.xlu0 %v4711_v46, %s4888_s17 }
0x2c88   :  { %v4713_v24 = vpop.eup %4712 }
0x2c89   :  { %v3137_v40 = vadd.f32 1.0, %v4713_v24 }
0x2c8b   :  { %4714 = vrcp.f32 %v3137_v40 }
0x2c95   :  { %v4715_v31 = vpop.eup %4714 }
0x2c96   :  { %v3141_v15 = vmul.f32 %v4715_v31, %v5828_v45 }
0x2cf9   :  { %v3144_v28 = vpop.permute.xlu0 %3143 }
0x2cfa   :  { %v3146_v0 = vmul.f32 %v4715_v31, %v3144_v28 }
0x2cfc   :  { %3148 = vrot.lane.b32.xlu0 %v3146_v0, %s4887_s29 }
0x2d6e   :  { %v3149_v35 = vpop.permute.xlu0 %3148 }
0x2d6f   :  { %v5937_v12 = vadd.f32 %v3149_v35, %v3141_v15 }
0x2d71   :  { %4716 = vtanh.f32 %v5937_v12 }
0x2d7b   :  { %v4717_v2 = vpop.eup %4716 }
0x2d7c   :  { %3154 = vrot.lane.b32.xlu0 %v4717_v2, %s4888_s17 }
0x2dee   :  { %v3155_v7 = vpop.permute.xlu0 %3154 }
0x2def   :  { %v3157_v11 = vmul.f32 %v4715_v31, %v3155_v7 }
0x2df1   :  { %v3158_v18 = vpack.c.bf16 %v3157_v11, %v3157_v11 }
0x2df3   :  { %3160 = vrot.lane.b32.xlu0 %v3158_v18, %s4887_s29 }
0x2e65   :  { %v3161_v56 = vpop.permute.xlu0 %3160 }
0x2e66   :  { %4069 = vmatmul.mubr.msk.bf16.vlgmr.msra.gmra.mrb[64].mxu0 %vm73_vm1, %v3161_v56 }
0x2e67   :  { %4483 = vmatpush3.bf16.msra.mxu0 %v5837_v43  ;;  %4486 = vmatprep.mubr.msk.bf16.mxu0 %vm4884_vm0, %v4883_v5 }
0x2e68   :  { %4484 = vmatprep.subr.bf16.mxu0 %v4883_v5 }
0x2e6b   :  { %4485 = vmatpush3.bf16.msra.mxu0 %v5846_v58 }
0x2e6c   :  { %4490 = vmatprep.subr.bf16.mxu0 %v4883_v5 }
0x2e6e   :  { %4487 = vmatmul.mubr.msk.bf16.vlgmr.msra.gmra.mrb[68].mxu0 %vm73_vm1, %v3161_v56 }
0x2e6f   :  { %4491 = vmatpush3.bf16.msra.mxu0 %v5161_v39  ;;  %4506 = vmatprep.mubr.msk.bf16.mxu0 %vm4884_vm0, %v4883_v5 }
0x2e70   :  { %4492 = vmatprep.subr.bf16.mxu0 %v4883_v5 }
0x2e73   :  { %4493 = vmatpush3.bf16.msra.mxu0 %v5159_v36 }
0x2e74   :  { %4494 = vmatprep.subr.bf16.mxu0 %v4883_v5 }
0x2e77   :  { %4495 = vmatpush3.bf16.msra.mxu0 %v5167_v47 }
0x2e78   :  { %4496 = vmatprep.subr.bf16.mxu0 %v4883_v5 }
0x2e7b   :  { %4497 = vmatpush3.bf16.msra.mxu0 %v5165_v44 }
0x2e7c   :  { %4498 = vmatprep.subr.bf16.mxu0 %v4883_v5 }
0x2e7f   :  { %4499 = vmatpush3.bf16.msra.mxu0 %v5177_v53 }
0x2e80   :  { %4500 = vmatprep.subr.bf16.mxu0 %v4883_v5 }
0x2e83   :  { %4501 = vmatpush3.bf16.msra.mxu0 %v5175_v51 }
0x2e84   :  { %4502 = vmatprep.subr.bf16.mxu0 %v4883_v5 }
0x2e87   :  { %4503 = vmatpush3.bf16.msra.mxu0 %v5185_v59 }
0x2e88   :  { %4504 = vmatprep.subr.bf16.mxu0 %v4883_v5 }
0x2e8b   :  { %4505 = vmatpush3.bf16.msra.mxu0 %v5182_v57 }
0x2e8c   :  { %3853 = vmatprep.subr.bf16.mxu0 %v5871_v63 }
0x2f39   :  { %v3199_v45 = vpop.f32.mrb[64].mxu0 }
0x2f3a   :  { %v5969_v23 = vadd.f32 %v5664_v4, %v3199_v45  ;;  %v5971_v25 = vpop.f32.mrb[65].mxu0 }
0x2f3b   :  { %v3203_v22 = vpop.f32.mrb[66].mxu0 }
0x2f3c   :  { %v3204_v6 = vpop.f32.mrb[67].mxu0  ;;  %v3247_v3 = vsel %vm839_vm7, %v5969_v23, -inf }
0x2f3d   :  { %3248 = vmax.xlane.f32.xlu0 %v3247_v3 }
0x2f41   :  { %v3240_v52 = vpop.f32.mrb[68].mxu0 }
0x2f42   :  { %v3303_v9 = vrot.slane %v3240_v52, %v5056_v26  ;;  %v4488_v46 = vpop.f32.mrb[69].mxu0 }
0x2f43   :  { %v3243_v29 = vpop.f32.mrb[70].mxu0 }
0x2f44   :  { %v3304_v24 = vcombine.high %v3303_v9, %v3303_v9  ;;  %v3311_v63 = vrot.slane %v3303_v9, %v5056_v26  ;;  %v4489_v40 = vpop.f32.mrb[71].mxu0 }
0x2f46   :  { %v3318_v4 = vrot.slane %v3304_v24, %v5056_v26  ;;  %v3322_v31 = vrot.slane %v3311_v63, %v5063_v32 }
0x2f48   :  { %v3326_v28 = vrot.slane %v3318_v4, %v5063_v32  ;;  %v3329_v0 = vadd.f32 %v3322_v31, %v5066_v37 }
0x2f4a   :  { %v3330_v15 = vadd.f32 %v3326_v28, %v5071_v42  ;;  %4718 = vtanh.f32 %v3329_v0 }
0x2f4c   :  { %4720 = vtanh.f32 %v3330_v15 }
0x2f54   :  { %v4719_v35 = vpop.eup %4718 }
0x2f55   :  { %v3333_v2 = vmul.f32 %v5891_v49, %v4719_v35 }
0x2f56   :  { %v4721_v7 = vpop.eup %4720 }
0x2f57   :  { %v3335_v11 = vsel %vm73_vm1, %v3333_v2, 0.0  ;;  %v3334_v18 = vmul.f32 %v5891_v49, %v4721_v7 }
0x2f58   :  { %3336 = vadd.xlane.f32.xlu1 %v3335_v11 }
0x2f59   :  { %v3338_v56 = vsel %vm73_vm1, %v3334_v18, 0.0 }
0x2f5c   :  { %3339 = vadd.xlane.f32.xlu1 %v3338_v56 }
0x2fca   :  { %v5986_v45 = vpop.xlane.xlu0 %3248 }
0x2fcb   :  { %vm3275_vm4 = vcmp.ge.f32.partialorder %v5969_v23, %v5986_v45 }
0x2fcc   :  { %v3276_v22 = vsel %vm3275_vm4, %v5116_v60, 128 }
0x2fcd   :  { %v3277_v6 = vsel %vm839_vm7, %v3276_v22, 2147483647 }
0x2fce   :  { %v3279_v3 = vshra.s32 %v3277_v6, 16  ;;  %v3278_v4 = vand.u32 65535, %v3277_v6 }
0x2fd0   :  { %v3281_v52 = vcvt.s32.f32 %v3279_v3  ;;  %v3280_v28 = vcvt.s32.f32 %v3278_v4 }
0x2fd2   :  { %3282 = vmin.xlane.f32.xlu1 %v3281_v52 }
0x2fe5   :  { %v3337_v9 = vpop.xlane.xlu1 %3336 }
0x2fe6   :  { %v3346_v29 = vrot.slane %v3337_v9, %v5120_v62 }
0x2fe9   :  { %v3340_v46 = vpop.xlane.xlu1 %3339 }
0x2fea   :  { %v3350_v24 = vrot.slane %v3340_v46, %v5120_v62 }
0x2fec   :  { %v3351_v63 = vsel %vm593_vm2, %v3350_v24, %v3346_v29 }
0x2fed   :  { %v3353_v40 = vsel %vm596_vm3, %v3351_v63, -inf }
0x2fee   :  { %3354 = vmax.xlane.f32.xlu1 %v3353_v40 }
0x305f   :  { %v3283_v31 = vpop.xlane.xlu1 %3282 }
0x3060   :  { %vm3284_vm5 = vcmp.eq.f32.partialorder %v3281_v52, %v3283_v31  ;;  %v3289_v6 = vcvt.f32.s32 %v3283_v31 }
0x3061   :  { %v3285_v0 = vsel %vm3284_vm5, %v3280_v28, inf }
0x3062   :  { %3286 = vmin.xlane.f32.xlu1 %v3285_v0  ;;  %v3290_v52 = vshll.u32 %v3289_v6, 16 }
0x307b   :  { %v3355_v15 = vpop.xlane.xlu1 %3354 }
0x307c   :  { %v3360_v35 = vrot.slane %v3355_v15, %v5063_v32  ;;  %v3364_v2 = vrot.slane %v3355_v15, %v5145_v16 }
0x307e   :  { %v3367_v7 = vsub.f32 %v3337_v9, %v3360_v35  ;;  %v3368_v11 = vsub.f32 %v3340_v46, %v3364_v2  ;;  %v6240_v9 = vmov 0  }
0x3080   :  { %v3369_v18 = vmul.f32 1.442695, %v3367_v7  ;;  %v3371_v56 = vmul.f32 1.442695, %v3368_v11 }
0x3082   :  { %4722 = vpow2.f32 %v3369_v18 }
0x3083   :  { %4724 = vpow2.f32 %v3371_v56 }
0x308c   :  { %v4723_v22 = vpop.eup %4722 }
0x308d   :  { %v4725_v3 = vpop.eup %4724  ;;  %3376 = vperm.xlu1 %4550, %v4723_v22  }
0x308e   :  { %3379 = vperm.xlu0 %4551, %v4725_v3  }
0x30ef   :  { %v3287_v29 = vpop.xlane.xlu1 %3286 }
0x30f0   :  { %v3288_v24 = vcvt.f32.s32 %v3287_v29 }
0x30f2   :  { %v3291_v63 = vadd.s32 %v3290_v52, %v3288_v24 }
0x30f4   :  { %vm3292_vm8 = vcmp.eq.s32.totalorder %v5116_v60, %v3291_v63 }
0x30f5   :  { %vm4073_vm9 = vmpackc.low %vm3292_vm8, %vm3292_vm8 }
0x30f6   :  { %4507 = vmatmul.mubr.msk.bf16.vlgmr.msra.gmra.mrb[72].mxu0 %vm4073_vm9, %v4886_v61 }
0x30f7   :  { %3854 = vmatpush1.bf16.msra.mxu0 %v5790_v17  ;;  %3885 = vmatprep.mubr.bf16.mxu0 %v6240_v9 }
0x30f8   :  { %3855 = vmatprep.subr.bf16.mxu0 %v5797_v54 }
0x30fb   :  { %3856 = vmatpush1.bf16.msra.mxu0 %v5803_v8 }
0x310c   :  { %v3377_v46 = vpop.permute.xlu1 %3376 }
0x310d   :  { %v3380_v40 = vpop.permute.xlu0 %3379  ;;  %v3384_v4 = vrot.slane %v3377_v46, %v5120_v62 }
0x310e   :  { %v3388_v31 = vrot.slane %v3380_v40, %v5120_v62 }
0x3110   :  { %v3389_v28 = vsel %vm593_vm2, %v3388_v31, %v3384_v4 }
0x3111   :  { %v3391_v0 = vsel %vm596_vm3, %v3389_v28, 0.0 }
0x3112   :  { %3392 = vadd.xlane.f32.xlu1 %v3391_v0 }
0x319f   :  { %v3393_v15 = vpop.xlane.xlu1 %3392 }
0x31a0   :  { %4726 = vrcp.f32 %v3393_v15 }
0x31aa   :  { %v4727_v17 = vpop.eup %4726 }
0x31ab   :  { %v3399_v35 = vrot.slane %v4727_v17, %v5063_v32  ;;  %v3403_v54 = vrot.slane %v4727_v17, %v5145_v16 }
0x31ad   :  { %v3406_v2 = vmul.f32 %v4723_v22, %v3399_v35  ;;  %v3407_v8 = vmul.f32 %v4725_v3, %v3403_v54 }
0x31af   :  { %3410 = vperm.xlu0 %4551, %v3406_v2  }
0x31b3   :  { %3415 = vperm.xlu0 %4551, %v3407_v8  }
0x31c9   :  { %v3470_v7 = vpop.f32.mrb[72].mxu0 }
0x31ca   :  { %v4508_v11 = vpop.f32.mrb[73].mxu0 }
0x31cb   :  { %v3473_v18 = vpop.f32.mrb[74].mxu0 }
0x31cc   :  { %v4509_v56 = vpop.f32.mrb[75].mxu0 }
0x322e   :  { %v3411_v6 = vpop.permute.xlu0 %3410 }
0x322f   :  { %v3418_v29 = vmul.f32 %v3411_v6, %v5155_v21  ;;  %v3609_v9 = vrot.slane %v3411_v6, %v5120_v62  ;;  %v6024_v6 = vld [vmem:[%s6233_s10] ss:$0 sm:$0xff] }
0x3231   :  { %v3420_v52 = vrot.slane %v3418_v29, 4 }
0x3232   :  { %v3416_v24 = vpop.permute.xlu0 %3415 }
0x3233   :  { %v3421_v63 = vadd.f32 %v3420_v52, %v3418_v29  ;;  %v3419_v46 = vmul.f32 %v3416_v24, %v5157_v30  ;;  %v3613_v22 = vrot.slane %v3416_v24, %v5120_v62 }
0x3235   :  { %v3422_v40 = vrot.slane %v3421_v63, 2  ;;  %v3426_v4 = vrot.slane %v3419_v46, 4  ;;  %v3614_v3 = vsel %vm593_vm2, %v3613_v22, %v3609_v9 }
0x3236   :  { %v3616_v31 = vsel %vm864_vm6, %v3614_v3, 0.0 }
0x3237   :  { %v3423_v28 = vadd.f32 %v3422_v40, %v3421_v63  ;;  %v3427_v0 = vadd.f32 %v3426_v4, %v3419_v46  ;;  %4078 = vst [vmem:[%s6236_s13 + $0x10] sm:$0x3] %v3616_v31 }
0x3239   :  { %v3428_v15 = vrot.slane %v3427_v0, 2  ;;  %v3424_v17 = vrot.slane %v3423_v28, 1 }
0x323b   :  { %v3429_v35 = vadd.f32 %v3428_v15, %v3427_v0  ;;  %v3425_v54 = vadd.f32 %v3424_v17, %v3423_v28 }
0x323d   :  { %v3430_v2 = vrot.slane %v3429_v35, 1 }
0x323f   :  { %v3431_v8 = vadd.f32 %v3430_v2, %v3429_v35 }
0x3241   :  { %v3434_v11 = vsel %vm593_vm2, %v3431_v8, %v3425_v54 }
0x3242   :  { %v3471_v18 = vadd.f32 %v3470_v7, %v3434_v11 }
0x3244   :  { %v3476_v56 = vadd.f32 %v3471_v18, %v5971_v25 }
0x3246   :  { %v3477_v29 = vadd.f32 %v6024_v6, %v3476_v56 }
0x3248   :  { %4728 = vtanh.f32 %v3477_v29  ;;  %v4075_v24 = vmul.f32 -1.442695, %v3477_v29 }
0x324a   :  { %4730 = vpow2.f32 %v4075_v24 }
0x3252   :  { %v4729_v52 = vpop.eup %4728 }
0x3253   :  { %3487 = vrot.lane.b32.xlu0 %v4729_v52, %s4888_s17 }
0x3254   :  { %v4731_v63 = vpop.eup %4730 }
0x3255   :  { %v3481_v9 = vadd.f32 1.0, %v4731_v63 }
0x3257   :  { %4732 = vrcp.f32 %v3481_v9 }
0x3261   :  { %v4733_v46 = vpop.eup %4732 }
0x3262   :  { %v3485_v25 = vmul.f32 %v4733_v46, %v5937_v12 }
0x32c5   :  { %v3488_v7 = vpop.permute.xlu0 %3487 }
0x32c6   :  { %v3490_v22 = vmul.f32 %v4733_v46, %v3488_v7 }
0x32c8   :  { %3492 = vrot.lane.b32.xlu0 %v3490_v22, %s4887_s29 }
0x333a   :  { %v3493_v40 = vpop.permute.xlu0 %3492 }
0x333b   :  { %v6030_v4 = vadd.f32 %v3493_v40, %v3485_v25 }
0x333d   :  { %4734 = vtanh.f32 %v6030_v4 }
0x3347   :  { %v4735_v3 = vpop.eup %4734 }
0x3348   :  { %3498 = vrot.lane.b32.xlu0 %v4735_v3, %s4888_s17 }
0x33ba   :  { %v3499_v31 = vpop.permute.xlu0 %3498 }
0x33bb   :  { %v3501_v28 = vmul.f32 %v4733_v46, %v3499_v31 }
0x33bd   :  { %v3502_v0 = vpack.c.bf16 %v3501_v28, %v3501_v28 }
0x33bf   :  { %3504 = vrot.lane.b32.xlu0 %v3502_v0, %s4887_s29 }
0x3431   :  { %v3505_v15 = vpop.permute.xlu0 %3504 }
0x3432   :  { %4076 = vmatmul.mubr.msk.bf16.vlgmr.msra.gmra.mrb[56].mxu1 %vm73_vm1, %v3505_v15 }
0x3433   :  { %4511 = vmatpush3.bf16.msra.mxu1 %v5837_v43  ;;  %4514 = vmatprep.mubr.msk.bf16.mxu1 %vm4884_vm0, %v4883_v5 }
0x3434   :  { %4512 = vmatprep.subr.bf16.mxu1 %v4883_v5 }
0x3437   :  { %4513 = vmatpush3.bf16.msra.mxu1 %v5846_v58 }
0x3438   :  { %4518 = vmatprep.subr.bf16.mxu1 %v4883_v5 }
0x343a   :  { %4515 = vmatmul.mubr.msk.bf16.vlgmr.msra.gmra.mrb[60].mxu1 %vm73_vm1, %v3505_v15 }
0x343b   :  { %4519 = vmatpush3.bf16.msra.mxu1 %v5161_v39  ;;  %4534 = vmatprep.mubr.msk.bf16.mxu1 %vm4884_vm0, %v4883_v5  ;;  %v6063_v39 = vld [vmem:[%s6234_s11] ss:$0 sm:$0xff] }
0x343c   :  { %4520 = vmatprep.subr.bf16.mxu1 %v4883_v5 }
0x343f   :  { %4521 = vmatpush3.bf16.msra.mxu1 %v5159_v36 }
0x3440   :  { %4522 = vmatprep.subr.bf16.mxu1 %v4883_v5 }
0x3443   :  { %4523 = vmatpush3.bf16.msra.mxu1 %v5167_v47 }
0x3444   :  { %4524 = vmatprep.subr.bf16.mxu1 %v4883_v5 }
0x3447   :  { %4525 = vmatpush3.bf16.msra.mxu1 %v5165_v44 }
0x3448   :  { %4526 = vmatprep.subr.bf16.mxu1 %v4883_v5 }
0x344b   :  { %4527 = vmatpush3.bf16.msra.mxu1 %v5177_v53 }
0x344c   :  { %4528 = vmatprep.subr.bf16.mxu1 %v4883_v5 }
0x344f   :  { %4529 = vmatpush3.bf16.msra.mxu1 %v5175_v51 }
0x3450   :  { %4530 = vmatprep.subr.bf16.mxu1 %v4883_v5 }
0x3453   :  { %4531 = vmatpush3.bf16.msra.mxu1 %v5185_v59 }
0x3454   :  { %4532 = vmatprep.subr.bf16.mxu1 %v4883_v5 }
0x3457   :  { %4533 = vmatpush3.bf16.msra.mxu1 %v5182_v57 }
0x3505   :  { %v3543_v36 = vpop.f32.mrb[56].mxu1 }
0x3506   :  { %v6066_v44 = vadd.f32 %v6063_v39, %v3543_v36  ;;  %v6068_v47 = vpop.f32.mrb[57].mxu1 }
0x3507   :  { %v3547_v51 = vpop.f32.mrb[58].mxu1 }
0x3508   :  { %v3548_v53 = vpop.f32.mrb[59].mxu1  ;;  %v3591_v59 = vsel %vm839_vm7, %v6066_v44, -inf }
0x3509   :  { %3592 = vmax.xlane.f32.xlu0 %v3591_v59 }
0x350d   :  { %v3584_v5 = vpop.f32.mrb[60].mxu1 }
0x350e   :  { %v3647_v57 = vrot.slane %v3584_v5, %v5056_v26  ;;  %v4516_v43 = vpop.f32.mrb[61].mxu1 }
0x350f   :  { %v3587_v58 = vpop.f32.mrb[62].mxu1 }
0x3510   :  { %v3648_v12 = vcombine.high %v3647_v57, %v3647_v57  ;;  %v3655_v17 = vrot.slane %v3647_v57, %v5056_v26  ;;  %v4517_v35 = vpop.f32.mrb[63].mxu1 }
0x3512   :  { %v3662_v2 = vrot.slane %v3648_v12, %v5056_v26  ;;  %v3666_v54 = vrot.slane %v3655_v17, %v5063_v32 }
0x3514   :  { %v3670_v8 = vrot.slane %v3662_v2, %v5063_v32  ;;  %v3673_v11 = vadd.f32 %v3666_v54, %v5066_v37 }
0x3516   :  { %v3674_v18 = vadd.f32 %v3670_v8, %v5071_v42  ;;  %4736 = vtanh.f32 %v3673_v11 }
0x3518   :  { %4738 = vtanh.f32 %v3674_v18 }
0x3520   :  { %v4737_v56 = vpop.eup %4736 }
0x3521   :  { %v3677_v29 = vmul.f32 %v5891_v49, %v4737_v56 }
0x3522   :  { %v4739_v52 = vpop.eup %4738 }
0x3523   :  { %v3679_v24 = vsel %vm73_vm1, %v3677_v29, 0.0  ;;  %v3678_v63 = vmul.f32 %v5891_v49, %v4739_v52 }
0x3524   :  { %3680 = vadd.xlane.f32.xlu1 %v3679_v24 }
0x3525   :  { %v3682_v26 = vsel %vm73_vm1, %v3678_v63, 0.0 }
0x3528   :  { %3683 = vadd.xlane.f32.xlu1 %v3682_v26 }
0x3596   :  { %v6083_v9 = vpop.xlane.xlu0 %3592 }
0x3597   :  { %vm3619_vm0 = vcmp.ge.f32.partialorder %v6066_v44, %v6083_v9 }
0x3598   :  { %v3620_v37 = vsel %vm3619_vm0, %v5116_v60, 128 }
0x3599   :  { %v3621_v42 = vsel %vm839_vm7, %v3620_v37, 2147483647 }
0x359a   :  { %v3623_v46 = vshra.s32 %v3621_v42, 16  ;;  %v3622_v28 = vand.u32 65535, %v3621_v42 }
0x359c   :  { %v3625_v7 = vcvt.s32.f32 %v3623_v46  ;;  %v3624_v15 = vcvt.s32.f32 %v3622_v28 }
0x359e   :  { %3626 = vmin.xlane.f32.xlu1 %v3625_v7 }
0x35b1   :  { %v3681_v22 = vpop.xlane.xlu1 %3680 }
0x35b2   :  { %v3690_v49 = vrot.slane %v3681_v22, %v5120_v62 }
0x35b5   :  { %v3684_v25 = vpop.xlane.xlu1 %3683 }
0x35b6   :  { %v3694_v40 = vrot.slane %v3684_v25, %v5120_v62 }
0x35b8   :  { %v3695_v3 = vsel %vm593_vm2, %v3694_v40, %v3690_v49 }
0x35b9   :  { %v3697_v31 = vsel %vm596_vm3, %v3695_v3, -inf }
0x35ba   :  { %3698 = vmax.xlane.f32.xlu1 %v3697_v31 }
0x362b   :  { %v3627_v0 = vpop.xlane.xlu1 %3626 }
0x362c   :  { %vm3628_vm10 = vcmp.eq.f32.partialorder %v3625_v7, %v3627_v0  ;;  %v3633_v35 = vcvt.f32.s32 %v3627_v0 }
0x362d   :  { %v3629_v36 = vsel %vm3628_vm10, %v3624_v15, inf }
0x362e   :  { %3630 = vmin.xlane.f32.xlu1 %v3629_v36  ;;  %v3634_v54 = vshll.u32 %v3633_v35, 16 }
0x3647   :  { %v3699_v51 = vpop.xlane.xlu1 %3698 }
0x3648   :  { %v3704_v53 = vrot.slane %v3699_v51, %v5063_v32  ;;  %v3708_v59 = vrot.slane %v3699_v51, %v5145_v16 }
0x364a   :  { %v3711_v5 = vsub.f32 %v3681_v22, %v3704_v53  ;;  %v3712_v57 = vsub.f32 %v3684_v25, %v3708_v59 }
0x364c   :  { %v3713_v43 = vmul.f32 1.442695, %v3711_v5  ;;  %v3715_v58 = vmul.f32 1.442695, %v3712_v57 }
0x364e   :  { %4740 = vpow2.f32 %v3713_v43 }
0x364f   :  { %4742 = vpow2.f32 %v3715_v58 }
0x3658   :  { %v4741_v12 = vpop.eup %4740 }
0x3659   :  { %v4743_v17 = vpop.eup %4742  ;;  %3720 = vperm.xlu1 %4550, %v4741_v12  }
0x365a   :  { %3723 = vperm.xlu0 %4551, %v4743_v17  }
0x36bb   :  { %v3631_v2 = vpop.xlane.xlu1 %3630 }
0x36bc   :  { %v3632_v8 = vcvt.f32.s32 %v3631_v2 }
0x36be   :  { %v3635_v11 = vadd.s32 %v3634_v54, %v3632_v8 }
0x36c0   :  { %vm3636_vm11 = vcmp.eq.s32.totalorder %v5116_v60, %v3635_v11 }
0x36c1   :  { %vm4080_vm12 = vmpackc.low %vm3636_vm11, %vm3636_vm11 }
0x36c2   :  { %4535 = vmatmul.mubr.msk.bf16.vlgmr.msra.gmra.mrb[64].mxu1 %vm4080_vm12, %v4886_v61 }
0x36d8   :  { %v3721_v18 = vpop.permute.xlu1 %3720 }
0x36d9   :  { %v3724_v56 = vpop.permute.xlu0 %3723  ;;  %v3728_v29 = vrot.slane %v3721_v18, %v5120_v62 }
0x36da   :  { %v3732_v52 = vrot.slane %v3724_v56, %v5120_v62 }
0x36dc   :  { %v3733_v24 = vsel %vm593_vm2, %v3732_v52, %v3728_v29 }
0x36dd   :  { %v3735_v63 = vsel %vm596_vm3, %v3733_v24, 0.0 }
0x36de   :  { %3736 = vadd.xlane.f32.xlu1 %v3735_v63 }
0x376b   :  { %v3737_v26 = vpop.xlane.xlu1 %3736 }
0x376c   :  { %4744 = vrcp.f32 %v3737_v26 }
0x3776   :  { %v4745_v37 = vpop.eup %4744 }
0x3777   :  { %v3743_v42 = vrot.slane %v4745_v37, %v5063_v32  ;;  %v3747_v46 = vrot.slane %v4745_v37, %v5145_v16 }
0x3779   :  { %v3750_v60 = vmul.f32 %v4741_v12, %v3743_v42  ;;  %v3751_v61 = vmul.f32 %v4743_v17, %v3747_v46  ;;  %v843_v46 = vsub.f32 %v5266_v38, %v5283_v20 }
0x377b   :  { %3754 = vperm.xlu0 %4551, %v3750_v60  }
0x377f   :  { %3759 = vperm.xlu0 %4551, %v3751_v61   ;;  %v844_v61 = vmul.f32 1.442695, %v843_v46 }
0x3795   :  { %v3814_v7 = vpop.f32.mrb[64].mxu1 }
0x3796   :  { %v4536_v22 = vpop.f32.mrb[65].mxu1 }
0x3797   :  { %v3817_v25 = vpop.f32.mrb[66].mxu1 }
0x3798   :  { %v4537_v49 = vpop.f32.mrb[67].mxu1 }
0x37fa   :  { %v3755_v40 = vpop.permute.xlu0 %3754 }
0x37fb   :  { %v3762_v3 = vmul.f32 %v3755_v40, %v5155_v21  ;;  %v3912_v15 = vrot.slane %v3755_v40, %v5120_v62 }
0x37fd   :  { %v3764_v31 = vrot.slane %v3762_v3, 4 }
0x37fe   :  { %v3760_v28 = vpop.permute.xlu0 %3759 }
0x37ff   :  { %v3765_v0 = vadd.f32 %v3764_v31, %v3762_v3  ;;  %v3763_v32 = vmul.f32 %v3760_v28, %v5157_v30  ;;  %v3916_v36 = vrot.slane %v3760_v28, %v5120_v62 }
0x3801   :  { %v3766_v16 = vrot.slane %v3765_v0, 2  ;;  %v3770_v51 = vrot.slane %v3763_v32, 4  ;;  %v3917_v53 = vsel %vm593_vm2, %v3916_v36, %v3912_v15 }
0x3802   :  { %v3919_v59 = vsel %vm864_vm6, %v3917_v53, 0.0 }
0x3803   :  { %v3767_v5 = vadd.f32 %v3766_v16, %v3765_v0  ;;  %v3771_v57 = vadd.f32 %v3770_v51, %v3763_v32  ;;  %4084 = vst [vmem:[%s6236_s13 + $0x12] sm:$0x3] %v3919_v59  ;;  %s4889_s13 = smov 96  }
0x3805   :  { %v3772_v21 = vrot.slane %v3771_v57, 2  ;;  %v3768_v43 = vrot.slane %v3767_v5, 1 }
0x3807   :  { %v3773_v58 = vadd.f32 %v3772_v21, %v3771_v57  ;;  %v3769_v17 = vadd.f32 %v3768_v43, %v3767_v5  ;;  %v1186_v57 = vsub.f32 %v5355_v13, %v5372_v1  ;;  %v1530_v43 = vsub.f32 %v5474_v55, %v5496_v41 }
0x3809   :  { %v3774_v12 = vrot.slane %v3773_v58, 1  ;;  %v1187_v21 = vmul.f32 1.442695, %v1186_v57 }
0x380b   :  { %v3775_v30 = vadd.f32 %v3774_v12, %v3773_v58  ;;  %v1531_v58 = vmul.f32 1.442695, %v1530_v43 }
0x380d   :  { %v3778_v62 = vsel %vm593_vm2, %v3775_v30, %v3769_v17  ;;  %vm3926_vm2 = vcmask 254976  }
0x380e   :  { %v3815_v35 = vadd.f32 %v3814_v7, %v3778_v62  ;;  %v2562_v62 = vsub.f32 %v5756_v50, %v5773_v48 }
0x3810   :  { %v3820_v2 = vadd.f32 %v3815_v35, %v6068_v47 }
0x3812   :  { %v3821_v54 = vadd.f32 %v6024_v6, %v3820_v2 }
0x3814   :  { %4746 = vtanh.f32 %v3821_v54  ;;  %v4082_v11 = vmul.f32 -1.442695, %v3821_v54 }
0x3816   :  { %4748 = vpow2.f32 %v4082_v11  ;;  %v2563_v11 = vmul.f32 1.442695, %v2562_v62 }
0x381e   :  { %v4747_v8 = vpop.eup %4746 }
0x381f   :  { %3831 = vrot.lane.b32.xlu0 %v4747_v8, %s4888_s17 }
0x3820   :  { %v4749_v18 = vpop.eup %4748 }
0x3821   :  { %v3825_v56 = vadd.f32 1.0, %v4749_v18  ;;  %v2906_v18 = vsub.f32 %v5875_v10, %v5897_v14 }
0x3823   :  { %4750 = vrcp.f32 %v3825_v56 }
0x382d   :  { %v4751_v29 = vpop.eup %4750 }
0x382e   :  { %v3829_v63 = vmul.f32 %v4751_v29, %v6030_v4  ;;  %v3594_v4 = vsub.f32 %v6066_v44, %v6083_v9 }
0x3830   :  { %v3595_v7 = vmul.f32 1.442695, %v3594_v4 }
0x3891   :  { %v3832_v52 = vpop.permute.xlu0 %3831 }
0x3892   :  { %v3834_v24 = vmul.f32 %v4751_v29, %v3832_v52  ;;  %v3250_v52 = vsub.f32 %v5969_v23, %v5986_v45 }
0x3894   :  { %3836 = vrot.lane.b32.xlu0 %v3834_v24, %s4887_s29 }
0x3906   :  { %v3837_v26 = vpop.permute.xlu0 %3836 }
0x3907   :  { %v6118_v47 = vadd.f32 %v3837_v26, %v3829_v63  ;;  %v3251_v26 = vmul.f32 1.442695, %v3250_v52 }
0x3909   :  { %4752 = vtanh.f32 %v6118_v47 }
0x390a   :  { %4754 = vpow2.f32 %v844_v61 }
0x390b   :  { %4756 = vpow2.f32 %v3595_v7 }
0x3913   :  { %v4753_v6 = vpop.eup %4752 }
0x3914   :  { %3842 = vrot.lane.b32.xlu0 %v4753_v6, %s4888_s17  ;;  %v4755_v22 = vpop.eup %4754  ;;  %s4890_s17 = smov [#allocation4]  }
0x3915   :  { %v846_v25 = vsel %vm839_vm7, %v4755_v22, 0.0  ;;  %v4757_v49 = vpop.eup %4756  ;;  %s3953_s5 = sshll.u32 %s4890_s17, 4  ;;  %s3954_s5 = int_to_ptr.vmem [resolvable:$true] %s3953_s5 }
0x3916   :  { %v3597_v40 = vsel %vm839_vm7, %v4757_v49, 0.0  ;;  %s4812_s24 = scalar_lea.vmem %s3954_s5, 32  ;;  %p4817_p1 = scmp.lt.s32.totalorder %s3954_s5, %s3954_s5 }
0x3917   :  { %p4813_p0 = scmp.ne.s32.totalorder %s3954_s5, %s4812_s24  ;;  %p4818_p2 = scmp.lt.s32.totalorder %s4812_s24, %s4812_s24 }
0x3919   :  { %p4819_p3 = por %p4818_p2, %p4817_p1 }
0x391b   :  { %p4820_p4 = pnand %p4819_p3, %p4813_p0 }
0x3986   :  { %v3843_v37 = vpop.permute.xlu0 %3842 }
0x3987   :  { %v3845_v42 = vmul.f32 %v4751_v29, %v3843_v37  ;;  %v2907_v29 = vmul.f32 1.442695, %v2906_v18 }
0x3989   :  { %v3846_v60 = vpack.c.bf16 %v3845_v42, %v3845_v42 }
0x398b   :  { %3848 = vrot.lane.b32.xlu0 %v3846_v60, %s4887_s29 }
0x39aa   :  { %847 = vadd.xlane.f32.xlu0 %v846_v25 }
0x39ae   :  { %3598 = vadd.xlane.f32.xlu0 %v3597_v40 }
0x39c4   :  { %3923 = vrot.lane.b32.xlu0 %v3845_v42, %s4887_s29 }
0x39fd   :  { %v3849_v3 = vpop.permute.xlu0 %3848 }
0x39fe   :  { %4083 = vmatmul.mubr.msk.bf16.vlgmr.msra.gmra.mrb[76].mxu0 %vm73_vm1, %v3849_v3 }
0x3a37   :  { %v848_v31 = vpop.xlane.xlu0 %847 }
0x3a38   :  { %4758 = vlog2.f32 %v848_v31 }
0x3a3b   :  { %v3599_v28 = vpop.xlane.xlu0 %3598 }
0x3a3c   :  { %4760 = vlog2.f32 %v3599_v28 }
0x3a3d   :  { %4762 = vpow2.f32 %v1187_v21 }
0x3a3e   :  { %4764 = vpow2.f32 %v1531_v58 }
0x3a3f   :  { %v3924_v0 = vpop.permute.xlu0 %3923 }
0x3a40   :  { %3927 = vst.msk [vmem:[#allocation4] sm:$0x3] %vm3926_vm2, %v3924_v0 }
0x3a42   :  { %v4759_v15 = vpop.eup %4758 }
0x3a43   :  { %v850_v32 = vmul.f32 0.6931472, %v4759_v15 }
0x3a45   :  { %v851_v36 = vadd.f32 %v850_v32, %v5283_v20  ;;  %v1874_v20 = vsub.f32 %v5568_v33, %v5585_v34 }
0x3a46   :  { %v4761_v16 = vpop.eup %4760 }
0x3a47   :  { %v852_v51 = vsub.f32 %v5266_v38, %v851_v36  ;;  %v3601_v53 = vmul.f32 0.6931472, %v4761_v16  ;;  %v1875_v38 = vmul.f32 1.442695, %v1874_v20  ;;  %v4763_v8 = vpop.eup %4762 }
0x3a48   :  { %v4765_v56 = vpop.eup %4764 }
0x3a49   :  { %853 = vst [vmem:[#allocation2] sm:$0x3] %v852_v51  ;;  %v3602_v59 = vadd.f32 %v3601_v53, %v6083_v9  ;;  %v2218_v9 = vsub.f32 %v5667_v27, %v5684_v19  ;;  %4766 = vpow2.f32 %v1875_v38  ;;  %v1533_v24 = vsel %vm839_vm7, %v4765_v56, 0.0 }
0x3a4b   :  { %v3603_v5 = vsub.f32 %v6066_v44, %v3602_v59  ;;  %v2219_v30 = vmul.f32 1.442695, %v2218_v9 }
0x3a4d   :  { %3605 = vst [vmem:[#allocation2 + $0x10] sm:$0x3] %v3603_v5  ;;  %4768 = vpow2.f32 %v2219_v30 }
0x3a4e   :  { %4770 = vpow2.f32 %v2563_v11 }
0x3a4f   :  { %4772 = vpow2.f32 %v2907_v29 }
0x3a50   :  { %4774 = vpow2.f32 %v3251_v26 }
0x3a53   :  { %v4767_v63 = vpop.eup %4766 }
0x3a54   :  { %v1877_v6 = vsel %vm839_vm7, %v4767_v63, 0.0 }
0x3a57   :  { %v4769_v37 = vpop.eup %4768 }
0x3a58   :  { %v2221_v42 = vsel %vm839_vm7, %v4769_v37, 0.0  ;;  %v4771_v60 = vpop.eup %4770 }
0x3a59   :  { %v2565_v46 = vsel %vm839_vm7, %v4771_v60, 0.0  ;;  %v4773_v61 = vpop.eup %4772 }
0x3a5a   :  { %v2909_v4 = vsel %vm839_vm7, %v4773_v61, 0.0  ;;  %v4775_v7 = vpop.eup %4774 }
0x3a5b   :  { %v3253_v22 = vsel %vm839_vm7, %v4775_v7, 0.0 }
0x3ad1   :  { %v3887_v12 = vpop.f32.mrb[76].mxu0 }
0x3ad2   :  { %v6145_v44 = vadd.f32 %v6063_v39, %v3887_v12  ;;  %v3889_v17 = vpop.f32.mrb[77].mxu0  ;;  %v1189_v39 = vsel %vm839_vm7, %v4763_v8, 0.0 }
0x3ad3   :  { %v3890_v35 = vpop.f32.mrb[78].mxu0 }
0x3ad4   :  { %v3891_v2 = vpop.f32.mrb[79].mxu0  ;;  %v3894_v54 = vsel %vm839_vm7, %v6145_v44, -inf }
0x3ad5   :  { %3895 = vmax.xlane.f32.xlu1 %v3894_v54 }
0x3ad9   :  { %1190 = vadd.xlane.f32.xlu1 %v1189_v39 }
0x3add   :  { %1534 = vadd.xlane.f32.xlu1 %v1533_v24 }
0x3ae1   :  { %1878 = vadd.xlane.f32.xlu1 %v1877_v6 }
0x3ae5   :  { %2222 = vadd.xlane.f32.xlu1 %v2221_v42 }
0x3ae9   :  { %2566 = vadd.xlane.f32.xlu1 %v2565_v46 }
0x3aed   :  { %2910 = vadd.xlane.f32.xlu1 %v2909_v4 }
0x3af1   :  { %3254 = vadd.xlane.f32.xlu1 %v3253_v22 }
0x3b62   :  { %v6162_v25 = vpop.xlane.xlu1 %3895 }
0x3b63   :  { %v3897_v49 = vsub.f32 %v6145_v44, %v6162_v25 }
0x3b65   :  { %v3898_v40 = vmul.f32 1.442695, %v3897_v49 }
0x3b66   :  { %v1191_v3 = vpop.xlane.xlu1 %1190 }
0x3b67   :  { %4776 = vpow2.f32 %v3898_v40 }
0x3b68   :  { %4778 = vlog2.f32 %v1191_v3 }
0x3b6a   :  { %v1535_v31 = vpop.xlane.xlu1 %1534 }
0x3b6b   :  { %4780 = vlog2.f32 %v1535_v31 }
0x3b6e   :  { %v1879_v28 = vpop.xlane.xlu1 %1878 }
0x3b6f   :  { %4782 = vlog2.f32 %v1879_v28 }
0x3b71   :  { %v4777_v0 = vpop.eup %4776 }
0x3b72   :  { %v4779_v15 = vpop.eup %4778  ;;  %v2223_v32 = vpop.xlane.xlu1 %2222  ;;  %v3900_v36 = vsel %vm839_vm7, %v4777_v0, 0.0 }
0x3b73   :  { %v1193_v16 = vmul.f32 0.6931472, %v4779_v15  ;;  %4784 = vlog2.f32 %v2223_v32  ;;  %3901 = vadd.xlane.f32.xlu1 %v3900_v36 }
0x3b75   :  { %v4781_v51 = vpop.eup %4780  ;;  %v1194_v53 = vadd.f32 %v1193_v16, %v5372_v1 }
0x3b76   :  { %v1537_v59 = vmul.f32 0.6931472, %v4781_v51  ;;  %v2567_v5 = vpop.xlane.xlu1 %2566 }
0x3b77   :  { %v1195_v57 = vsub.f32 %v5355_v13, %v1194_v53  ;;  %4786 = vlog2.f32 %v2567_v5 }
0x3b78   :  { %v1538_v21 = vadd.f32 %v1537_v59, %v5496_v41 }
0x3b79   :  { %v4783_v43 = vpop.eup %4782  ;;  %1197 = vst [vmem:[#allocation2 + $0x2] sm:$0x3] %v1195_v57 }
0x3b7a   :  { %v1539_v58 = vsub.f32 %v5474_v55, %v1538_v21  ;;  %v1881_v20 = vmul.f32 0.6931472, %v4783_v43  ;;  %v2911_v38 = vpop.xlane.xlu1 %2910 }
0x3b7b   :  { %4788 = vlog2.f32 %v2911_v38 }
0x3b7c   :  { %1541 = vst [vmem:[#allocation2 + $0x4] sm:$0x3] %v1539_v58  ;;  %v1882_v9 = vadd.f32 %v1881_v20, %v5585_v34 }
0x3b7d   :  { %v4785_v12 = vpop.eup %4784 }
0x3b7e   :  { %v1883_v1 = vsub.f32 %v5568_v33, %v1882_v9  ;;  %v2225_v17 = vmul.f32 0.6931472, %v4785_v12  ;;  %v3255_v30 = vpop.xlane.xlu1 %3254 }
0x3b7f   :  { %4790 = vlog2.f32 %v3255_v30 }
0x3b80   :  { %1885 = vst [vmem:[#allocation2 + $0x6] sm:$0x3] %v1883_v1  ;;  %v2226_v13 = vadd.f32 %v2225_v17, %v5684_v19 }
0x3b81   :  { %v4787_v41 = vpop.eup %4786 }
0x3b82   :  { %v2227_v62 = vsub.f32 %v5667_v27, %v2226_v13  ;;  %v2569_v35 = vmul.f32 0.6931472, %v4787_v41 }
0x3b84   :  { %2229 = vst [vmem:[#allocation2 + $0x8] sm:$0x3] %v2227_v62  ;;  %v2570_v55 = vadd.f32 %v2569_v35, %v5773_v48  ;;  %3929 = vrot.lane.b32.xlu1 %v6118_v47, %s4889_s13 }
0x3b85   :  { %v4789_v34 = vpop.eup %4788 }
0x3b86   :  { %v2571_v2 = vsub.f32 %v5756_v50, %v2570_v55  ;;  %v2913_v33 = vmul.f32 0.6931472, %v4789_v34 }
0x3b88   :  { %2573 = vst [vmem:[#allocation2 + $0xa] sm:$0x3] %v2571_v2  ;;  %v2914_v54 = vadd.f32 %v2913_v33, %v5897_v14 }
0x3b89   :  { %v4791_v8 = vpop.eup %4790 }
0x3b8a   :  { %v2915_v19 = vsub.f32 %v5875_v10, %v2914_v54  ;;  %v3257_v11 = vmul.f32 0.6931472, %v4791_v8 }
0x3b8c   :  { %2917 = vst [vmem:[#allocation2 + $0xc] sm:$0x3] %v2915_v19  ;;  %v3258_v27 = vadd.f32 %v3257_v11, %v5986_v45 }
0x3b8e   :  { %v3259_v18 = vsub.f32 %v5969_v23, %v3258_v27 }
0x3b90   :  { %3261 = vst [vmem:[#allocation2 + $0xe] sm:$0x3] %v3259_v18 }
0x3b91   :  { %4823 = shalt.err (!%p4820_p4)
}
0x3b92   :  { %s4824_s27 = scalar_lea.hbm %s6237_s14, 32 }
0x3b93   :  { %p4825_p5 = scmp.ne.s32.totalorder %s6237_s14, %s4824_s27  ;;  %p4828_p6 = scmp.lt.u32.totalorder %s4824_s27, %s6237_s14 }
0x3b95   :  { %p4830_p7 = pnand %p4828_p6, %p4825_p5 }
0x3b97   :  { %4833 = shalt.err (!%p4830_p7)
}
0x3b98   :  { %3956 = dma.vmem_to_hbm [thread:$0]  %s3954_s5, 32, %s6237_s14, [#allocation5]  }
0x3b99   :  { %s4891_s18 = smov [#allocation6]  }
0x3b9a   :  { %s3963_s8 = sshll.u32 %s4891_s18, 4  ;;  %s3964_s8 = int_to_ptr.vmem [resolvable:$true] %s3963_s8 }
0x3b9b   :  { %s4834_s9 = scalar_lea.vmem %s3964_s8, 32  ;;  %p4839_p9 = scmp.lt.s32.totalorder %s3964_s8, %s3964_s8 }
0x3b9c   :  { %p4835_p8 = scmp.ne.s32.totalorder %s3964_s8, %s4834_s9  ;;  %p4840_p10 = scmp.lt.s32.totalorder %s4834_s9, %s4834_s9 }
0x3b9e   :  { %p4841_p11 = por %p4840_p10, %p4839_p9 }
0x3ba0   :  { %p4842_p12 = pnand %p4841_p11, %p4835_p8 }
0x3c00   :  { %v3902_v50 = vpop.xlane.xlu1 %3901 }
0x3c01   :  { %4792 = vlog2.f32 %v3902_v50 }
0x3c04   :  { %v3930_v48 = vpop.permute.xlu1 %3929 }
0x3c05   :  { %3932 = vst.msk [vmem:[#allocation6] sm:$0x3] %vm3926_vm2, %v3930_v48 }
0x3c06   :  { %4845 = shalt.err (!%p4842_p12)
}
0x3c07   :  { %s4846_s20 = scalar_lea.hbm %s6238_s15, 32 }
0x3c08   :  { %p4847_p13 = scmp.ne.s32.totalorder %s6238_s15, %s4846_s20  ;;  %p4850_p0 = scmp.lt.u32.totalorder %s4846_s20, %s6238_s15 }
0x3c0a   :  { %p4852_p1 = pnand %p4850_p0, %p4847_p13 }
0x3c0c   :  { %4855 = shalt.err (!%p4852_p1)
}
0x3c0d   :  { %3966 = dma.vmem_to_hbm [thread:$0]  %s3964_s8, 32, %s6238_s15, [#allocation5]   ;;  %v4793_v10 = vpop.eup %4792 }
0x3c0e   :  { %v3904_v14 = vmul.f32 0.6931472, %v4793_v10  ;;  %s4892_s0 = smov [#allocation2]  }
0x3c0f   :  { %s3938_s11 = sshll.u32 %s4892_s0, 4  ;;  %s3939_s11 = int_to_ptr.vmem [resolvable:$true] %s3938_s11 }
0x3c10   :  { %v3905_v23 = vadd.f32 %v3904_v14, %v6162_v25  ;;  %s4856_s4 = scalar_lea.vmem %s3939_s11, 320  ;;  %p4861_p3 = scmp.lt.s32.totalorder %s3939_s11, %s3939_s11 }
0x3c11   :  { %p4857_p2 = scmp.ne.s32.totalorder %s3939_s11, %s4856_s4  ;;  %p4862_p4 = scmp.lt.s32.totalorder %s4856_s4, %s4856_s4 }
0x3c12   :  { %v3906_v45 = vsub.f32 %v6145_v44, %v3905_v23 }
0x3c13   :  { %p4863_p5 = por %p4862_p4, %p4861_p3 }
0x3c14   :  { %3908 = vst [vmem:[#allocation2 + $0x12] sm:$0x3] %v3906_v45 }
0x3c15   :  { %p4864_p6 = pnand %p4863_p5, %p4857_p2 }
0x3c17   :  { %4867 = shalt.err (!%p4864_p6)
}
0x3c18   :  { %s4868_s15 = scalar_lea.hbm %s6235_s12, 320 }
0x3c19   :  { %p4869_p7 = scmp.ne.s32.totalorder %s6235_s12, %s4868_s15  ;;  %p4872_p8 = scmp.lt.u32.totalorder %s4868_s15, %s6235_s12 }
0x3c1b   :  { %p4874_p9 = pnand %p4872_p8, %p4869_p7 }
0x3c1d   :  { %4877 = shalt.err (!%p4874_p9)
}
0x3c1e   :  { %s4893_s27 = smov 2  }
0x3c1f   :  { %3944 = dma.vmem_to_hbm [thread:$0]  %s3939_s11, 320, %s6235_s12, [#allocation3], %s4887_s29, %s4887_s29, %s4893_s27  }
0x3c20   :  { %4878 = dma.done.wait [#allocation3], 320  }
0x3c21   :  { %4879 = vsyncadd [#allocation3], 4294966976 }
0x3c22   :  { %4880 = dma.done.wait [#allocation5], 64  }
0x3c23   :  { %4881 = vsyncadd [#allocation5], 4294967232 }
0x3c24   :  { %3978 = vsyncpa [#allocation3], 1 }
0x3c25   :  { %3979 = vsyncpa [#allocation5], 1 }

</bundles_post_ra>
